<compile_context>
chip_gen: v7x
topology: tpu7x:2x2x1
jax: 0.10.0
libtpu: 0.0.40
codegen_flags: <defaults>
</compile_context>

<pallas_src>
import math
import jax
import jax.numpy as jnp
from jax.experimental import pallas as pl
from jax.experimental.pallas import tpu as pltpu

# ----------------------------- tiny config -----------------------------------
VOCAB = 100
HIDDEN = 32
N_HEADS = 4
HEAD_DIM = HIDDEN // N_HEADS
N_LAYERS = 2
INTERMEDIATE = 64
SEQ = 8
BATCH = 2
LN_EPS = 1e-5
LEAKY_SLOPE = 0.01      # nn.LeakyReLU default
N_CLASSES = 2
OUT_PAD = 128           # lane-dense output slab; real logits are [:, :N_CLASSES]
NEG_INF = -1e9


# ----------------------------- kernel helpers ---------------------------------
def _layernorm(x, gamma, beta):
    mean = jnp.mean(x, axis=-1, keepdims=True)
    var = jnp.mean((x - mean) ** 2, axis=-1, keepdims=True)
    return (x - mean) * jax.lax.rsqrt(var + LN_EPS) * gamma + beta


def _bf16(v):
    return v.astype(jnp.bfloat16)


# ----------------------------- fused Pallas kernel -----------------------------
def fused_forward_kernel(
        x_ref,                                   # (B*S, H) f32 embedded tokens
        mask_ref,                                # (B*S, B*S) f32 block-diag mask
        sel_ref,                                 # (B, B*S) bf16 one-hot CLS select
        emb_g_ref, emb_b_ref,                    # (1, H) f32
        wq_ref, wk_ref, wv_ref,                  # (L, NH, H, HD) bf16
        bq_ref, bk_ref, bv_ref,                  # (L*NH, HD) f32
        wo_ref, bo_ref,                          # (L, NH, HD, H) bf16, (L, H) f32
        ln1g_ref, ln1b_ref,                      # (L, H) f32
        w1_ref, b1_ref,                          # (L, H, I) bf16, (L, I) f32
        w2_ref, b2_ref,                          # (L, I, H) bf16, (L, H) f32
        ln2g_ref, ln2b_ref,                      # (L, H) f32
        fc1w_ref, fc1b_ref,                      # (H, H) bf16, (1, H) f32
        fc2w_ref, fc2b_ref,                      # (H, OUT_PAD) bf16, (1, OUT_PAD) f32
        o_ref):                                  # (B, OUT_PAD) f32
    BS = BATCH * SEQ

    # Embedding LayerNorm over all tokens at once (f32).
    x = _layernorm(x_ref[...], emb_g_ref[...], emb_b_ref[...])      # (BS, H)
    mask = mask_ref[...]                                             # (BS, BS)

    # Frozen encoder layers (statically unrolled; L = 2).
    for l in range(N_LAYERS):
        # ---- self-attention (all batches fused via block-diagonal mask) -----
        x_bf = _bf16(x)
        acc = jnp.zeros((BS, HIDDEN), jnp.float32)
        for h in range(N_HEADS):
            r = l * N_HEADS + h
            # Per-head projections straight out of tiny GEMMs (scale already
            # folded into wq/bq at init time).
            qh = (jnp.dot(x_bf, wq_ref[l, h], preferred_element_type=jnp.float32)
                  + bq_ref[r:r + 1, :])                              # (BS, HD)
            kh = (jnp.dot(x_bf, wk_ref[l, h], preferred_element_type=jnp.float32)
                  + bk_ref[r:r + 1, :])
            vh = (jnp.dot(x_bf, wv_ref[l, h], preferred_element_type=jnp.float32)
                  + bv_ref[r:r + 1, :])

            # Scores: contract on the last dim of both operands (no transpose).
            s = jax.lax.dot_general(
                _bf16(qh), _bf16(kh), (((1,), (1,)), ((), ())),
                preferred_element_type=jnp.float32)                  # (BS, BS)
            s = s + mask
            s = s - jnp.max(s, axis=-1, keepdims=True)
            p = jnp.exp(s)
            p = p * pl.reciprocal(jnp.sum(p, axis=-1, keepdims=True),
                                  approx=False)

            ctx = jnp.dot(_bf16(p), _bf16(vh),
                          preferred_element_type=jnp.float32)        # (BS, HD)
            # Fold the output projection per head -> no lane-axis concat.
            acc = acc + jnp.dot(_bf16(ctx), wo_ref[l, h],
                                preferred_element_type=jnp.float32)  # (BS, H)

        attn_out = acc + bo_ref[l:l + 1, :]
        x = _layernorm(x + attn_out, ln1g_ref[l:l + 1, :], ln1b_ref[l:l + 1, :])

        # ---- feed-forward -----------------------------------------------------
        hdn = (jnp.dot(_bf16(x), w1_ref[l], preferred_element_type=jnp.float32)
               + b1_ref[l:l + 1, :])
        hdn = jax.nn.gelu(hdn, approximate=True)                     # f32 EUP math
        ff = (jnp.dot(_bf16(hdn), w2_ref[l], preferred_element_type=jnp.float32)
              + b2_ref[l:l + 1, :])
        x = _layernorm(x + ff, ln2g_ref[l:l + 1, :], ln2b_ref[l:l + 1, :])

    # ---- CLS rows via one-hot selection matmul (MXU, no sublane gather) ------
    cls = jnp.dot(sel_ref[...], _bf16(x),
                  preferred_element_type=jnp.float32)                # (B, H)

    # ---- TuneModel.fc head: Linear(H,H) -> LeakyReLU -> Linear(H,2-padded) ---
    h1 = (jnp.dot(_bf16(cls), fc1w_ref[...], preferred_element_type=jnp.float32)
          + fc1b_ref[...])
    h1 = jnp.where(h1 > 0, h1, LEAKY_SLOPE * h1)
    o_ref[...] = (jnp.dot(_bf16(h1), fc2w_ref[...],
                          preferred_element_type=jnp.float32)
                  + fc2b_ref[...])                                   # (B, OUT_PAD)


# ----------------------------- pallas_call wrapper -----------------------------
def tune_model_forward(token_ids, params):
    # Embedding lookup + position embeddings (glue, plain JAX gather).
    x = params["word_emb"][token_ids] + params["pos_emb"][None, :, :]  # (B, S, H)
    B, S, H = x.shape

    # Frozen encoder: no_grad in torch -> stop_gradient here (numerics unchanged).
    sg = jax.lax.stop_gradient
    x2d = sg(x.reshape(B * S, H))
    enc = {k: sg(params[k]) for k in
           ("emb_ln_g", "emb_ln_b", "wq", "wk", "wv", "bq", "bk", "bv",
            "wo", "bo", "ln1_g", "ln1_b", "w1", "b1", "w2", "b2",
            "ln2_g", "ln2_b")}

    n_inputs = 25
    vmem_specs = [pl.BlockSpec(memory_space=pltpu.MemorySpace.VMEM)
                  for _ in range(n_inputs)]

    out_pad = pl.pallas_call(
        fused_forward_kernel,
        out_shape=jax.ShapeDtypeStruct((B, OUT_PAD), jnp.float32),
        in_specs=vmem_specs,
        out_specs=pl.BlockSpec(memory_space=pltpu.MemorySpace.VMEM),
    )(x2d, params["attn_mask"], params["cls_sel"],
      enc["emb_ln_g"], enc["emb_ln_b"],
      enc["wq"], enc["wk"], enc["wv"],
      enc["bq"], enc["bk"], enc["bv"],
      enc["wo"], enc["bo"],
      enc["ln1_g"], enc["ln1_b"],
      enc["w1"], enc["b1"], enc["w2"], enc["b2"],
      enc["ln2_g"], enc["ln2_b"],
      params["fc1_w"], params["fc1_b"], params["fc2_w"], params["fc2_b"])

    return out_pad[:, :N_CLASSES]                                    # (B, 2)


# ----------------------------- parameters --------------------------------------
def init_params(key):
    keys = jax.random.split(key, 32)
    it = iter(keys)

    def nrm(shape, scale=0.02):
        return scale * jax.random.normal(next(it), shape, dtype=jnp.float32)

    L, H, I, NH, HD = N_LAYERS, HIDDEN, INTERMEDIATE, N_HEADS, HEAD_DIM
    qk_scale = 1.0 / math.sqrt(HD)
    bf16 = jnp.bfloat16

    params = {
        "word_emb": nrm((VOCAB, H)),
        "pos_emb": nrm((SEQ, H)),
        "emb_ln_g": jnp.ones((1, H), jnp.float32),
        "emb_ln_b": jnp.zeros((1, H), jnp.float32),
        # Per-head attention weights; 1/sqrt(HD) folded into Q weight + bias.
        "wq": (nrm((L, NH, H, HD)) * qk_scale).astype(bf16),
        "wk": nrm((L, NH, H, HD)).astype(bf16),
        "wv": nrm((L, NH, H, HD)).astype(bf16),
        "bq": nrm((L * NH, HD)) * qk_scale,
        "bk": nrm((L * NH, HD)),
        "bv": nrm((L * NH, HD)),
        "wo": nrm((L, NH, HD, H)).astype(bf16),
        "bo": nrm((L, H)),
        "ln1_g": jnp.ones((L, H), jnp.float32),
        "ln1_b": jnp.zeros((L, H), jnp.float32),
        "w1": nrm((L, H, I)).astype(bf16), "b1": nrm((L, I)),
        "w2": nrm((L, I, H)).astype(bf16), "b2": nrm((L, H)),
        "ln2_g": jnp.ones((L, H), jnp.float32),
        "ln2_b": jnp.zeros((L, H), jnp.float32),
        # TuneModel.fc head; fc2 pre-padded to a lane-dense 128-wide slab.
        "fc1_w": nrm((H, H)).astype(bf16), "fc1_b": nrm((1, H)),
    }

    fc2_w = jnp.zeros((H, OUT_PAD), jnp.float32).at[:, :N_CLASSES].set(
        nrm((H, N_CLASSES)))
    fc2_b = jnp.zeros((1, OUT_PAD), jnp.float32).at[:, :N_CLASSES].set(
        nrm((1, N_CLASSES)))
    params["fc2_w"] = fc2_w.astype(bf16)
    params["fc2_b"] = fc2_b

    # Block-diagonal attention mask (fused-batch softmax) and CLS row selector,
    # built once here so nothing is reconstructed inside the traced forward.
    tok = jnp.arange(BATCH * SEQ)
    same_batch = (tok[:, None] // SEQ) == (tok[None, :] // SEQ)
    params["attn_mask"] = jnp.where(same_batch, 0.0, NEG_INF).astype(jnp.float32)
    params["cls_sel"] = jax.nn.one_hot(jnp.arange(BATCH) * SEQ, BATCH * SEQ,
                                       dtype=bf16)                  # (B, B*S)
    return params


# ----------------------------- main ---------------------------------------------
if __name__ == "__main__":
    key = jax.random.PRNGKey(0)
    pkey, xkey = jax.random.split(key)
    params = init_params(pkey)

    token_ids = jax.random.randint(xkey, (BATCH, SEQ), 0, VOCAB, dtype=jnp.int32)

    out = jax.jit(tune_model_forward)(token_ids, params)
    out = jax.block_until_ready(out)
    assert out.shape == (BATCH, N_CLASSES) and out.dtype == jnp.float32
    assert bool(jnp.all(jnp.isfinite(out)))
    print("KERNEL_OK")
</pallas_src>

<mosaic_0001>
module attributes {stable_mosaic.version = 11 : i64} {
  func.func @fused_forward_kernel(%arg0: memref<16x32xf32, #tpu.memory_space<vmem>>, %arg1: memref<16x16xf32, #tpu.memory_space<vmem>>, %arg2: memref<2x16xbf16, #tpu.memory_space<vmem>>, %arg3: memref<1x32xf32, #tpu.memory_space<vmem>>, %arg4: memref<1x32xf32, #tpu.memory_space<vmem>>, %arg5: memref<2x4x32x8xbf16, #tpu.memory_space<vmem>>, %arg6: memref<2x4x32x8xbf16, #tpu.memory_space<vmem>>, %arg7: memref<2x4x32x8xbf16, #tpu.memory_space<vmem>>, %arg8: memref<8x8xf32, #tpu.memory_space<vmem>>, %arg9: memref<8x8xf32, #tpu.memory_space<vmem>>, %arg10: memref<8x8xf32, #tpu.memory_space<vmem>>, %arg11: memref<2x4x8x32xbf16, #tpu.memory_space<vmem>>, %arg12: memref<2x32xf32, #tpu.memory_space<vmem>>, %arg13: memref<2x32xf32, #tpu.memory_space<vmem>>, %arg14: memref<2x32xf32, #tpu.memory_space<vmem>>, %arg15: memref<2x32x64xbf16, #tpu.memory_space<vmem>>, %arg16: memref<2x64xf32, #tpu.memory_space<vmem>>, %arg17: memref<2x64x32xbf16, #tpu.memory_space<vmem>>, %arg18: memref<2x32xf32, #tpu.memory_space<vmem>>, %arg19: memref<2x32xf32, #tpu.memory_space<vmem>>, %arg20: memref<2x32xf32, #tpu.memory_space<vmem>>, %arg21: memref<32x32xbf16, #tpu.memory_space<vmem>>, %arg22: memref<1x32xf32, #tpu.memory_space<vmem>>, %arg23: memref<32x128xbf16, #tpu.memory_space<vmem>>, %arg24: memref<1x128xf32, #tpu.memory_space<vmem>>, %arg25: memref<2x128xf32, #tpu.memory_space<vmem>>) attributes {dimension_semantics = [], scalar_prefetch = 0 : i64, scratch_operands = 0 : i64, tpu.core_type = #tpu.core_type<tc>} {
    %c0 = arith.constant 0 : index
    %c0_0 = arith.constant 0 : index
    %0 = vector.load %arg0[%c0, %c0_0] : memref<16x32xf32, #tpu.memory_space<vmem>>, vector<16x32xf32>
    %c0_1 = arith.constant 0 : index
    %c0_2 = arith.constant 0 : index
    %1 = vector.load %arg3[%c0_1, %c0_2] : memref<1x32xf32, #tpu.memory_space<vmem>>, vector<1x32xf32>
    %c0_3 = arith.constant 0 : index
    %c0_4 = arith.constant 0 : index
    %2 = vector.load %arg4[%c0_3, %c0_4] : memref<1x32xf32, #tpu.memory_space<vmem>>, vector<1x32xf32>
    %cst = arith.constant dense<0.000000e+00> : vector<16xf32>
    %3 = vector.multi_reduction <add>, %0, %cst [1] : vector<16x32xf32> to vector<16xf32>
    %4 = vector.shape_cast %3 : vector<16xf32> to vector<16x1xf32>
    %cst_5 = arith.constant 3.200000e+01 : f32
    %5 = vector.broadcast %cst_5 : f32 to vector<16x1xf32>
    %6 = arith.divf %4, %5 : vector<16x1xf32>
    %7 = vector.broadcast %6 : vector<16x1xf32> to vector<16x32xf32>
    %8 = arith.subf %0, %7 : vector<16x32xf32>
    %9 = arith.mulf %8, %8 : vector<16x32xf32>
    %cst_6 = arith.constant dense<0.000000e+00> : vector<16xf32>
    %10 = vector.multi_reduction <add>, %9, %cst_6 [1] : vector<16x32xf32> to vector<16xf32>
    %11 = vector.shape_cast %10 : vector<16xf32> to vector<16x1xf32>
    %cst_7 = arith.constant 3.200000e+01 : f32
    %12 = vector.broadcast %cst_7 : f32 to vector<16x1xf32>
    %13 = arith.divf %11, %12 : vector<16x1xf32>
    %14 = vector.broadcast %6 : vector<16x1xf32> to vector<16x32xf32>
    %15 = arith.subf %0, %14 : vector<16x32xf32>
    %cst_8 = arith.constant 9.99999974E-6 : f32
    %16 = vector.broadcast %cst_8 : f32 to vector<16x1xf32>
    %17 = arith.addf %13, %16 : vector<16x1xf32>
    %18 = math.rsqrt %17 : vector<16x1xf32>
    %19 = vector.broadcast %18 : vector<16x1xf32> to vector<16x32xf32>
    %20 = arith.mulf %15, %19 : vector<16x32xf32>
    %21 = vector.broadcast %1 : vector<1x32xf32> to vector<16x32xf32>
    %22 = arith.mulf %20, %21 : vector<16x32xf32>
    %23 = vector.broadcast %2 : vector<1x32xf32> to vector<16x32xf32>
    %24 = arith.addf %22, %23 : vector<16x32xf32>
    %c0_9 = arith.constant 0 : index
    %c0_10 = arith.constant 0 : index
    %25 = vector.load %arg1[%c0_9, %c0_10] : memref<16x16xf32, #tpu.memory_space<vmem>>, vector<16x16xf32>
    %26 = arith.truncf %24 : vector<16x32xf32> to vector<16x32xbf16>
    %cst_11 = arith.constant 0.000000e+00 : f32
    %27 = vector.broadcast %cst_11 : f32 to vector<16x32xf32>
    %c0_12 = arith.constant 0 : index
    %c0_13 = arith.constant 0 : index
    %c0_14 = arith.constant 0 : index
    %c0_15 = arith.constant 0 : index
    %28 = vector.load %arg5[%c0_12, %c0_13, %c0_14, %c0_15] : memref<2x4x32x8xbf16, #tpu.memory_space<vmem>>, vector<1x1x32x8xbf16>
    %29 = vector.shape_cast %28 : vector<1x1x32x8xbf16> to vector<32x8xbf16>
    %cst_16 = arith.constant dense<0.000000e+00> : vector<16x8xf32>
    %30 = tpu.matmul %26, %29, %cst_16 {dimension_numbers = #tpu.dot_dimension_numbers<[1], [0], [0], [1], [0, 0, 1, 1], [], []>} : vector<16x32xbf16>, vector<32x8xbf16>, vector<16x8xf32> -> vector<16x8xf32>
    %c0_17 = arith.constant 0 : index
    %c0_18 = arith.constant 0 : index
    %31 = vector.load %arg8[%c0_17, %c0_18] : memref<8x8xf32, #tpu.memory_space<vmem>>, vector<1x8xf32>
    %32 = vector.broadcast %31 : vector<1x8xf32> to vector<16x8xf32>
    %33 = arith.addf %30, %32 : vector<16x8xf32>
    %c0_19 = arith.constant 0 : index
    %c0_20 = arith.constant 0 : index
    %c0_21 = arith.constant 0 : index
    %c0_22 = arith.constant 0 : index
    %34 = vector.load %arg6[%c0_19, %c0_20, %c0_21, %c0_22] : memref<2x4x32x8xbf16, #tpu.memory_space<vmem>>, vector<1x1x32x8xbf16>
    %35 = vector.shape_cast %34 : vector<1x1x32x8xbf16> to vector<32x8xbf16>
    %cst_23 = arith.constant dense<0.000000e+00> : vector<16x8xf32>
    %36 = tpu.matmul %26, %35, %cst_23 {dimension_numbers = #tpu.dot_dimension_numbers<[1], [0], [0], [1], [0, 0, 1, 1], [], []>} : vector<16x32xbf16>, vector<32x8xbf16>, vector<16x8xf32> -> vector<16x8xf32>
    %c0_24 = arith.constant 0 : index
    %c0_25 = arith.constant 0 : index
    %37 = vector.load %arg9[%c0_24, %c0_25] : memref<8x8xf32, #tpu.memory_space<vmem>>, vector<1x8xf32>
    %38 = vector.broadcast %37 : vector<1x8xf32> to vector<16x8xf32>
    %39 = arith.addf %36, %38 : vector<16x8xf32>
    %c0_26 = arith.constant 0 : index
    %c0_27 = arith.constant 0 : index
    %c0_28 = arith.constant 0 : index
    %c0_29 = arith.constant 0 : index
    %40 = vector.load %arg7[%c0_26, %c0_27, %c0_28, %c0_29] : memref<2x4x32x8xbf16, #tpu.memory_space<vmem>>, vector<1x1x32x8xbf16>
    %41 = vector.shape_cast %40 : vector<1x1x32x8xbf16> to vector<32x8xbf16>
    %cst_30 = arith.constant dense<0.000000e+00> : vector<16x8xf32>
    %42 = tpu.matmul %26, %41, %cst_30 {dimension_numbers = #tpu.dot_dimension_numbers<[1], [0], [0], [1], [0, 0, 1, 1], [], []>} : vector<16x32xbf16>, vector<32x8xbf16>, vector<16x8xf32> -> vector<16x8xf32>
    %c0_31 = arith.constant 0 : index
    %c0_32 = arith.constant 0 : index
    %43 = vector.load %arg10[%c0_31, %c0_32] : memref<8x8xf32, #tpu.memory_space<vmem>>, vector<1x8xf32>
    %44 = vector.broadcast %43 : vector<1x8xf32> to vector<16x8xf32>
    %45 = arith.addf %42, %44 : vector<16x8xf32>
    %46 = arith.truncf %33 : vector<16x8xf32> to vector<16x8xbf16>
    %47 = arith.truncf %39 : vector<16x8xf32> to vector<16x8xbf16>
    %cst_33 = arith.constant dense<0.000000e+00> : vector<16x16xf32>
    %48 = tpu.matmul %46, %47, %cst_33 {dimension_numbers = #tpu.dot_dimension_numbers<[1], [1], [0], [0], [0, 0, 1, 0], [], []>} : vector<16x8xbf16>, vector<16x8xbf16>, vector<16x16xf32> -> vector<16x16xf32>
    %49 = arith.addf %48, %25 : vector<16x16xf32>
    %cst_34 = arith.constant dense<0xFF800000> : vector<16xf32>
    %50 = vector.multi_reduction <maximumf>, %49, %cst_34 [1] : vector<16x16xf32> to vector<16xf32>
    %51 = vector.shape_cast %50 : vector<16xf32> to vector<16x1xf32>
    %52 = vector.broadcast %51 : vector<16x1xf32> to vector<16x16xf32>
    %53 = arith.subf %49, %52 : vector<16x16xf32>
    %54 = math.exp %53 : vector<16x16xf32>
    %cst_35 = arith.constant dense<0.000000e+00> : vector<16xf32>
    %55 = vector.multi_reduction <add>, %54, %cst_35 [1] : vector<16x16xf32> to vector<16xf32>
    %56 = vector.shape_cast %55 : vector<16xf32> to vector<16x1xf32>
    %57 = tpu.reciprocal %56 : vector<16x1xf32> -> vector<16x1xf32>
    %58 = vector.broadcast %57 : vector<16x1xf32> to vector<16x16xf32>
    %59 = arith.mulf %54, %58 : vector<16x16xf32>
    %60 = arith.truncf %59 : vector<16x16xf32> to vector<16x16xbf16>
    %61 = arith.truncf %45 : vector<16x8xf32> to vector<16x8xbf16>
    %cst_36 = arith.constant dense<0.000000e+00> : vector<16x8xf32>
    %62 = tpu.matmul %60, %61, %cst_36 {dimension_numbers = #tpu.dot_dimension_numbers<[1], [0], [0], [1], [0, 0, 1, 1], [], []>} : vector<16x16xbf16>, vector<16x8xbf16>, vector<16x8xf32> -> vector<16x8xf32>
    %63 = arith.truncf %62 : vector<16x8xf32> to vector<16x8xbf16>
    %c0_37 = arith.constant 0 : index
    %c0_38 = arith.constant 0 : index
    %c0_39 = arith.constant 0 : index
    %c0_40 = arith.constant 0 : index
    %64 = vector.load %arg11[%c0_37, %c0_38, %c0_39, %c0_40] : memref<2x4x8x32xbf16, #tpu.memory_space<vmem>>, vector<1x1x8x32xbf16>
    %65 = vector.shape_cast %64 : vector<1x1x8x32xbf16> to vector<8x32xbf16>
    %cst_41 = arith.constant dense<0.000000e+00> : vector<16x32xf32>
    %66 = tpu.matmul %63, %65, %cst_41 {dimension_numbers = #tpu.dot_dimension_numbers<[1], [0], [0], [1], [0, 0, 1, 1], [], []>} : vector<16x8xbf16>, vector<8x32xbf16>, vector<16x32xf32> -> vector<16x32xf32>
    %67 = arith.addf %27, %66 : vector<16x32xf32>
    %c0_42 = arith.constant 0 : index
    %c1 = arith.constant 1 : index
    %c0_43 = arith.constant 0 : index
    %c0_44 = arith.constant 0 : index
    %68 = vector.load %arg5[%c0_42, %c1, %c0_43, %c0_44] : memref<2x4x32x8xbf16, #tpu.memory_space<vmem>>, vector<1x1x32x8xbf16>
    %69 = vector.shape_cast %68 : vector<1x1x32x8xbf16> to vector<32x8xbf16>
    %cst_45 = arith.constant dense<0.000000e+00> : vector<16x8xf32>
    %70 = tpu.matmul %26, %69, %cst_45 {dimension_numbers = #tpu.dot_dimension_numbers<[1], [0], [0], [1], [0, 0, 1, 1], [], []>} : vector<16x32xbf16>, vector<32x8xbf16>, vector<16x8xf32> -> vector<16x8xf32>
    %c1_46 = arith.constant 1 : index
    %c0_47 = arith.constant 0 : index
    %71 = vector.load %arg8[%c1_46, %c0_47] : memref<8x8xf32, #tpu.memory_space<vmem>>, vector<1x8xf32>
    %72 = vector.broadcast %71 : vector<1x8xf32> to vector<16x8xf32>
    %73 = arith.addf %70, %72 : vector<16x8xf32>
    %c0_48 = arith.constant 0 : index
    %c1_49 = arith.constant 1 : index
    %c0_50 = arith.constant 0 : index
    %c0_51 = arith.constant 0 : index
    %74 = vector.load %arg6[%c0_48, %c1_49, %c0_50, %c0_51] : memref<2x4x32x8xbf16, #tpu.memory_space<vmem>>, vector<1x1x32x8xbf16>
    %75 = vector.shape_cast %74 : vector<1x1x32x8xbf16> to vector<32x8xbf16>
    %cst_52 = arith.constant dense<0.000000e+00> : vector<16x8xf32>
    %76 = tpu.matmul %26, %75, %cst_52 {dimension_numbers = #tpu.dot_dimension_numbers<[1], [0], [0], [1], [0, 0, 1, 1], [], []>} : vector<16x32xbf16>, vector<32x8xbf16>, vector<16x8xf32> -> vector<16x8xf32>
    %c1_53 = arith.constant 1 : index
    %c0_54 = arith.constant 0 : index
    %77 = vector.load %arg9[%c1_53, %c0_54] : memref<8x8xf32, #tpu.memory_space<vmem>>, vector<1x8xf32>
    %78 = vector.broadcast %77 : vector<1x8xf32> to vector<16x8xf32>
    %79 = arith.addf %76, %78 : vector<16x8xf32>
    %c0_55 = arith.constant 0 : index
    %c1_56 = arith.constant 1 : index
    %c0_57 = arith.constant 0 : index
    %c0_58 = arith.constant 0 : index
    %80 = vector.load %arg7[%c0_55, %c1_56, %c0_57, %c0_58] : memref<2x4x32x8xbf16, #tpu.memory_space<vmem>>, vector<1x1x32x8xbf16>
    %81 = vector.shape_cast %80 : vector<1x1x32x8xbf16> to vector<32x8xbf16>
    %cst_59 = arith.constant dense<0.000000e+00> : vector<16x8xf32>
    %82 = tpu.matmul %26, %81, %cst_59 {dimension_numbers = #tpu.dot_dimension_numbers<[1], [0], [0], [1], [0, 0, 1, 1], [], []>} : vector<16x32xbf16>, vector<32x8xbf16>, vector<16x8xf32> -> vector<16x8xf32>
    %c1_60 = arith.constant 1 : index
    %c0_61 = arith.constant 0 : index
    %83 = vector.load %arg10[%c1_60, %c0_61] : memref<8x8xf32, #tpu.memory_space<vmem>>, vector<1x8xf32>
    %84 = vector.broadcast %83 : vector<1x8xf32> to vector<16x8xf32>
    %85 = arith.addf %82, %84 : vector<16x8xf32>
    %86 = arith.truncf %73 : vector<16x8xf32> to vector<16x8xbf16>
    %87 = arith.truncf %79 : vector<16x8xf32> to vector<16x8xbf16>
    %cst_62 = arith.constant dense<0.000000e+00> : vector<16x16xf32>
    %88 = tpu.matmul %86, %87, %cst_62 {dimension_numbers = #tpu.dot_dimension_numbers<[1], [1], [0], [0], [0, 0, 1, 0], [], []>} : vector<16x8xbf16>, vector<16x8xbf16>, vector<16x16xf32> -> vector<16x16xf32>
    %89 = arith.addf %88, %25 : vector<16x16xf32>
    %cst_63 = arith.constant dense<0xFF800000> : vector<16xf32>
    %90 = vector.multi_reduction <maximumf>, %89, %cst_63 [1] : vector<16x16xf32> to vector<16xf32>
    %91 = vector.shape_cast %90 : vector<16xf32> to vector<16x1xf32>
    %92 = vector.broadcast %91 : vector<16x1xf32> to vector<16x16xf32>
    %93 = arith.subf %89, %92 : vector<16x16xf32>
    %94 = math.exp %93 : vector<16x16xf32>
    %cst_64 = arith.constant dense<0.000000e+00> : vector<16xf32>
    %95 = vector.multi_reduction <add>, %94, %cst_64 [1] : vector<16x16xf32> to vector<16xf32>
    %96 = vector.shape_cast %95 : vector<16xf32> to vector<16x1xf32>
    %97 = tpu.reciprocal %96 : vector<16x1xf32> -> vector<16x1xf32>
    %98 = vector.broadcast %97 : vector<16x1xf32> to vector<16x16xf32>
    %99 = arith.mulf %94, %98 : vector<16x16xf32>
    %100 = arith.truncf %99 : vector<16x16xf32> to vector<16x16xbf16>
    %101 = arith.truncf %85 : vector<16x8xf32> to vector<16x8xbf16>
    %cst_65 = arith.constant dense<0.000000e+00> : vector<16x8xf32>
    %102 = tpu.matmul %100, %101, %cst_65 {dimension_numbers = #tpu.dot_dimension_numbers<[1], [0], [0], [1], [0, 0, 1, 1], [], []>} : vector<16x16xbf16>, vector<16x8xbf16>, vector<16x8xf32> -> vector<16x8xf32>
    %103 = arith.truncf %102 : vector<16x8xf32> to vector<16x8xbf16>
    %c0_66 = arith.constant 0 : index
    %c1_67 = arith.constant 1 : index
    %c0_68 = arith.constant 0 : index
    %c0_69 = arith.constant 0 : index
    %104 = vector.load %arg11[%c0_66, %c1_67, %c0_68, %c0_69] : memref<2x4x8x32xbf16, #tpu.memory_space<vmem>>, vector<1x1x8x32xbf16>
    %105 = vector.shape_cast %104 : vector<1x1x8x32xbf16> to vector<8x32xbf16>
    %cst_70 = arith.constant dense<0.000000e+00> : vector<16x32xf32>
    %106 = tpu.matmul %103, %105, %cst_70 {dimension_numbers = #tpu.dot_dimension_numbers<[1], [0], [0], [1], [0, 0, 1, 1], [], []>} : vector<16x8xbf16>, vector<8x32xbf16>, vector<16x32xf32> -> vector<16x32xf32>
    %107 = arith.addf %67, %106 : vector<16x32xf32>
    %c0_71 = arith.constant 0 : index
    %c2 = arith.constant 2 : index
    %c0_72 = arith.constant 0 : index
    %c0_73 = arith.constant 0 : index
    %108 = vector.load %arg5[%c0_71, %c2, %c0_72, %c0_73] : memref<2x4x32x8xbf16, #tpu.memory_space<vmem>>, vector<1x1x32x8xbf16>
    %109 = vector.shape_cast %108 : vector<1x1x32x8xbf16> to vector<32x8xbf16>
    %cst_74 = arith.constant dense<0.000000e+00> : vector<16x8xf32>
    %110 = tpu.matmul %26, %109, %cst_74 {dimension_numbers = #tpu.dot_dimension_numbers<[1], [0], [0], [1], [0, 0, 1, 1], [], []>} : vector<16x32xbf16>, vector<32x8xbf16>, vector<16x8xf32> -> vector<16x8xf32>
    %c2_75 = arith.constant 2 : index
    %c0_76 = arith.constant 0 : index
    %111 = vector.load %arg8[%c2_75, %c0_76] : memref<8x8xf32, #tpu.memory_space<vmem>>, vector<1x8xf32>
    %112 = vector.broadcast %111 : vector<1x8xf32> to vector<16x8xf32>
    %113 = arith.addf %110, %112 : vector<16x8xf32>
    %c0_77 = arith.constant 0 : index
    %c2_78 = arith.constant 2 : index
    %c0_79 = arith.constant 0 : index
    %c0_80 = arith.constant 0 : index
    %114 = vector.load %arg6[%c0_77, %c2_78, %c0_79, %c0_80] : memref<2x4x32x8xbf16, #tpu.memory_space<vmem>>, vector<1x1x32x8xbf16>
    %115 = vector.shape_cast %114 : vector<1x1x32x8xbf16> to vector<32x8xbf16>
    %cst_81 = arith.constant dense<0.000000e+00> : vector<16x8xf32>
    %116 = tpu.matmul %26, %115, %cst_81 {dimension_numbers = #tpu.dot_dimension_numbers<[1], [0], [0], [1], [0, 0, 1, 1], [], []>} : vector<16x32xbf16>, vector<32x8xbf16>, vector<16x8xf32> -> vector<16x8xf32>
    %c2_82 = arith.constant 2 : index
    %c0_83 = arith.constant 0 : index
    %117 = vector.load %arg9[%c2_82, %c0_83] : memref<8x8xf32, #tpu.memory_space<vmem>>, vector<1x8xf32>
    %118 = vector.broadcast %117 : vector<1x8xf32> to vector<16x8xf32>
    %119 = arith.addf %116, %118 : vector<16x8xf32>
    %c0_84 = arith.constant 0 : index
    %c2_85 = arith.constant 2 : index
    %c0_86 = arith.constant 0 : index
    %c0_87 = arith.constant 0 : index
    %120 = vector.load %arg7[%c0_84, %c2_85, %c0_86, %c0_87] : memref<2x4x32x8xbf16, #tpu.memory_space<vmem>>, vector<1x1x32x8xbf16>
    %121 = vector.shape_cast %120 : vector<1x1x32x8xbf16> to vector<32x8xbf16>
    %cst_88 = arith.constant dense<0.000000e+00> : vector<16x8xf32>
    %122 = tpu.matmul %26, %121, %cst_88 {dimension_numbers = #tpu.dot_dimension_numbers<[1], [0], [0], [1], [0, 0, 1, 1], [], []>} : vector<16x32xbf16>, vector<32x8xbf16>, vector<16x8xf32> -> vector<16x8xf32>
    %c2_89 = arith.constant 2 : index
    %c0_90 = arith.constant 0 : index
    %123 = vector.load %arg10[%c2_89, %c0_90] : memref<8x8xf32, #tpu.memory_space<vmem>>, vector<1x8xf32>
    %124 = vector.broadcast %123 : vector<1x8xf32> to vector<16x8xf32>
    %125 = arith.addf %122, %124 : vector<16x8xf32>
    %126 = arith.truncf %113 : vector<16x8xf32> to vector<16x8xbf16>
    %127 = arith.truncf %119 : vector<16x8xf32> to vector<16x8xbf16>
    %cst_91 = arith.constant dense<0.000000e+00> : vector<16x16xf32>
    %128 = tpu.matmul %126, %127, %cst_91 {dimension_numbers = #tpu.dot_dimension_numbers<[1], [1], [0], [0], [0, 0, 1, 0], [], []>} : vector<16x8xbf16>, vector<16x8xbf16>, vector<16x16xf32> -> vector<16x16xf32>
    %129 = arith.addf %128, %25 : vector<16x16xf32>
    %cst_92 = arith.constant dense<0xFF800000> : vector<16xf32>
    %130 = vector.multi_reduction <maximumf>, %129, %cst_92 [1] : vector<16x16xf32> to vector<16xf32>
    %131 = vector.shape_cast %130 : vector<16xf32> to vector<16x1xf32>
    %132 = vector.broadcast %131 : vector<16x1xf32> to vector<16x16xf32>
    %133 = arith.subf %129, %132 : vector<16x16xf32>
    %134 = math.exp %133 : vector<16x16xf32>
    %cst_93 = arith.constant dense<0.000000e+00> : vector<16xf32>
    %135 = vector.multi_reduction <add>, %134, %cst_93 [1] : vector<16x16xf32> to vector<16xf32>
    %136 = vector.shape_cast %135 : vector<16xf32> to vector<16x1xf32>
    %137 = tpu.reciprocal %136 : vector<16x1xf32> -> vector<16x1xf32>
    %138 = vector.broadcast %137 : vector<16x1xf32> to vector<16x16xf32>
    %139 = arith.mulf %134, %138 : vector<16x16xf32>
    %140 = arith.truncf %139 : vector<16x16xf32> to vector<16x16xbf16>
    %141 = arith.truncf %125 : vector<16x8xf32> to vector<16x8xbf16>
    %cst_94 = arith.constant dense<0.000000e+00> : vector<16x8xf32>
    %142 = tpu.matmul %140, %141, %cst_94 {dimension_numbers = #tpu.dot_dimension_numbers<[1], [0], [0], [1], [0, 0, 1, 1], [], []>} : vector<16x16xbf16>, vector<16x8xbf16>, vector<16x8xf32> -> vector<16x8xf32>
    %143 = arith.truncf %142 : vector<16x8xf32> to vector<16x8xbf16>
    %c0_95 = arith.constant 0 : index
    %c2_96 = arith.constant 2 : index
    %c0_97 = arith.constant 0 : index
    %c0_98 = arith.constant 0 : index
    %144 = vector.load %arg11[%c0_95, %c2_96, %c0_97, %c0_98] : memref<2x4x8x32xbf16, #tpu.memory_space<vmem>>, vector<1x1x8x32xbf16>
    %145 = vector.shape_cast %144 : vector<1x1x8x32xbf16> to vector<8x32xbf16>
    %cst_99 = arith.constant dense<0.000000e+00> : vector<16x32xf32>
    %146 = tpu.matmul %143, %145, %cst_99 {dimension_numbers = #tpu.dot_dimension_numbers<[1], [0], [0], [1], [0, 0, 1, 1], [], []>} : vector<16x8xbf16>, vector<8x32xbf16>, vector<16x32xf32> -> vector<16x32xf32>
    %147 = arith.addf %107, %146 : vector<16x32xf32>
    %c0_100 = arith.constant 0 : index
    %c3 = arith.constant 3 : index
    %c0_101 = arith.constant 0 : index
    %c0_102 = arith.constant 0 : index
    %148 = vector.load %arg5[%c0_100, %c3, %c0_101, %c0_102] : memref<2x4x32x8xbf16, #tpu.memory_space<vmem>>, vector<1x1x32x8xbf16>
    %149 = vector.shape_cast %148 : vector<1x1x32x8xbf16> to vector<32x8xbf16>
    %cst_103 = arith.constant dense<0.000000e+00> : vector<16x8xf32>
    %150 = tpu.matmul %26, %149, %cst_103 {dimension_numbers = #tpu.dot_dimension_numbers<[1], [0], [0], [1], [0, 0, 1, 1], [], []>} : vector<16x32xbf16>, vector<32x8xbf16>, vector<16x8xf32> -> vector<16x8xf32>
    %c3_104 = arith.constant 3 : index
    %c0_105 = arith.constant 0 : index
    %151 = vector.load %arg8[%c3_104, %c0_105] : memref<8x8xf32, #tpu.memory_space<vmem>>, vector<1x8xf32>
    %152 = vector.broadcast %151 : vector<1x8xf32> to vector<16x8xf32>
    %153 = arith.addf %150, %152 : vector<16x8xf32>
    %c0_106 = arith.constant 0 : index
    %c3_107 = arith.constant 3 : index
    %c0_108 = arith.constant 0 : index
    %c0_109 = arith.constant 0 : index
    %154 = vector.load %arg6[%c0_106, %c3_107, %c0_108, %c0_109] : memref<2x4x32x8xbf16, #tpu.memory_space<vmem>>, vector<1x1x32x8xbf16>
    %155 = vector.shape_cast %154 : vector<1x1x32x8xbf16> to vector<32x8xbf16>
    %cst_110 = arith.constant dense<0.000000e+00> : vector<16x8xf32>
    %156 = tpu.matmul %26, %155, %cst_110 {dimension_numbers = #tpu.dot_dimension_numbers<[1], [0], [0], [1], [0, 0, 1, 1], [], []>} : vector<16x32xbf16>, vector<32x8xbf16>, vector<16x8xf32> -> vector<16x8xf32>
    %c3_111 = arith.constant 3 : index
    %c0_112 = arith.constant 0 : index
    %157 = vector.load %arg9[%c3_111, %c0_112] : memref<8x8xf32, #tpu.memory_space<vmem>>, vector<1x8xf32>
    %158 = vector.broadcast %157 : vector<1x8xf32> to vector<16x8xf32>
    %159 = arith.addf %156, %158 : vector<16x8xf32>
    %c0_113 = arith.constant 0 : index
    %c3_114 = arith.constant 3 : index
    %c0_115 = arith.constant 0 : index
    %c0_116 = arith.constant 0 : index
    %160 = vector.load %arg7[%c0_113, %c3_114, %c0_115, %c0_116] : memref<2x4x32x8xbf16, #tpu.memory_space<vmem>>, vector<1x1x32x8xbf16>
    %161 = vector.shape_cast %160 : vector<1x1x32x8xbf16> to vector<32x8xbf16>
    %cst_117 = arith.constant dense<0.000000e+00> : vector<16x8xf32>
    %162 = tpu.matmul %26, %161, %cst_117 {dimension_numbers = #tpu.dot_dimension_numbers<[1], [0], [0], [1], [0, 0, 1, 1], [], []>} : vector<16x32xbf16>, vector<32x8xbf16>, vector<16x8xf32> -> vector<16x8xf32>
    %c3_118 = arith.constant 3 : index
    %c0_119 = arith.constant 0 : index
    %163 = vector.load %arg10[%c3_118, %c0_119] : memref<8x8xf32, #tpu.memory_space<vmem>>, vector<1x8xf32>
    %164 = vector.broadcast %163 : vector<1x8xf32> to vector<16x8xf32>
    %165 = arith.addf %162, %164 : vector<16x8xf32>
    %166 = arith.truncf %153 : vector<16x8xf32> to vector<16x8xbf16>
    %167 = arith.truncf %159 : vector<16x8xf32> to vector<16x8xbf16>
    %cst_120 = arith.constant dense<0.000000e+00> : vector<16x16xf32>
    %168 = tpu.matmul %166, %167, %cst_120 {dimension_numbers = #tpu.dot_dimension_numbers<[1], [1], [0], [0], [0, 0, 1, 0], [], []>} : vector<16x8xbf16>, vector<16x8xbf16>, vector<16x16xf32> -> vector<16x16xf32>
    %169 = arith.addf %168, %25 : vector<16x16xf32>
    %cst_121 = arith.constant dense<0xFF800000> : vector<16xf32>
    %170 = vector.multi_reduction <maximumf>, %169, %cst_121 [1] : vector<16x16xf32> to vector<16xf32>
    %171 = vector.shape_cast %170 : vector<16xf32> to vector<16x1xf32>
    %172 = vector.broadcast %171 : vector<16x1xf32> to vector<16x16xf32>
    %173 = arith.subf %169, %172 : vector<16x16xf32>
    %174 = math.exp %173 : vector<16x16xf32>
    %cst_122 = arith.constant dense<0.000000e+00> : vector<16xf32>
    %175 = vector.multi_reduction <add>, %174, %cst_122 [1] : vector<16x16xf32> to vector<16xf32>
    %176 = vector.shape_cast %175 : vector<16xf32> to vector<16x1xf32>
    %177 = tpu.reciprocal %176 : vector<16x1xf32> -> vector<16x1xf32>
    %178 = vector.broadcast %177 : vector<16x1xf32> to vector<16x16xf32>
    %179 = arith.mulf %174, %178 : vector<16x16xf32>
    %180 = arith.truncf %179 : vector<16x16xf32> to vector<16x16xbf16>
    %181 = arith.truncf %165 : vector<16x8xf32> to vector<16x8xbf16>
    %cst_123 = arith.constant dense<0.000000e+00> : vector<16x8xf32>
    %182 = tpu.matmul %180, %181, %cst_123 {dimension_numbers = #tpu.dot_dimension_numbers<[1], [0], [0], [1], [0, 0, 1, 1], [], []>} : vector<16x16xbf16>, vector<16x8xbf16>, vector<16x8xf32> -> vector<16x8xf32>
    %183 = arith.truncf %182 : vector<16x8xf32> to vector<16x8xbf16>
    %c0_124 = arith.constant 0 : index
    %c3_125 = arith.constant 3 : index
    %c0_126 = arith.constant 0 : index
    %c0_127 = arith.constant 0 : index
    %184 = vector.load %arg11[%c0_124, %c3_125, %c0_126, %c0_127] : memref<2x4x8x32xbf16, #tpu.memory_space<vmem>>, vector<1x1x8x32xbf16>
    %185 = vector.shape_cast %184 : vector<1x1x8x32xbf16> to vector<8x32xbf16>
    %cst_128 = arith.constant dense<0.000000e+00> : vector<16x32xf32>
    %186 = tpu.matmul %183, %185, %cst_128 {dimension_numbers = #tpu.dot_dimension_numbers<[1], [0], [0], [1], [0, 0, 1, 1], [], []>} : vector<16x8xbf16>, vector<8x32xbf16>, vector<16x32xf32> -> vector<16x32xf32>
    %187 = arith.addf %147, %186 : vector<16x32xf32>
    %c0_129 = arith.constant 0 : index
    %c0_130 = arith.constant 0 : index
    %188 = vector.load %arg12[%c0_129, %c0_130] : memref<2x32xf32, #tpu.memory_space<vmem>>, vector<1x32xf32>
    %189 = vector.broadcast %188 : vector<1x32xf32> to vector<16x32xf32>
    %190 = arith.addf %187, %189 : vector<16x32xf32>
    %191 = arith.addf %24, %190 : vector<16x32xf32>
    %c0_131 = arith.constant 0 : index
    %c0_132 = arith.constant 0 : index
    %192 = vector.load %arg13[%c0_131, %c0_132] : memref<2x32xf32, #tpu.memory_space<vmem>>, vector<1x32xf32>
    %c0_133 = arith.constant 0 : index
    %c0_134 = arith.constant 0 : index
    %193 = vector.load %arg14[%c0_133, %c0_134] : memref<2x32xf32, #tpu.memory_space<vmem>>, vector<1x32xf32>
    %cst_135 = arith.constant dense<0.000000e+00> : vector<16xf32>
    %194 = vector.multi_reduction <add>, %191, %cst_135 [1] : vector<16x32xf32> to vector<16xf32>
    %195 = vector.shape_cast %194 : vector<16xf32> to vector<16x1xf32>
    %cst_136 = arith.constant 3.200000e+01 : f32
    %196 = vector.broadcast %cst_136 : f32 to vector<16x1xf32>
    %197 = arith.divf %195, %196 : vector<16x1xf32>
    %198 = vector.broadcast %197 : vector<16x1xf32> to vector<16x32xf32>
    %199 = arith.subf %191, %198 : vector<16x32xf32>
    %200 = arith.mulf %199, %199 : vector<16x32xf32>
    %cst_137 = arith.constant dense<0.000000e+00> : vector<16xf32>
    %201 = vector.multi_reduction <add>, %200, %cst_137 [1] : vector<16x32xf32> to vector<16xf32>
    %202 = vector.shape_cast %201 : vector<16xf32> to vector<16x1xf32>
    %cst_138 = arith.constant 3.200000e+01 : f32
    %203 = vector.broadcast %cst_138 : f32 to vector<16x1xf32>
    %204 = arith.divf %202, %203 : vector<16x1xf32>
    %205 = vector.broadcast %197 : vector<16x1xf32> to vector<16x32xf32>
    %206 = arith.subf %191, %205 : vector<16x32xf32>
    %cst_139 = arith.constant 9.99999974E-6 : f32
    %207 = vector.broadcast %cst_139 : f32 to vector<16x1xf32>
    %208 = arith.addf %204, %207 : vector<16x1xf32>
    %209 = math.rsqrt %208 : vector<16x1xf32>
    %210 = vector.broadcast %209 : vector<16x1xf32> to vector<16x32xf32>
    %211 = arith.mulf %206, %210 : vector<16x32xf32>
    %212 = vector.broadcast %192 : vector<1x32xf32> to vector<16x32xf32>
    %213 = arith.mulf %211, %212 : vector<16x32xf32>
    %214 = vector.broadcast %193 : vector<1x32xf32> to vector<16x32xf32>
    %215 = arith.addf %213, %214 : vector<16x32xf32>
    %216 = arith.truncf %215 : vector<16x32xf32> to vector<16x32xbf16>
    %c0_140 = arith.constant 0 : index
    %c0_141 = arith.constant 0 : index
    %c0_142 = arith.constant 0 : index
    %217 = vector.load %arg15[%c0_140, %c0_141, %c0_142] : memref<2x32x64xbf16, #tpu.memory_space<vmem>>, vector<1x32x64xbf16>
    %218 = vector.shape_cast %217 : vector<1x32x64xbf16> to vector<32x64xbf16>
    %cst_143 = arith.constant dense<0.000000e+00> : vector<16x64xf32>
    %219 = tpu.matmul %216, %218, %cst_143 {dimension_numbers = #tpu.dot_dimension_numbers<[1], [0], [0], [1], [0, 0, 1, 1], [], []>} : vector<16x32xbf16>, vector<32x64xbf16>, vector<16x64xf32> -> vector<16x64xf32>
    %c0_144 = arith.constant 0 : index
    %c0_145 = arith.constant 0 : index
    %220 = vector.load %arg16[%c0_144, %c0_145] : memref<2x64xf32, #tpu.memory_space<vmem>>, vector<1x64xf32>
    %221 = vector.broadcast %220 : vector<1x64xf32> to vector<16x64xf32>
    %222 = arith.addf %219, %221 : vector<16x64xf32>
    %223 = arith.mulf %222, %222 : vector<16x64xf32>
    %224 = arith.mulf %222, %223 : vector<16x64xf32>
    %cst_146 = arith.constant 4.471500e-02 : f32
    %225 = vector.broadcast %cst_146 : f32 to vector<16x64xf32>
    %226 = arith.mulf %225, %224 : vector<16x64xf32>
    %227 = arith.addf %222, %226 : vector<16x64xf32>
    %cst_147 = arith.constant 0.797884583 : f32
    %228 = vector.broadcast %cst_147 : f32 to vector<16x64xf32>
    %229 = arith.mulf %228, %227 : vector<16x64xf32>
    %230 = math.tanh %229 : vector<16x64xf32>
    %cst_148 = arith.constant 1.000000e+00 : f32
    %231 = vector.broadcast %cst_148 : f32 to vector<16x64xf32>
    %232 = arith.addf %231, %230 : vector<16x64xf32>
    %cst_149 = arith.constant 5.000000e-01 : f32
    %233 = vector.broadcast %cst_149 : f32 to vector<16x64xf32>
    %234 = arith.mulf %233, %232 : vector<16x64xf32>
    %235 = arith.mulf %222, %234 : vector<16x64xf32>
    %236 = arith.truncf %235 : vector<16x64xf32> to vector<16x64xbf16>
    %c0_150 = arith.constant 0 : index
    %c0_151 = arith.constant 0 : index
    %c0_152 = arith.constant 0 : index
    %237 = vector.load %arg17[%c0_150, %c0_151, %c0_152] : memref<2x64x32xbf16, #tpu.memory_space<vmem>>, vector<1x64x32xbf16>
    %238 = vector.shape_cast %237 : vector<1x64x32xbf16> to vector<64x32xbf16>
    %cst_153 = arith.constant dense<0.000000e+00> : vector<16x32xf32>
    %239 = tpu.matmul %236, %238, %cst_153 {dimension_numbers = #tpu.dot_dimension_numbers<[1], [0], [0], [1], [0, 0, 1, 1], [], []>} : vector<16x64xbf16>, vector<64x32xbf16>, vector<16x32xf32> -> vector<16x32xf32>
    %c0_154 = arith.constant 0 : index
    %c0_155 = arith.constant 0 : index
    %240 = vector.load %arg18[%c0_154, %c0_155] : memref<2x32xf32, #tpu.memory_space<vmem>>, vector<1x32xf32>
    %241 = vector.broadcast %240 : vector<1x32xf32> to vector<16x32xf32>
    %242 = arith.addf %239, %241 : vector<16x32xf32>
    %243 = arith.addf %215, %242 : vector<16x32xf32>
    %c0_156 = arith.constant 0 : index
    %c0_157 = arith.constant 0 : index
    %244 = vector.load %arg19[%c0_156, %c0_157] : memref<2x32xf32, #tpu.memory_space<vmem>>, vector<1x32xf32>
    %c0_158 = arith.constant 0 : index
    %c0_159 = arith.constant 0 : index
    %245 = vector.load %arg20[%c0_158, %c0_159] : memref<2x32xf32, #tpu.memory_space<vmem>>, vector<1x32xf32>
    %cst_160 = arith.constant dense<0.000000e+00> : vector<16xf32>
    %246 = vector.multi_reduction <add>, %243, %cst_160 [1] : vector<16x32xf32> to vector<16xf32>
    %247 = vector.shape_cast %246 : vector<16xf32> to vector<16x1xf32>
    %cst_161 = arith.constant 3.200000e+01 : f32
    %248 = vector.broadcast %cst_161 : f32 to vector<16x1xf32>
    %249 = arith.divf %247, %248 : vector<16x1xf32>
    %250 = vector.broadcast %249 : vector<16x1xf32> to vector<16x32xf32>
    %251 = arith.subf %243, %250 : vector<16x32xf32>
    %252 = arith.mulf %251, %251 : vector<16x32xf32>
    %cst_162 = arith.constant dense<0.000000e+00> : vector<16xf32>
    %253 = vector.multi_reduction <add>, %252, %cst_162 [1] : vector<16x32xf32> to vector<16xf32>
    %254 = vector.shape_cast %253 : vector<16xf32> to vector<16x1xf32>
    %cst_163 = arith.constant 3.200000e+01 : f32
    %255 = vector.broadcast %cst_163 : f32 to vector<16x1xf32>
    %256 = arith.divf %254, %255 : vector<16x1xf32>
    %257 = vector.broadcast %249 : vector<16x1xf32> to vector<16x32xf32>
    %258 = arith.subf %243, %257 : vector<16x32xf32>
    %cst_164 = arith.constant 9.99999974E-6 : f32
    %259 = vector.broadcast %cst_164 : f32 to vector<16x1xf32>
    %260 = arith.addf %256, %259 : vector<16x1xf32>
    %261 = math.rsqrt %260 : vector<16x1xf32>
    %262 = vector.broadcast %261 : vector<16x1xf32> to vector<16x32xf32>
    %263 = arith.mulf %258, %262 : vector<16x32xf32>
    %264 = vector.broadcast %244 : vector<1x32xf32> to vector<16x32xf32>
    %265 = arith.mulf %263, %264 : vector<16x32xf32>
    %266 = vector.broadcast %245 : vector<1x32xf32> to vector<16x32xf32>
    %267 = arith.addf %265, %266 : vector<16x32xf32>
    %268 = arith.truncf %267 : vector<16x32xf32> to vector<16x32xbf16>
    %cst_165 = arith.constant 0.000000e+00 : f32
    %269 = vector.broadcast %cst_165 : f32 to vector<16x32xf32>
    %c1_166 = arith.constant 1 : index
    %c0_167 = arith.constant 0 : index
    %c0_168 = arith.constant 0 : index
    %c0_169 = arith.constant 0 : index
    %270 = vector.load %arg5[%c1_166, %c0_167, %c0_168, %c0_169] : memref<2x4x32x8xbf16, #tpu.memory_space<vmem>>, vector<1x1x32x8xbf16>
    %271 = vector.shape_cast %270 : vector<1x1x32x8xbf16> to vector<32x8xbf16>
    %cst_170 = arith.constant dense<0.000000e+00> : vector<16x8xf32>
    %272 = tpu.matmul %268, %271, %cst_170 {dimension_numbers = #tpu.dot_dimension_numbers<[1], [0], [0], [1], [0, 0, 1, 1], [], []>} : vector<16x32xbf16>, vector<32x8xbf16>, vector<16x8xf32> -> vector<16x8xf32>
    %c4 = arith.constant 4 : index
    %c0_171 = arith.constant 0 : index
    %273 = vector.load %arg8[%c4, %c0_171] : memref<8x8xf32, #tpu.memory_space<vmem>>, vector<1x8xf32>
    %274 = vector.broadcast %273 : vector<1x8xf32> to vector<16x8xf32>
    %275 = arith.addf %272, %274 : vector<16x8xf32>
    %c1_172 = arith.constant 1 : index
    %c0_173 = arith.constant 0 : index
    %c0_174 = arith.constant 0 : index
    %c0_175 = arith.constant 0 : index
    %276 = vector.load %arg6[%c1_172, %c0_173, %c0_174, %c0_175] : memref<2x4x32x8xbf16, #tpu.memory_space<vmem>>, vector<1x1x32x8xbf16>
    %277 = vector.shape_cast %276 : vector<1x1x32x8xbf16> to vector<32x8xbf16>
    %cst_176 = arith.constant dense<0.000000e+00> : vector<16x8xf32>
    %278 = tpu.matmul %268, %277, %cst_176 {dimension_numbers = #tpu.dot_dimension_numbers<[1], [0], [0], [1], [0, 0, 1, 1], [], []>} : vector<16x32xbf16>, vector<32x8xbf16>, vector<16x8xf32> -> vector<16x8xf32>
    %c4_177 = arith.constant 4 : index
    %c0_178 = arith.constant 0 : index
    %279 = vector.load %arg9[%c4_177, %c0_178] : memref<8x8xf32, #tpu.memory_space<vmem>>, vector<1x8xf32>
    %280 = vector.broadcast %279 : vector<1x8xf32> to vector<16x8xf32>
    %281 = arith.addf %278, %280 : vector<16x8xf32>
    %c1_179 = arith.constant 1 : index
    %c0_180 = arith.constant 0 : index
    %c0_181 = arith.constant 0 : index
    %c0_182 = arith.constant 0 : index
    %282 = vector.load %arg7[%c1_179, %c0_180, %c0_181, %c0_182] : memref<2x4x32x8xbf16, #tpu.memory_space<vmem>>, vector<1x1x32x8xbf16>
    %283 = vector.shape_cast %282 : vector<1x1x32x8xbf16> to vector<32x8xbf16>
    %cst_183 = arith.constant dense<0.000000e+00> : vector<16x8xf32>
    %284 = tpu.matmul %268, %283, %cst_183 {dimension_numbers = #tpu.dot_dimension_numbers<[1], [0], [0], [1], [0, 0, 1, 1], [], []>} : vector<16x32xbf16>, vector<32x8xbf16>, vector<16x8xf32> -> vector<16x8xf32>
    %c4_184 = arith.constant 4 : index
    %c0_185 = arith.constant 0 : index
    %285 = vector.load %arg10[%c4_184, %c0_185] : memref<8x8xf32, #tpu.memory_space<vmem>>, vector<1x8xf32>
    %286 = vector.broadcast %285 : vector<1x8xf32> to vector<16x8xf32>
    %287 = arith.addf %284, %286 : vector<16x8xf32>
    %288 = arith.truncf %275 : vector<16x8xf32> to vector<16x8xbf16>
    %289 = arith.truncf %281 : vector<16x8xf32> to vector<16x8xbf16>
    %cst_186 = arith.constant dense<0.000000e+00> : vector<16x16xf32>
    %290 = tpu.matmul %288, %289, %cst_186 {dimension_numbers = #tpu.dot_dimension_numbers<[1], [1], [0], [0], [0, 0, 1, 0], [], []>} : vector<16x8xbf16>, vector<16x8xbf16>, vector<16x16xf32> -> vector<16x16xf32>
    %291 = arith.addf %290, %25 : vector<16x16xf32>
    %cst_187 = arith.constant dense<0xFF800000> : vector<16xf32>
    %292 = vector.multi_reduction <maximumf>, %291, %cst_187 [1] : vector<16x16xf32> to vector<16xf32>
    %293 = vector.shape_cast %292 : vector<16xf32> to vector<16x1xf32>
    %294 = vector.broadcast %293 : vector<16x1xf32> to vector<16x16xf32>
    %295 = arith.subf %291, %294 : vector<16x16xf32>
    %296 = math.exp %295 : vector<16x16xf32>
    %cst_188 = arith.constant dense<0.000000e+00> : vector<16xf32>
    %297 = vector.multi_reduction <add>, %296, %cst_188 [1] : vector<16x16xf32> to vector<16xf32>
    %298 = vector.shape_cast %297 : vector<16xf32> to vector<16x1xf32>
    %299 = tpu.reciprocal %298 : vector<16x1xf32> -> vector<16x1xf32>
    %300 = vector.broadcast %299 : vector<16x1xf32> to vector<16x16xf32>
    %301 = arith.mulf %296, %300 : vector<16x16xf32>
    %302 = arith.truncf %301 : vector<16x16xf32> to vector<16x16xbf16>
    %303 = arith.truncf %287 : vector<16x8xf32> to vector<16x8xbf16>
    %cst_189 = arith.constant dense<0.000000e+00> : vector<16x8xf32>
    %304 = tpu.matmul %302, %303, %cst_189 {dimension_numbers = #tpu.dot_dimension_numbers<[1], [0], [0], [1], [0, 0, 1, 1], [], []>} : vector<16x16xbf16>, vector<16x8xbf16>, vector<16x8xf32> -> vector<16x8xf32>
    %305 = arith.truncf %304 : vector<16x8xf32> to vector<16x8xbf16>
    %c1_190 = arith.constant 1 : index
    %c0_191 = arith.constant 0 : index
    %c0_192 = arith.constant 0 : index
    %c0_193 = arith.constant 0 : index
    %306 = vector.load %arg11[%c1_190, %c0_191, %c0_192, %c0_193] : memref<2x4x8x32xbf16, #tpu.memory_space<vmem>>, vector<1x1x8x32xbf16>
    %307 = vector.shape_cast %306 : vector<1x1x8x32xbf16> to vector<8x32xbf16>
    %cst_194 = arith.constant dense<0.000000e+00> : vector<16x32xf32>
    %308 = tpu.matmul %305, %307, %cst_194 {dimension_numbers = #tpu.dot_dimension_numbers<[1], [0], [0], [1], [0, 0, 1, 1], [], []>} : vector<16x8xbf16>, vector<8x32xbf16>, vector<16x32xf32> -> vector<16x32xf32>
    %309 = arith.addf %269, %308 : vector<16x32xf32>
    %c1_195 = arith.constant 1 : index
    %c1_196 = arith.constant 1 : index
    %c0_197 = arith.constant 0 : index
    %c0_198 = arith.constant 0 : index
    %310 = vector.load %arg5[%c1_195, %c1_196, %c0_197, %c0_198] : memref<2x4x32x8xbf16, #tpu.memory_space<vmem>>, vector<1x1x32x8xbf16>
    %311 = vector.shape_cast %310 : vector<1x1x32x8xbf16> to vector<32x8xbf16>
    %cst_199 = arith.constant dense<0.000000e+00> : vector<16x8xf32>
    %312 = tpu.matmul %268, %311, %cst_199 {dimension_numbers = #tpu.dot_dimension_numbers<[1], [0], [0], [1], [0, 0, 1, 1], [], []>} : vector<16x32xbf16>, vector<32x8xbf16>, vector<16x8xf32> -> vector<16x8xf32>
    %c5 = arith.constant 5 : index
    %c0_200 = arith.constant 0 : index
    %313 = vector.load %arg8[%c5, %c0_200] : memref<8x8xf32, #tpu.memory_space<vmem>>, vector<1x8xf32>
    %314 = vector.broadcast %313 : vector<1x8xf32> to vector<16x8xf32>
    %315 = arith.addf %312, %314 : vector<16x8xf32>
    %c1_201 = arith.constant 1 : index
    %c1_202 = arith.constant 1 : index
    %c0_203 = arith.constant 0 : index
    %c0_204 = arith.constant 0 : index
    %316 = vector.load %arg6[%c1_201, %c1_202, %c0_203, %c0_204] : memref<2x4x32x8xbf16, #tpu.memory_space<vmem>>, vector<1x1x32x8xbf16>
    %317 = vector.shape_cast %316 : vector<1x1x32x8xbf16> to vector<32x8xbf16>
    %cst_205 = arith.constant dense<0.000000e+00> : vector<16x8xf32>
    %318 = tpu.matmul %268, %317, %cst_205 {dimension_numbers = #tpu.dot_dimension_numbers<[1], [0], [0], [1], [0, 0, 1, 1], [], []>} : vector<16x32xbf16>, vector<32x8xbf16>, vector<16x8xf32> -> vector<16x8xf32>
    %c5_206 = arith.constant 5 : index
    %c0_207 = arith.constant 0 : index
    %319 = vector.load %arg9[%c5_206, %c0_207] : memref<8x8xf32, #tpu.memory_space<vmem>>, vector<1x8xf32>
    %320 = vector.broadcast %319 : vector<1x8xf32> to vector<16x8xf32>
    %321 = arith.addf %318, %320 : vector<16x8xf32>
    %c1_208 = arith.constant 1 : index
    %c1_209 = arith.constant 1 : index
    %c0_210 = arith.constant 0 : index
    %c0_211 = arith.constant 0 : index
    %322 = vector.load %arg7[%c1_208, %c1_209, %c0_210, %c0_211] : memref<2x4x32x8xbf16, #tpu.memory_space<vmem>>, vector<1x1x32x8xbf16>
    %323 = vector.shape_cast %322 : vector<1x1x32x8xbf16> to vector<32x8xbf16>
    %cst_212 = arith.constant dense<0.000000e+00> : vector<16x8xf32>
    %324 = tpu.matmul %268, %323, %cst_212 {dimension_numbers = #tpu.dot_dimension_numbers<[1], [0], [0], [1], [0, 0, 1, 1], [], []>} : vector<16x32xbf16>, vector<32x8xbf16>, vector<16x8xf32> -> vector<16x8xf32>
    %c5_213 = arith.constant 5 : index
    %c0_214 = arith.constant 0 : index
    %325 = vector.load %arg10[%c5_213, %c0_214] : memref<8x8xf32, #tpu.memory_space<vmem>>, vector<1x8xf32>
    %326 = vector.broadcast %325 : vector<1x8xf32> to vector<16x8xf32>
    %327 = arith.addf %324, %326 : vector<16x8xf32>
    %328 = arith.truncf %315 : vector<16x8xf32> to vector<16x8xbf16>
    %329 = arith.truncf %321 : vector<16x8xf32> to vector<16x8xbf16>
    %cst_215 = arith.constant dense<0.000000e+00> : vector<16x16xf32>
    %330 = tpu.matmul %328, %329, %cst_215 {dimension_numbers = #tpu.dot_dimension_numbers<[1], [1], [0], [0], [0, 0, 1, 0], [], []>} : vector<16x8xbf16>, vector<16x8xbf16>, vector<16x16xf32> -> vector<16x16xf32>
    %331 = arith.addf %330, %25 : vector<16x16xf32>
    %cst_216 = arith.constant dense<0xFF800000> : vector<16xf32>
    %332 = vector.multi_reduction <maximumf>, %331, %cst_216 [1] : vector<16x16xf32> to vector<16xf32>
    %333 = vector.shape_cast %332 : vector<16xf32> to vector<16x1xf32>
    %334 = vector.broadcast %333 : vector<16x1xf32> to vector<16x16xf32>
    %335 = arith.subf %331, %334 : vector<16x16xf32>
    %336 = math.exp %335 : vector<16x16xf32>
    %cst_217 = arith.constant dense<0.000000e+00> : vector<16xf32>
    %337 = vector.multi_reduction <add>, %336, %cst_217 [1] : vector<16x16xf32> to vector<16xf32>
    %338 = vector.shape_cast %337 : vector<16xf32> to vector<16x1xf32>
    %339 = tpu.reciprocal %338 : vector<16x1xf32> -> vector<16x1xf32>
    %340 = vector.broadcast %339 : vector<16x1xf32> to vector<16x16xf32>
    %341 = arith.mulf %336, %340 : vector<16x16xf32>
    %342 = arith.truncf %341 : vector<16x16xf32> to vector<16x16xbf16>
    %343 = arith.truncf %327 : vector<16x8xf32> to vector<16x8xbf16>
    %cst_218 = arith.constant dense<0.000000e+00> : vector<16x8xf32>
    %344 = tpu.matmul %342, %343, %cst_218 {dimension_numbers = #tpu.dot_dimension_numbers<[1], [0], [0], [1], [0, 0, 1, 1], [], []>} : vector<16x16xbf16>, vector<16x8xbf16>, vector<16x8xf32> -> vector<16x8xf32>
    %345 = arith.truncf %344 : vector<16x8xf32> to vector<16x8xbf16>
    %c1_219 = arith.constant 1 : index
    %c1_220 = arith.constant 1 : index
    %c0_221 = arith.constant 0 : index
    %c0_222 = arith.constant 0 : index
    %346 = vector.load %arg11[%c1_219, %c1_220, %c0_221, %c0_222] : memref<2x4x8x32xbf16, #tpu.memory_space<vmem>>, vector<1x1x8x32xbf16>
    %347 = vector.shape_cast %346 : vector<1x1x8x32xbf16> to vector<8x32xbf16>
    %cst_223 = arith.constant dense<0.000000e+00> : vector<16x32xf32>
    %348 = tpu.matmul %345, %347, %cst_223 {dimension_numbers = #tpu.dot_dimension_numbers<[1], [0], [0], [1], [0, 0, 1, 1], [], []>} : vector<16x8xbf16>, vector<8x32xbf16>, vector<16x32xf32> -> vector<16x32xf32>
    %349 = arith.addf %309, %348 : vector<16x32xf32>
    %c1_224 = arith.constant 1 : index
    %c2_225 = arith.constant 2 : index
    %c0_226 = arith.constant 0 : index
    %c0_227 = arith.constant 0 : index
    %350 = vector.load %arg5[%c1_224, %c2_225, %c0_226, %c0_227] : memref<2x4x32x8xbf16, #tpu.memory_space<vmem>>, vector<1x1x32x8xbf16>
    %351 = vector.shape_cast %350 : vector<1x1x32x8xbf16> to vector<32x8xbf16>
    %cst_228 = arith.constant dense<0.000000e+00> : vector<16x8xf32>
    %352 = tpu.matmul %268, %351, %cst_228 {dimension_numbers = #tpu.dot_dimension_numbers<[1], [0], [0], [1], [0, 0, 1, 1], [], []>} : vector<16x32xbf16>, vector<32x8xbf16>, vector<16x8xf32> -> vector<16x8xf32>
    %c6 = arith.constant 6 : index
    %c0_229 = arith.constant 0 : index
    %353 = vector.load %arg8[%c6, %c0_229] : memref<8x8xf32, #tpu.memory_space<vmem>>, vector<1x8xf32>
    %354 = vector.broadcast %353 : vector<1x8xf32> to vector<16x8xf32>
    %355 = arith.addf %352, %354 : vector<16x8xf32>
    %c1_230 = arith.constant 1 : index
    %c2_231 = arith.constant 2 : index
    %c0_232 = arith.constant 0 : index
    %c0_233 = arith.constant 0 : index
    %356 = vector.load %arg6[%c1_230, %c2_231, %c0_232, %c0_233] : memref<2x4x32x8xbf16, #tpu.memory_space<vmem>>, vector<1x1x32x8xbf16>
    %357 = vector.shape_cast %356 : vector<1x1x32x8xbf16> to vector<32x8xbf16>
    %cst_234 = arith.constant dense<0.000000e+00> : vector<16x8xf32>
    %358 = tpu.matmul %268, %357, %cst_234 {dimension_numbers = #tpu.dot_dimension_numbers<[1], [0], [0], [1], [0, 0, 1, 1], [], []>} : vector<16x32xbf16>, vector<32x8xbf16>, vector<16x8xf32> -> vector<16x8xf32>
    %c6_235 = arith.constant 6 : index
    %c0_236 = arith.constant 0 : index
    %359 = vector.load %arg9[%c6_235, %c0_236] : memref<8x8xf32, #tpu.memory_space<vmem>>, vector<1x8xf32>
    %360 = vector.broadcast %359 : vector<1x8xf32> to vector<16x8xf32>
    %361 = arith.addf %358, %360 : vector<16x8xf32>
    %c1_237 = arith.constant 1 : index
    %c2_238 = arith.constant 2 : index
    %c0_239 = arith.constant 0 : index
    %c0_240 = arith.constant 0 : index
    %362 = vector.load %arg7[%c1_237, %c2_238, %c0_239, %c0_240] : memref<2x4x32x8xbf16, #tpu.memory_space<vmem>>, vector<1x1x32x8xbf16>
    %363 = vector.shape_cast %362 : vector<1x1x32x8xbf16> to vector<32x8xbf16>
    %cst_241 = arith.constant dense<0.000000e+00> : vector<16x8xf32>
    %364 = tpu.matmul %268, %363, %cst_241 {dimension_numbers = #tpu.dot_dimension_numbers<[1], [0], [0], [1], [0, 0, 1, 1], [], []>} : vector<16x32xbf16>, vector<32x8xbf16>, vector<16x8xf32> -> vector<16x8xf32>
    %c6_242 = arith.constant 6 : index
    %c0_243 = arith.constant 0 : index
    %365 = vector.load %arg10[%c6_242, %c0_243] : memref<8x8xf32, #tpu.memory_space<vmem>>, vector<1x8xf32>
    %366 = vector.broadcast %365 : vector<1x8xf32> to vector<16x8xf32>
    %367 = arith.addf %364, %366 : vector<16x8xf32>
    %368 = arith.truncf %355 : vector<16x8xf32> to vector<16x8xbf16>
    %369 = arith.truncf %361 : vector<16x8xf32> to vector<16x8xbf16>
    %cst_244 = arith.constant dense<0.000000e+00> : vector<16x16xf32>
    %370 = tpu.matmul %368, %369, %cst_244 {dimension_numbers = #tpu.dot_dimension_numbers<[1], [1], [0], [0], [0, 0, 1, 0], [], []>} : vector<16x8xbf16>, vector<16x8xbf16>, vector<16x16xf32> -> vector<16x16xf32>
    %371 = arith.addf %370, %25 : vector<16x16xf32>
    %cst_245 = arith.constant dense<0xFF800000> : vector<16xf32>
    %372 = vector.multi_reduction <maximumf>, %371, %cst_245 [1] : vector<16x16xf32> to vector<16xf32>
    %373 = vector.shape_cast %372 : vector<16xf32> to vector<16x1xf32>
    %374 = vector.broadcast %373 : vector<16x1xf32> to vector<16x16xf32>
    %375 = arith.subf %371, %374 : vector<16x16xf32>
    %376 = math.exp %375 : vector<16x16xf32>
    %cst_246 = arith.constant dense<0.000000e+00> : vector<16xf32>
    %377 = vector.multi_reduction <add>, %376, %cst_246 [1] : vector<16x16xf32> to vector<16xf32>
    %378 = vector.shape_cast %377 : vector<16xf32> to vector<16x1xf32>
    %379 = tpu.reciprocal %378 : vector<16x1xf32> -> vector<16x1xf32>
    %380 = vector.broadcast %379 : vector<16x1xf32> to vector<16x16xf32>
    %381 = arith.mulf %376, %380 : vector<16x16xf32>
    %382 = arith.truncf %381 : vector<16x16xf32> to vector<16x16xbf16>
    %383 = arith.truncf %367 : vector<16x8xf32> to vector<16x8xbf16>
    %cst_247 = arith.constant dense<0.000000e+00> : vector<16x8xf32>
    %384 = tpu.matmul %382, %383, %cst_247 {dimension_numbers = #tpu.dot_dimension_numbers<[1], [0], [0], [1], [0, 0, 1, 1], [], []>} : vector<16x16xbf16>, vector<16x8xbf16>, vector<16x8xf32> -> vector<16x8xf32>
    %385 = arith.truncf %384 : vector<16x8xf32> to vector<16x8xbf16>
    %c1_248 = arith.constant 1 : index
    %c2_249 = arith.constant 2 : index
    %c0_250 = arith.constant 0 : index
    %c0_251 = arith.constant 0 : index
    %386 = vector.load %arg11[%c1_248, %c2_249, %c0_250, %c0_251] : memref<2x4x8x32xbf16, #tpu.memory_space<vmem>>, vector<1x1x8x32xbf16>
    %387 = vector.shape_cast %386 : vector<1x1x8x32xbf16> to vector<8x32xbf16>
    %cst_252 = arith.constant dense<0.000000e+00> : vector<16x32xf32>
    %388 = tpu.matmul %385, %387, %cst_252 {dimension_numbers = #tpu.dot_dimension_numbers<[1], [0], [0], [1], [0, 0, 1, 1], [], []>} : vector<16x8xbf16>, vector<8x32xbf16>, vector<16x32xf32> -> vector<16x32xf32>
    %389 = arith.addf %349, %388 : vector<16x32xf32>
    %c1_253 = arith.constant 1 : index
    %c3_254 = arith.constant 3 : index
    %c0_255 = arith.constant 0 : index
    %c0_256 = arith.constant 0 : index
    %390 = vector.load %arg5[%c1_253, %c3_254, %c0_255, %c0_256] : memref<2x4x32x8xbf16, #tpu.memory_space<vmem>>, vector<1x1x32x8xbf16>
    %391 = vector.shape_cast %390 : vector<1x1x32x8xbf16> to vector<32x8xbf16>
    %cst_257 = arith.constant dense<0.000000e+00> : vector<16x8xf32>
    %392 = tpu.matmul %268, %391, %cst_257 {dimension_numbers = #tpu.dot_dimension_numbers<[1], [0], [0], [1], [0, 0, 1, 1], [], []>} : vector<16x32xbf16>, vector<32x8xbf16>, vector<16x8xf32> -> vector<16x8xf32>
    %c7 = arith.constant 7 : index
    %c0_258 = arith.constant 0 : index
    %393 = vector.load %arg8[%c7, %c0_258] : memref<8x8xf32, #tpu.memory_space<vmem>>, vector<1x8xf32>
    %394 = vector.broadcast %393 : vector<1x8xf32> to vector<16x8xf32>
    %395 = arith.addf %392, %394 : vector<16x8xf32>
    %c1_259 = arith.constant 1 : index
    %c3_260 = arith.constant 3 : index
    %c0_261 = arith.constant 0 : index
    %c0_262 = arith.constant 0 : index
    %396 = vector.load %arg6[%c1_259, %c3_260, %c0_261, %c0_262] : memref<2x4x32x8xbf16, #tpu.memory_space<vmem>>, vector<1x1x32x8xbf16>
    %397 = vector.shape_cast %396 : vector<1x1x32x8xbf16> to vector<32x8xbf16>
    %cst_263 = arith.constant dense<0.000000e+00> : vector<16x8xf32>
    %398 = tpu.matmul %268, %397, %cst_263 {dimension_numbers = #tpu.dot_dimension_numbers<[1], [0], [0], [1], [0, 0, 1, 1], [], []>} : vector<16x32xbf16>, vector<32x8xbf16>, vector<16x8xf32> -> vector<16x8xf32>
    %c7_264 = arith.constant 7 : index
    %c0_265 = arith.constant 0 : index
    %399 = vector.load %arg9[%c7_264, %c0_265] : memref<8x8xf32, #tpu.memory_space<vmem>>, vector<1x8xf32>
    %400 = vector.broadcast %399 : vector<1x8xf32> to vector<16x8xf32>
    %401 = arith.addf %398, %400 : vector<16x8xf32>
    %c1_266 = arith.constant 1 : index
    %c3_267 = arith.constant 3 : index
    %c0_268 = arith.constant 0 : index
    %c0_269 = arith.constant 0 : index
    %402 = vector.load %arg7[%c1_266, %c3_267, %c0_268, %c0_269] : memref<2x4x32x8xbf16, #tpu.memory_space<vmem>>, vector<1x1x32x8xbf16>
    %403 = vector.shape_cast %402 : vector<1x1x32x8xbf16> to vector<32x8xbf16>
    %cst_270 = arith.constant dense<0.000000e+00> : vector<16x8xf32>
    %404 = tpu.matmul %268, %403, %cst_270 {dimension_numbers = #tpu.dot_dimension_numbers<[1], [0], [0], [1], [0, 0, 1, 1], [], []>} : vector<16x32xbf16>, vector<32x8xbf16>, vector<16x8xf32> -> vector<16x8xf32>
    %c7_271 = arith.constant 7 : index
    %c0_272 = arith.constant 0 : index
    %405 = vector.load %arg10[%c7_271, %c0_272] : memref<8x8xf32, #tpu.memory_space<vmem>>, vector<1x8xf32>
    %406 = vector.broadcast %405 : vector<1x8xf32> to vector<16x8xf32>
    %407 = arith.addf %404, %406 : vector<16x8xf32>
    %408 = arith.truncf %395 : vector<16x8xf32> to vector<16x8xbf16>
    %409 = arith.truncf %401 : vector<16x8xf32> to vector<16x8xbf16>
    %cst_273 = arith.constant dense<0.000000e+00> : vector<16x16xf32>
    %410 = tpu.matmul %408, %409, %cst_273 {dimension_numbers = #tpu.dot_dimension_numbers<[1], [1], [0], [0], [0, 0, 1, 0], [], []>} : vector<16x8xbf16>, vector<16x8xbf16>, vector<16x16xf32> -> vector<16x16xf32>
    %411 = arith.addf %410, %25 : vector<16x16xf32>
    %cst_274 = arith.constant dense<0xFF800000> : vector<16xf32>
    %412 = vector.multi_reduction <maximumf>, %411, %cst_274 [1] : vector<16x16xf32> to vector<16xf32>
    %413 = vector.shape_cast %412 : vector<16xf32> to vector<16x1xf32>
    %414 = vector.broadcast %413 : vector<16x1xf32> to vector<16x16xf32>
    %415 = arith.subf %411, %414 : vector<16x16xf32>
    %416 = math.exp %415 : vector<16x16xf32>
    %cst_275 = arith.constant dense<0.000000e+00> : vector<16xf32>
    %417 = vector.multi_reduction <add>, %416, %cst_275 [1] : vector<16x16xf32> to vector<16xf32>
    %418 = vector.shape_cast %417 : vector<16xf32> to vector<16x1xf32>
    %419 = tpu.reciprocal %418 : vector<16x1xf32> -> vector<16x1xf32>
    %420 = vector.broadcast %419 : vector<16x1xf32> to vector<16x16xf32>
    %421 = arith.mulf %416, %420 : vector<16x16xf32>
    %422 = arith.truncf %421 : vector<16x16xf32> to vector<16x16xbf16>
    %423 = arith.truncf %407 : vector<16x8xf32> to vector<16x8xbf16>
    %cst_276 = arith.constant dense<0.000000e+00> : vector<16x8xf32>
    %424 = tpu.matmul %422, %423, %cst_276 {dimension_numbers = #tpu.dot_dimension_numbers<[1], [0], [0], [1], [0, 0, 1, 1], [], []>} : vector<16x16xbf16>, vector<16x8xbf16>, vector<16x8xf32> -> vector<16x8xf32>
    %425 = arith.truncf %424 : vector<16x8xf32> to vector<16x8xbf16>
    %c1_277 = arith.constant 1 : index
    %c3_278 = arith.constant 3 : index
    %c0_279 = arith.constant 0 : index
    %c0_280 = arith.constant 0 : index
    %426 = vector.load %arg11[%c1_277, %c3_278, %c0_279, %c0_280] : memref<2x4x8x32xbf16, #tpu.memory_space<vmem>>, vector<1x1x8x32xbf16>
    %427 = vector.shape_cast %426 : vector<1x1x8x32xbf16> to vector<8x32xbf16>
    %cst_281 = arith.constant dense<0.000000e+00> : vector<16x32xf32>
    %428 = tpu.matmul %425, %427, %cst_281 {dimension_numbers = #tpu.dot_dimension_numbers<[1], [0], [0], [1], [0, 0, 1, 1], [], []>} : vector<16x8xbf16>, vector<8x32xbf16>, vector<16x32xf32> -> vector<16x32xf32>
    %429 = arith.addf %389, %428 : vector<16x32xf32>
    %c1_282 = arith.constant 1 : index
    %c0_283 = arith.constant 0 : index
    %430 = vector.load %arg12[%c1_282, %c0_283] : memref<2x32xf32, #tpu.memory_space<vmem>>, vector<1x32xf32>
    %431 = vector.broadcast %430 : vector<1x32xf32> to vector<16x32xf32>
    %432 = arith.addf %429, %431 : vector<16x32xf32>
    %433 = arith.addf %267, %432 : vector<16x32xf32>
    %c1_284 = arith.constant 1 : index
    %c0_285 = arith.constant 0 : index
    %434 = vector.load %arg13[%c1_284, %c0_285] : memref<2x32xf32, #tpu.memory_space<vmem>>, vector<1x32xf32>
    %c1_286 = arith.constant 1 : index
    %c0_287 = arith.constant 0 : index
    %435 = vector.load %arg14[%c1_286, %c0_287] : memref<2x32xf32, #tpu.memory_space<vmem>>, vector<1x32xf32>
    %cst_288 = arith.constant dense<0.000000e+00> : vector<16xf32>
    %436 = vector.multi_reduction <add>, %433, %cst_288 [1] : vector<16x32xf32> to vector<16xf32>
    %437 = vector.shape_cast %436 : vector<16xf32> to vector<16x1xf32>
    %cst_289 = arith.constant 3.200000e+01 : f32
    %438 = vector.broadcast %cst_289 : f32 to vector<16x1xf32>
    %439 = arith.divf %437, %438 : vector<16x1xf32>
    %440 = vector.broadcast %439 : vector<16x1xf32> to vector<16x32xf32>
    %441 = arith.subf %433, %440 : vector<16x32xf32>
    %442 = arith.mulf %441, %441 : vector<16x32xf32>
    %cst_290 = arith.constant dense<0.000000e+00> : vector<16xf32>
    %443 = vector.multi_reduction <add>, %442, %cst_290 [1] : vector<16x32xf32> to vector<16xf32>
    %444 = vector.shape_cast %443 : vector<16xf32> to vector<16x1xf32>
    %cst_291 = arith.constant 3.200000e+01 : f32
    %445 = vector.broadcast %cst_291 : f32 to vector<16x1xf32>
    %446 = arith.divf %444, %445 : vector<16x1xf32>
    %447 = vector.broadcast %439 : vector<16x1xf32> to vector<16x32xf32>
    %448 = arith.subf %433, %447 : vector<16x32xf32>
    %cst_292 = arith.constant 9.99999974E-6 : f32
    %449 = vector.broadcast %cst_292 : f32 to vector<16x1xf32>
    %450 = arith.addf %446, %449 : vector<16x1xf32>
    %451 = math.rsqrt %450 : vector<16x1xf32>
    %452 = vector.broadcast %451 : vector<16x1xf32> to vector<16x32xf32>
    %453 = arith.mulf %448, %452 : vector<16x32xf32>
    %454 = vector.broadcast %434 : vector<1x32xf32> to vector<16x32xf32>
    %455 = arith.mulf %453, %454 : vector<16x32xf32>
    %456 = vector.broadcast %435 : vector<1x32xf32> to vector<16x32xf32>
    %457 = arith.addf %455, %456 : vector<16x32xf32>
    %458 = arith.truncf %457 : vector<16x32xf32> to vector<16x32xbf16>
    %c1_293 = arith.constant 1 : index
    %c0_294 = arith.constant 0 : index
    %c0_295 = arith.constant 0 : index
    %459 = vector.load %arg15[%c1_293, %c0_294, %c0_295] : memref<2x32x64xbf16, #tpu.memory_space<vmem>>, vector<1x32x64xbf16>
    %460 = vector.shape_cast %459 : vector<1x32x64xbf16> to vector<32x64xbf16>
    %cst_296 = arith.constant dense<0.000000e+00> : vector<16x64xf32>
    %461 = tpu.matmul %458, %460, %cst_296 {dimension_numbers = #tpu.dot_dimension_numbers<[1], [0], [0], [1], [0, 0, 1, 1], [], []>} : vector<16x32xbf16>, vector<32x64xbf16>, vector<16x64xf32> -> vector<16x64xf32>
    %c1_297 = arith.constant 1 : index
    %c0_298 = arith.constant 0 : index
    %462 = vector.load %arg16[%c1_297, %c0_298] : memref<2x64xf32, #tpu.memory_space<vmem>>, vector<1x64xf32>
    %463 = vector.broadcast %462 : vector<1x64xf32> to vector<16x64xf32>
    %464 = arith.addf %461, %463 : vector<16x64xf32>
    %465 = arith.mulf %464, %464 : vector<16x64xf32>
    %466 = arith.mulf %464, %465 : vector<16x64xf32>
    %cst_299 = arith.constant 4.471500e-02 : f32
    %467 = vector.broadcast %cst_299 : f32 to vector<16x64xf32>
    %468 = arith.mulf %467, %466 : vector<16x64xf32>
    %469 = arith.addf %464, %468 : vector<16x64xf32>
    %cst_300 = arith.constant 0.797884583 : f32
    %470 = vector.broadcast %cst_300 : f32 to vector<16x64xf32>
    %471 = arith.mulf %470, %469 : vector<16x64xf32>
    %472 = math.tanh %471 : vector<16x64xf32>
    %cst_301 = arith.constant 1.000000e+00 : f32
    %473 = vector.broadcast %cst_301 : f32 to vector<16x64xf32>
    %474 = arith.addf %473, %472 : vector<16x64xf32>
    %cst_302 = arith.constant 5.000000e-01 : f32
    %475 = vector.broadcast %cst_302 : f32 to vector<16x64xf32>
    %476 = arith.mulf %475, %474 : vector<16x64xf32>
    %477 = arith.mulf %464, %476 : vector<16x64xf32>
    %478 = arith.truncf %477 : vector<16x64xf32> to vector<16x64xbf16>
    %c1_303 = arith.constant 1 : index
    %c0_304 = arith.constant 0 : index
    %c0_305 = arith.constant 0 : index
    %479 = vector.load %arg17[%c1_303, %c0_304, %c0_305] : memref<2x64x32xbf16, #tpu.memory_space<vmem>>, vector<1x64x32xbf16>
    %480 = vector.shape_cast %479 : vector<1x64x32xbf16> to vector<64x32xbf16>
    %cst_306 = arith.constant dense<0.000000e+00> : vector<16x32xf32>
    %481 = tpu.matmul %478, %480, %cst_306 {dimension_numbers = #tpu.dot_dimension_numbers<[1], [0], [0], [1], [0, 0, 1, 1], [], []>} : vector<16x64xbf16>, vector<64x32xbf16>, vector<16x32xf32> -> vector<16x32xf32>
    %c1_307 = arith.constant 1 : index
    %c0_308 = arith.constant 0 : index
    %482 = vector.load %arg18[%c1_307, %c0_308] : memref<2x32xf32, #tpu.memory_space<vmem>>, vector<1x32xf32>
    %483 = vector.broadcast %482 : vector<1x32xf32> to vector<16x32xf32>
    %484 = arith.addf %481, %483 : vector<16x32xf32>
    %485 = arith.addf %457, %484 : vector<16x32xf32>
    %c1_309 = arith.constant 1 : index
    %c0_310 = arith.constant 0 : index
    %486 = vector.load %arg19[%c1_309, %c0_310] : memref<2x32xf32, #tpu.memory_space<vmem>>, vector<1x32xf32>
    %c1_311 = arith.constant 1 : index
    %c0_312 = arith.constant 0 : index
    %487 = vector.load %arg20[%c1_311, %c0_312] : memref<2x32xf32, #tpu.memory_space<vmem>>, vector<1x32xf32>
    %cst_313 = arith.constant dense<0.000000e+00> : vector<16xf32>
    %488 = vector.multi_reduction <add>, %485, %cst_313 [1] : vector<16x32xf32> to vector<16xf32>
    %489 = vector.shape_cast %488 : vector<16xf32> to vector<16x1xf32>
    %cst_314 = arith.constant 3.200000e+01 : f32
    %490 = vector.broadcast %cst_314 : f32 to vector<16x1xf32>
    %491 = arith.divf %489, %490 : vector<16x1xf32>
    %492 = vector.broadcast %491 : vector<16x1xf32> to vector<16x32xf32>
    %493 = arith.subf %485, %492 : vector<16x32xf32>
    %494 = arith.mulf %493, %493 : vector<16x32xf32>
    %cst_315 = arith.constant dense<0.000000e+00> : vector<16xf32>
    %495 = vector.multi_reduction <add>, %494, %cst_315 [1] : vector<16x32xf32> to vector<16xf32>
    %496 = vector.shape_cast %495 : vector<16xf32> to vector<16x1xf32>
    %cst_316 = arith.constant 3.200000e+01 : f32
    %497 = vector.broadcast %cst_316 : f32 to vector<16x1xf32>
    %498 = arith.divf %496, %497 : vector<16x1xf32>
    %499 = vector.broadcast %491 : vector<16x1xf32> to vector<16x32xf32>
    %500 = arith.subf %485, %499 : vector<16x32xf32>
    %cst_317 = arith.constant 9.99999974E-6 : f32
    %501 = vector.broadcast %cst_317 : f32 to vector<16x1xf32>
    %502 = arith.addf %498, %501 : vector<16x1xf32>
    %503 = math.rsqrt %502 : vector<16x1xf32>
    %504 = vector.broadcast %503 : vector<16x1xf32> to vector<16x32xf32>
    %505 = arith.mulf %500, %504 : vector<16x32xf32>
    %506 = vector.broadcast %486 : vector<1x32xf32> to vector<16x32xf32>
    %507 = arith.mulf %505, %506 : vector<16x32xf32>
    %508 = vector.broadcast %487 : vector<1x32xf32> to vector<16x32xf32>
    %509 = arith.addf %507, %508 : vector<16x32xf32>
    %c0_318 = arith.constant 0 : index
    %c0_319 = arith.constant 0 : index
    %510 = vector.load %arg2[%c0_318, %c0_319] : memref<2x16xbf16, #tpu.memory_space<vmem>>, vector<2x16xbf16>
    %511 = arith.truncf %509 : vector<16x32xf32> to vector<16x32xbf16>
    %cst_320 = arith.constant dense<0.000000e+00> : vector<2x32xf32>
    %512 = tpu.matmul %510, %511, %cst_320 {dimension_numbers = #tpu.dot_dimension_numbers<[1], [0], [0], [1], [0, 0, 1, 1], [], []>} : vector<2x16xbf16>, vector<16x32xbf16>, vector<2x32xf32> -> vector<2x32xf32>
    %513 = arith.truncf %512 : vector<2x32xf32> to vector<2x32xbf16>
    %c0_321 = arith.constant 0 : index
    %c0_322 = arith.constant 0 : index
    %514 = vector.load %arg21[%c0_321, %c0_322] : memref<32x32xbf16, #tpu.memory_space<vmem>>, vector<32x32xbf16>
    %cst_323 = arith.constant dense<0.000000e+00> : vector<2x32xf32>
    %515 = tpu.matmul %513, %514, %cst_323 {dimension_numbers = #tpu.dot_dimension_numbers<[1], [0], [0], [1], [0, 0, 1, 1], [], []>} : vector<2x32xbf16>, vector<32x32xbf16>, vector<2x32xf32> -> vector<2x32xf32>
    %c0_324 = arith.constant 0 : index
    %c0_325 = arith.constant 0 : index
    %516 = vector.load %arg22[%c0_324, %c0_325] : memref<1x32xf32, #tpu.memory_space<vmem>>, vector<1x32xf32>
    %517 = vector.broadcast %516 : vector<1x32xf32> to vector<2x32xf32>
    %518 = arith.addf %515, %517 : vector<2x32xf32>
    %cst_326 = arith.constant 0.000000e+00 : f32
    %519 = vector.broadcast %cst_326 : f32 to vector<2x32xf32>
    %520 = arith.cmpf ogt, %518, %519 : vector<2x32xf32>
    %cst_327 = arith.constant 0.00999999977 : f32
    %521 = vector.broadcast %cst_327 : f32 to vector<2x32xf32>
    %522 = arith.mulf %521, %518 : vector<2x32xf32>
    %523 = arith.select %520, %518, %522 : vector<2x32xi1>, vector<2x32xf32>
    %524 = arith.truncf %523 : vector<2x32xf32> to vector<2x32xbf16>
    %c0_328 = arith.constant 0 : index
    %c0_329 = arith.constant 0 : index
    %525 = vector.load %arg23[%c0_328, %c0_329] : memref<32x128xbf16, #tpu.memory_space<vmem>>, vector<32x128xbf16>
    %cst_330 = arith.constant dense<0.000000e+00> : vector<2x128xf32>
    %526 = tpu.matmul %524, %525, %cst_330 {dimension_numbers = #tpu.dot_dimension_numbers<[1], [0], [0], [1], [0, 0, 1, 1], [], []>} : vector<2x32xbf16>, vector<32x128xbf16>, vector<2x128xf32> -> vector<2x128xf32>
    %c0_331 = arith.constant 0 : index
    %c0_332 = arith.constant 0 : index
    %527 = vector.load %arg24[%c0_331, %c0_332] : memref<1x128xf32, #tpu.memory_space<vmem>>, vector<1x128xf32>
    %528 = vector.broadcast %527 : vector<1x128xf32> to vector<2x128xf32>
    %529 = arith.addf %526, %528 : vector<2x128xf32>
    %c0_333 = arith.constant 0 : index
    %c0_334 = arith.constant 0 : index
    %530 = vector.load %arg25[%c0_333, %c0_334] : memref<2x128xf32, #tpu.memory_space<vmem>>, vector<2x128xf32>
    tpu.vector_store %arg25[%c0_333, %c0_334], %529 {strides = array<i32>} : memref<2x128xf32, #tpu.memory_space<vmem>>, vector<2x128xf32>,
    return
  }
}

</mosaic_0001>

<bundles_post_ra>
// kernel: tune_model_forward.1
= control target key start
LH: loop header
LB: loop body
LE: loop exit
PB: predicated region body
PF: predicated region fallthrough
CT: control target
= control target key end

     0   :  { %s5634_s0 = inlined_call_operand.vmem [shape: f32[16,32], index: 0, kind: input, shape index: {}]   ;;  %s5635_s1 = inlined_call_operand.vmem [shape: f32[16,16], index: 1, kind: input, shape index: {}]   ;;  %s5636_s2 = inlined_call_operand.vmem [shape: bf16[2,16], index: 2, kind: input, shape index: {}]   ;;  %s5637_s3 = inlined_call_operand.vmem [shape: f32[1,32], index: 3, kind: input, shape index: {}]   ;;  %s5638_s4 = inlined_call_operand.vmem [shape: f32[1,32], index: 4, kind: input, shape index: {}]   ;;  %s5639_s5 = inlined_call_operand.vmem [shape: bf16[2,4,32,8], index: 5, kind: input, shape index: {}]   ;;  %s5640_s6 = inlined_call_operand.vmem [shape: bf16[2,4,32,8], index: 6, kind: input, shape index: {}]   ;;  %s5641_s7 = inlined_call_operand.vmem [shape: bf16[2,4,32,8], index: 7, kind: input, shape index: {}]   ;;  %s5642_s8 = inlined_call_operand.vmem [shape: f32[8,8], index: 8, kind: input, shape index: {}]   ;;  %s5643_s9 = inlined_call_operand.vmem [shape: f32[8,8], index: 9, kind: input, shape index: {}]   ;;  %s5644_s10 = inlined_call_operand.vmem [shape: f32[8,8], index: 10, kind: input, shape index: {}]   ;;  %s5645_s11 = inlined_call_operand.vmem [shape: bf16[2,4,8,32], index: 11, kind: input, shape index: {}]   ;;  %s5646_s12 = inlined_call_operand.vmem [shape: f32[2,32], index: 12, kind: input, shape index: {}]   ;;  %s5647_s13 = inlined_call_operand.vmem [shape: f32[2,32], index: 13, kind: input, shape index: {}]   ;;  %s5648_s14 = inlined_call_operand.vmem [shape: f32[2,32], index: 14, kind: input, shape index: {}]   ;;  %s5649_s15 = inlined_call_operand.vmem [shape: bf16[2,32,64], index: 15, kind: input, shape index: {}]   ;;  %s5650_s16 = inlined_call_operand.vmem [shape: f32[2,64], index: 16, kind: input, shape index: {}]   ;;  %s5651_s17 = inlined_call_operand.vmem [shape: bf16[2,64,32], index: 17, kind: input, shape index: {}]   ;;  %s5652_s18 = inlined_call_operand.vmem [shape: f32[2,32], index: 18, kind: input, shape index: {}]   ;;  %s5653_s19 = inlined_call_operand.vmem [shape: f32[2,32], index: 19, kind: input, shape index: {}]   ;;  %s5654_s20 = inlined_call_operand.vmem [shape: f32[2,32], index: 20, kind: input, shape index: {}]   ;;  %s5655_s21 = inlined_call_operand.vmem [shape: bf16[32,32], index: 21, kind: input, shape index: {}]   ;;  %s5656_s22 = inlined_call_operand.vmem [shape: f32[1,32], index: 22, kind: input, shape index: {}]   ;;  %s5657_s23 = inlined_call_operand.vmem [shape: bf16[32,128], index: 23, kind: input, shape index: {}]   ;;  %s5658_s24 = inlined_call_operand.vmem [shape: f32[1,128], index: 24, kind: input, shape index: {}]   ;;  %s5659_s25 = inlined_call_operand.hbm [shape: f32[2,128], index: 25, kind: output, shape index: {}]  }
   0x1   :  { %5667 = sst [smem:[#allocation5_spill]] %s5634_s0 }
   0x2   :  { %5668 = sst [smem:[#allocation6_spill]] %s5635_s1 }
   0x3   :  { %5669 = sst [smem:[#allocation7_spill]] %s5636_s2 }
   0x4   :  { %5670 = sst [smem:[#allocation8_spill]] %s5637_s3 }
   0x5   :  { %5671 = sst [smem:[#allocation9_spill]] %s5638_s4 }
   0x6   :  { %5672 = sst [smem:[#allocation10_spill]] %s5639_s5 }
   0x7   :  { %5673 = sst [smem:[#allocation11_spill]] %s5640_s6 }
   0x8   :  { %5674 = sst [smem:[#allocation12_spill]] %s5641_s7 }
   0x9   :  { %5675 = sst [smem:[#allocation13_spill]] %s5642_s8 }
   0xa   :  { %5676 = sst [smem:[#allocation14_spill]] %s5643_s9 }
   0xb   :  { %s5677_s6 = sld [smem:[#allocation5_spill]]  ;;  %vm86_vm0 = vcmask 261120  }
  0x11   :  { %v82_v0 = vld [vmem:[%s5677_s6] sm:$0xff]  ;;  %v83_v1 = vld [vmem:[%s5677_s6 + $0x8] sm:$0xff] }
  0x12   :  { %v87_v2 = vsel %vm86_vm0, %v82_v0, 0.0  ;;  %v90_v3 = vsel %vm86_vm0, %v83_v1, 0.0 }
  0x13   :  { %88 = vadd.xlane.f32.xlu0 %v87_v2 }
  0x17   :  { %91 = vadd.xlane.f32.xlu0 %v90_v3 }
  0x18   :  { %30 = vsyncpa [#allocation3], 0  ;;  %s5678_s1 = sld [smem:[#allocation10_spill]]  ;;  %s5679_s4 = sld [smem:[#allocation11_spill]]  ;;  %v4700_v16 = vmov 0.0   ;;  %vm4701_vm1 = vmmov 0  }
  0x19   :  { %4117 = vmatprep.subr.bf16.mxu0 %v4700_v16  ;;  %4125 = vmatprep.subr.bf16.mxu1 %v4700_v16  ;;  %s5680_s6 = sld [smem:[#allocation8_spill]]  ;;  %s5681_s3 = sld [smem:[#allocation9_spill]]  ;;  %vm324_vm2 = vcmask 64512   ;;  %v3719_v55 = vld [vmem:[%s5644_s10] ss:$0 sm:$0xff]  ;;  %vm372_vm3 = vcmask 130048  }
  0x1a   :  { %4121 = vmatprep.mubr.msk.bf16.mxu0 %vm4701_vm1, %v4700_v16  ;;  %4129 = vmatprep.mubr.msk.bf16.mxu1 %vm4701_vm1, %v4700_v16  ;;  %s5682_s27 = sld [smem:[#allocation12_spill]]  ;;  %s5683_s29 = sld [smem:[#allocation13_spill]]  ;;  %vm755_vm4 = vcmask 1043456   ;;  %vm1734_vm5 = vcmask 523264  }
  0x1b   :  { %s5684_s30 = sld [smem:[#allocation14_spill]] }
  0x1c   :  { %s5685_s26 = sld [smem:[#allocation6_spill]] }
  0x1e   :  { %v4518_v14 = vld [vmem:[%s5678_s1] sm:$0xff]   ;;  %v4520_v17 = vld [vmem:[%s5678_s1 + $0x8] sm:$0xff]   ;;  %v4524_v62 = vld [vmem:[%s5678_s1 + $0x10] sm:$0xff]  }
  0x1f   :  { %v4519_v15 = vld [vmem:[%s5679_s4] sm:$0xff]   ;;  %4118 = vmatpush3.bf16.msra.mxu0 %v4518_v14  ;;  %v4521_v18 = vld [vmem:[%s5679_s4 + $0x8] sm:$0xff]  }
  0x20   :  { %4126 = vmatpush3.bf16.msra.mxu1 %v4519_v15  ;;  %4119 = vmatprep.subr.bf16.mxu0 %v4700_v16  ;;  %v3709_v27 = vld [vmem:[%s5680_s6] ss:$0 sm:$0xff]  ;;  %v4523_v37 = vld [vmem:[%s5682_s27 + $0x8] sm:$0xff]   ;;  %v4527_v2 = vld [vmem:[%s5682_s27 + $0x18] sm:$0xff]  }
  0x21   :  { %4127 = vmatprep.subr.bf16.mxu1 %v4700_v16  ;;  %v3710_v31 = vld [vmem:[%s5681_s3] ss:$0 sm:$0xff] }
  0x22   :  { %v4522_v35 = vld [vmem:[%s5682_s27] sm:$0xff]  }
  0x23   :  { %4120 = vmatpush3.bf16.msra.mxu0 %v4520_v17  ;;  %v3711_v38 = vld [vmem:[%s5683_s29] ss:$0 sm:$0xff] }
  0x24   :  { %4128 = vmatpush3.bf16.msra.mxu1 %v4521_v18  ;;  %4133 = vmatprep.subr.bf16.mxu0 %v4700_v16  ;;  %v3715_v40 = vld [vmem:[%s5684_s30] ss:$0 sm:$0xff] }
  0x25   :  { %4141 = vmatprep.subr.bf16.mxu1 %v4700_v16  ;;  %v4941_v3 = vld [vmem:[%s5685_s26] sm:$0xff] }
  0xa0   :  { %v89_v4 = vpop.xlane.xlu0 %88 }
  0xa1   :  { %v94_v5 = vmul.f32 0.03125, %v89_v4 }
  0xa3   :  { %v96_v6 = vsub.f32 %v82_v0, %v94_v5  ;;  %v4525_v0 = vld [vmem:[%s5678_s1 + $0x18] sm:$0xff]   ;;  %v4946_v5 = vld [vmem:[%s5685_s26 + $0x8] sm:$0xff] }
  0xa4   :  { %v92_v7 = vpop.xlane.xlu0 %91 }
  0xa5   :  { %v95_v8 = vmul.f32 0.03125, %v92_v7  ;;  %v98_v9 = vmul.f32 %v96_v6, %v96_v6 }
  0xa7   :  { %v97_v10 = vsub.f32 %v83_v1, %v95_v8  ;;  %v100_v11 = vsel %vm86_vm0, %v98_v9, 0.0  ;;  %v4526_v1 = vld [vmem:[%s5682_s27 + $0x10] sm:$0xff]  }
  0xa8   :  { %101 = vadd.xlane.f32.xlu1 %v100_v11 }
  0xa9   :  { %v99_v12 = vmul.f32 %v97_v10, %v97_v10 }
  0xab   :  { %v103_v13 = vsel %vm86_vm0, %v99_v12, 0.0 }
  0xac   :  { %104 = vadd.xlane.f32.xlu1 %v103_v13  ;;  %v3729_v13 = vld [vmem:[%s5683_s29 + $0x1] ss:$0 sm:$0xff] }
 0x135   :  { %v102_v19 = vpop.xlane.xlu1 %101 }
 0x136   :  { %v106_v20 = vmul.f32 0.03125, %v102_v19 }
 0x138   :  { %v108_v21 = vadd.f32 1e-05, %v106_v20 }
 0x139   :  { %v105_v22 = vpop.xlane.xlu1 %104 }
 0x13a   :  { %4582 = vrsqrt.f32 %v108_v21  ;;  %v107_v23 = vmul.f32 0.03125, %v105_v22  ;;  %v3745_v22 = vld [vmem:[%s5644_s10 + $0x1] ss:$0 sm:$0xff] }
 0x13c   :  { %v109_v24 = vadd.f32 1e-05, %v107_v23 }
 0x13e   :  { %4584 = vrsqrt.f32 %v109_v24 }
 0x144   :  { %v4583_v25 = vpop.eup %4582 }
 0x145   :  { %v112_v26 = vmul.f32 %v4583_v25, %v96_v6 }
 0x147   :  { %v120_v29 = vmul.f32 %v3709_v27, %v112_v26 }
 0x148   :  { %v4585_v28 = vpop.eup %4584 }
 0x149   :  { %v113_v30 = vmul.f32 %v4585_v28, %v97_v10  ;;  %v4871_v33 = vadd.f32 %v3710_v31, %v120_v29 }
 0x14b   :  { %v121_v32 = vmul.f32 %v3709_v27, %v113_v30 }
 0x14d   :  { %v4873_v34 = vadd.f32 %v3710_v31, %v121_v32 }
 0x14f   :  { %v4880_v36 = vpack.c.bf16 %v4873_v34, %v4871_v33 }
 0x151   :  { %4122 = vmatmul.mubr.msk.bf16.vlgmr.msra.gmra.mrb[0].mxu0 %vm86_vm0, %v4880_v36  ;;  %4130 = vmatmul.mubr.msk.bf16.vlgmr.msra.gmra.mrb[0].mxu1 %vm86_vm0, %v4880_v36 }
 0x152   :  { %4134 = vmatpush3.bf16.msra.mxu0 %v4522_v35  ;;  %4137 = vmatprep.mubr.msk.bf16.mxu0 %vm4701_vm1, %v4700_v16 }
 0x153   :  { %4135 = vmatprep.subr.bf16.mxu0 %v4700_v16  ;;  %4143 = vmatprep.mubr.msk.bf16.mxu1 %vm4701_vm1, %v4700_v16 }
 0x156   :  { %4136 = vmatpush3.bf16.msra.mxu0 %v4523_v37 }
 0x157   :  { %4147 = vmatprep.subr.bf16.mxu0 %v4700_v16 }
 0x159   :  { %4138 = vmatmul.mubr.msk.bf16.vlgmr.msra.gmra.mrb[4].mxu0 %vm86_vm0, %v4880_v36 }
 0x15a   :  { %4149 = vmatprep.mubr.msk.bf16.mxu0 %vm4701_vm1, %v4700_v16 }
 0x224   :  { %v191_v39 = vpop.f32.mrb[0].mxu0  ;;  %v253_v41 = vpop.f32.mrb[0].mxu1 }
 0x225   :  { %v4123_v42 = vpop.f32.mrb[1].mxu0  ;;  %v4131_v43 = vpop.f32.mrb[1].mxu1  ;;  %v192_v46 = vadd.f32 %v3711_v38, %v191_v39  ;;  %v254_v47 = vadd.f32 %v3715_v40, %v253_v41 }
 0x226   :  { %v194_v44 = vpop.f32.mrb[2].mxu0  ;;  %v256_v45 = vpop.f32.mrb[2].mxu1 }
 0x227   :  { %v195_v48 = vadd.f32 %v3711_v38, %v194_v44  ;;  %v257_v49 = vadd.f32 %v3715_v40, %v256_v45  ;;  %v4124_v50 = vpop.f32.mrb[3].mxu0  ;;  %v4132_v51 = vpop.f32.mrb[3].mxu1 }
 0x228   :  { %v4529_v51 = vld [vmem:[%s5679_s4 + $0x18] sm:$0xff]  }
 0x229   :  { %v322_v52 = vpack.c.bf16 %v195_v48, %v192_v46  ;;  %v323_v53 = vpack.c.bf16 %v257_v49, %v254_v47  ;;  %v4528_v49 = vld [vmem:[%s5679_s4 + $0x10] sm:$0xff]  }
 0x22b   :  { %v329_v54 = vsel %vm324_vm2, %v323_v53, 0 }
 0x22c   :  { %v315_v56 = vpop.f32.mrb[4].mxu0  ;;  %4142 = vmatpush3.bf16.xpose.msra.mxu1 %v329_v54 }
 0x22d   :  { %v4139_v57 = vpop.f32.mrb[5].mxu0  ;;  %4153 = vmatprep.subr.bf16.mxu1 %v4700_v16  ;;  %v316_v59 = vadd.f32 %v3719_v55, %v315_v56 }
 0x22e   :  { %v318_v58 = vpop.f32.mrb[6].mxu0  ;;  %v3737_v57 = vld [vmem:[%s5684_s30 + $0x1] ss:$0 sm:$0xff] }
 0x22f   :  { %v319_v60 = vadd.f32 %v3719_v55, %v318_v58  ;;  %v4140_v61 = vpop.f32.mrb[7].mxu0 }
 0x231   :  { %v396_v63 = vpack.c.bf16 %v319_v60, %v316_v59 }
 0x233   :  { %4144 = vmatmul.mubr.msk.bf16.vlgmr.msra.gmra.mrb[4].mxu1 %vm324_vm2, %v322_v52  ;;  %4148 = vmatpush3.bf16.msra.mxu0 %v396_v63 }
 0x234   :  { %4154 = vmatpush3.bf16.msra.mxu1 %v4524_v62  ;;  %4157 = vmatprep.mubr.msk.bf16.mxu1 %vm4701_vm1, %v4700_v16 }
 0x235   :  { %4155 = vmatprep.subr.bf16.mxu1 %v4700_v16  ;;  %4161 = vmatprep.subr.bf16.mxu0 %v4700_v16 }
 0x238   :  { %4156 = vmatpush3.bf16.msra.mxu1 %v4525_v0 }
 0x239   :  { %4169 = vmatprep.subr.bf16.mxu1 %v4700_v16 }
 0x23b   :  { %4158 = vmatmul.mubr.msk.bf16.vlgmr.msra.gmra.mrb[8].mxu1 %vm86_vm0, %v4880_v36 }
 0x23c   :  { %4170 = vmatpush3.bf16.msra.mxu1 %v4526_v1  ;;  %4173 = vmatprep.mubr.msk.bf16.mxu1 %vm4701_vm1, %v4700_v16 }
 0x23d   :  { %4171 = vmatprep.subr.bf16.mxu1 %v4700_v16 }
 0x240   :  { %4172 = vmatpush3.bf16.msra.mxu1 %v4527_v2 }
 0x241   :  { %4183 = vmatprep.subr.bf16.mxu1 %v4700_v16 }
 0x243   :  { %4174 = vmatmul.mubr.msk.bf16.vlgmr.msra.gmra.mrb[12].mxu1 %vm86_vm0, %v4880_v36 }
 0x244   :  { %4185 = vmatprep.mubr.msk.bf16.mxu1 %vm4701_vm1, %v4700_v16 }
 0x306   :  { %v365_v4 = vpop.f32.mrb[4].mxu1 }
 0x307   :  { %v366_v6 = vadd.f32 %v365_v4, %v4941_v3  ;;  %v4145_v7 = vpop.f32.mrb[5].mxu1 }
 0x308   :  { %v368_v8 = vpop.f32.mrb[6].mxu1 }
 0x309   :  { %v369_v9 = vadd.f32 %v368_v8, %v4946_v5  ;;  %v4146_v10 = vpop.f32.mrb[7].mxu1  ;;  %v373_v11 = vsel %vm372_vm3, %v366_v6, -inf }
 0x30a   :  { %374 = vmax.xlane.f32.xlu0 %v373_v11 }
 0x30b   :  { %v376_v12 = vsel %vm372_vm3, %v369_v9, -inf }
 0x30c   :  { %377 = vmax.xlane.f32.xlu1 %v376_v12 }
 0x30e   :  { %v499_v14 = vpop.f32.mrb[8].mxu1 }
 0x30f   :  { %v4159_v15 = vpop.f32.mrb[9].mxu1  ;;  %v4955_v18 = vadd.f32 %v3729_v13, %v499_v14 }
 0x310   :  { %v502_v17 = vpop.f32.mrb[10].mxu1 }
 0x311   :  { %v4957_v19 = vadd.f32 %v3729_v13, %v502_v17  ;;  %v4160_v20 = vpop.f32.mrb[11].mxu1 }
 0x313   :  { %v632_v21 = vpack.c.bf16 %v4957_v19, %v4955_v18 }
 0x316   :  { %v625_v23 = vpop.f32.mrb[12].mxu1 }
 0x317   :  { %v4175_v24 = vpop.f32.mrb[13].mxu1  ;;  %v626_v26 = vadd.f32 %v3745_v22, %v625_v23 }
 0x318   :  { %v628_v25 = vpop.f32.mrb[14].mxu1 }
 0x319   :  { %v629_v27 = vadd.f32 %v3745_v22, %v628_v25  ;;  %v4176_v28 = vpop.f32.mrb[15].mxu1 }
 0x31b   :  { %v704_v29 = vpack.c.bf16 %v629_v27, %v626_v26  ;;  %v442_v27 = vld [vmem:[%s5645_s11] sm:$0xf] }
 0x31d   :  { %4184 = vmatpush3.bf16.msra.mxu1 %v704_v29 }
 0x31e   :  { %4195 = vmatprep.subr.bf16.mxu1 %v4700_v16 }
 0x397   :  { %v375_v30 = vpop.xlane.xlu0 %374 }
 0x398   :  { %v379_v31 = vsub.f32 %v366_v6, %v375_v30 }
 0x399   :  { %v378_v32 = vpop.xlane.xlu1 %377 }
 0x39a   :  { %v381_v35 = vmul.f32 1.442695, %v379_v31  ;;  %v380_v37 = vsub.f32 %v369_v9, %v378_v32  ;;  %v804_v31 = vsel %vm755_vm4, %v442_v27, 0  ;;  %v4530_v32 = vld [vmem:[%s5679_s4 + $0x20] sm:$0xff]  }
 0x39c   :  { %4586 = vpow2.f32 %v381_v35  ;;  %v383_v38 = vmul.f32 1.442695, %v380_v37  ;;  %v4531_v35 = vld [vmem:[%s5679_s4 + $0x28] sm:$0xff]   ;;  %v3751_v37 = vld [vmem:[%s5645_s11 + $0x4] sm:$0xf] }
 0x39e   :  { %4588 = vpow2.f32 %v383_v38  ;;  %v757_v38 = vsel %vm755_vm4, %v3751_v37, 0 }
 0x3a6   :  { %v4587_v39 = vpop.eup %4586 }
 0x3a7   :  { %v385_v40 = vsel %vm372_vm3, %v4587_v39, 0.0 }
 0x3a8   :  { %v4589_v41 = vpop.eup %4588  ;;  %386 = vadd.xlane.f32.xlu0 %v385_v40 }
 0x3a9   :  { %v388_v42 = vsel %vm372_vm3, %v4589_v41, 0.0 }
 0x3aa   :  { %389 = vadd.xlane.f32.xlu1 %v388_v42  ;;  %v4532_v42 = vld [vmem:[%s5678_s1 + $0x20] sm:$0xff]  }
 0x435   :  { %v387_v43 = vpop.xlane.xlu0 %386 }
 0x436   :  { %4590 = vrcp.f32 %v387_v43 }
 0x437   :  { %v390_v44 = vpop.xlane.xlu1 %389 }
 0x438   :  { %4592 = vrcp.f32 %v390_v44 }
 0x440   :  { %v4591_v45 = vpop.eup %4590 }
 0x441   :  { %v393_v47 = vmul.f32 %v4591_v45, %v4587_v39  ;;  %v4533_v45 = vld [vmem:[%s5678_s1 + $0x28] sm:$0xff]  }
 0x442   :  { %v4593_v46 = vpop.eup %4592 }
 0x443   :  { %v394_v48 = vmul.f32 %v4593_v46, %v4589_v41 }
 0x445   :  { %v395_v50 = vpack.c.bf16 %v394_v48, %v393_v47 }
 0x447   :  { %4150 = vmatmul.mubr.msk.bf16.vlgmr.msra.gmra.mrb[8].mxu0 %vm372_vm3, %v395_v50 }
 0x448   :  { %4162 = vmatpush3.bf16.msra.mxu0 %v4528_v49  ;;  %4165 = vmatprep.mubr.msk.bf16.mxu0 %vm4701_vm1, %v4700_v16  ;;  %v4534_v49 = vld [vmem:[%s5682_s27 + $0x20] sm:$0xff]  }
 0x449   :  { %4163 = vmatprep.subr.bf16.mxu0 %v4700_v16 }
 0x44c   :  { %4164 = vmatpush3.bf16.msra.mxu0 %v4529_v51  ;;  %v4535_v51 = vld [vmem:[%s5682_s27 + $0x28] sm:$0xff]  }
 0x44d   :  { %4177 = vmatprep.subr.bf16.mxu0 %v4700_v16 }
 0x44f   :  { %4166 = vmatmul.mubr.msk.bf16.vlgmr.msra.gmra.mrb[12].mxu0 %vm86_vm0, %v4880_v36 }
 0x450   :  { %4179 = vmatprep.mubr.msk.bf16.mxu0 %vm4701_vm1, %v4700_v16 }
 0x51a   :  { %v434_v52 = vpop.f32.mrb[8].mxu0 }
 0x51b   :  { %v4151_v53 = vpop.f32.mrb[9].mxu0 }
 0x51c   :  { %v437_v54 = vpop.f32.mrb[10].mxu0 }
 0x51d   :  { %v441_v55 = vpack.c.bf16 %v437_v54, %v434_v52  ;;  %v4152_v56 = vpop.f32.mrb[11].mxu0  ;;  %v3766_v52 = vld [vmem:[%s5684_s30 + $0x2] ss:$0 sm:$0xff] }
 0x522   :  { %v562_v58 = vpop.f32.mrb[12].mxu0 }
 0x523   :  { %v4167_v59 = vpop.f32.mrb[13].mxu0  ;;  %v563_v61 = vadd.f32 %v3737_v57, %v562_v58 }
 0x524   :  { %v565_v60 = vpop.f32.mrb[14].mxu0 }
 0x525   :  { %v566_v62 = vadd.f32 %v3737_v57, %v565_v60  ;;  %v4168_v63 = vpop.f32.mrb[15].mxu0 }
 0x527   :  { %v633_v0 = vpack.c.bf16 %v566_v62, %v563_v61 }
 0x529   :  { %v638_v1 = vsel %vm324_vm2, %v633_v0, 0 }
 0x52a   :  { %4178 = vmatpush3.bf16.xpose.msra.mxu0 %v638_v1 }
 0x52b   :  { %4189 = vmatprep.subr.bf16.mxu0 %v4700_v16 }
 0x531   :  { %4180 = vmatmul.mubr.msk.bf16.vlgmr.msra.gmra.mrb[16].mxu0 %vm324_vm2, %v632_v21 }
 0x532   :  { %4191 = vmatprep.mubr.msk.bf16.mxu0 %vm4701_vm1, %v4700_v16  ;;  %4190 = vmatpush3.bf16.msra.mxu0 %v757_v38 }
 0x533   :  { %4201 = vmatprep.subr.bf16.mxu0 %v4700_v16 }
 0x604   :  { %v674_v2 = vpop.f32.mrb[16].mxu0 }
 0x605   :  { %v675_v4 = vadd.f32 %v674_v2, %v4941_v3  ;;  %v4181_v6 = vpop.f32.mrb[17].mxu0 }
 0x606   :  { %v677_v7 = vpop.f32.mrb[18].mxu0 }
 0x607   :  { %v678_v8 = vadd.f32 %v677_v7, %v4946_v5  ;;  %v4182_v9 = vpop.f32.mrb[19].mxu0  ;;  %v681_v10 = vsel %vm372_vm3, %v675_v4, -inf }
 0x608   :  { %682 = vmax.xlane.f32.xlu0 %v681_v10 }
 0x609   :  { %v684_v11 = vsel %vm372_vm3, %v678_v8, -inf }
 0x60a   :  { %685 = vmax.xlane.f32.xlu1 %v684_v11 }
 0x695   :  { %v683_v12 = vpop.xlane.xlu0 %682 }
 0x696   :  { %v687_v13 = vsub.f32 %v675_v4, %v683_v12  ;;  %v3758_v4 = vld [vmem:[%s5683_s29 + $0x2] ss:$0 sm:$0xff] }
 0x697   :  { %v686_v14 = vpop.xlane.xlu1 %685 }
 0x698   :  { %v689_v15 = vmul.f32 1.442695, %v687_v13  ;;  %v688_v17 = vsub.f32 %v678_v8, %v686_v14  ;;  %v3774_v13 = vld [vmem:[%s5644_s10 + $0x2] ss:$0 sm:$0xff] }
 0x69a   :  { %4594 = vpow2.f32 %v689_v15  ;;  %v691_v18 = vmul.f32 1.442695, %v688_v17 }
 0x69c   :  { %4596 = vpow2.f32 %v691_v18 }
 0x6a4   :  { %v4595_v19 = vpop.eup %4594 }
 0x6a5   :  { %v693_v20 = vsel %vm372_vm3, %v4595_v19, 0.0 }
 0x6a6   :  { %v4597_v21 = vpop.eup %4596  ;;  %694 = vadd.xlane.f32.xlu0 %v693_v20 }
 0x6a7   :  { %v696_v22 = vsel %vm372_vm3, %v4597_v21, 0.0 }
 0x6a8   :  { %697 = vadd.xlane.f32.xlu1 %v696_v22 }
 0x733   :  { %v695_v23 = vpop.xlane.xlu0 %694 }
 0x734   :  { %4598 = vrcp.f32 %v695_v23 }
 0x735   :  { %v698_v24 = vpop.xlane.xlu1 %697 }
 0x736   :  { %4600 = vrcp.f32 %v698_v24 }
 0x73e   :  { %v4599_v25 = vpop.eup %4598 }
 0x73f   :  { %v701_v28 = vmul.f32 %v4599_v25, %v4595_v19 }
 0x740   :  { %v4601_v26 = vpop.eup %4600 }
 0x741   :  { %v702_v29 = vmul.f32 %v4601_v26, %v4597_v21 }
 0x743   :  { %v703_v30 = vpack.c.bf16 %v702_v29, %v701_v28 }
 0x745   :  { %4186 = vmatmul.mubr.msk.bf16.vlgmr.msra.gmra.mrb[16].mxu1 %vm372_vm3, %v703_v30 }
 0x746   :  { %4196 = vmatpush3.bf16.msra.mxu1 %v804_v31  ;;  %4197 = vmatprep.mubr.msk.bf16.mxu1 %vm4701_vm1, %v4700_v16 }
 0x747   :  { %4209 = vmatprep.subr.bf16.mxu1 %v4700_v16 }
 0x74d   :  { %4198 = vmatmul.mubr.msk.bf16.vlgmr.msra.gmra.mrb[20].mxu1 %vm324_vm2, %v441_v55 }
 0x74e   :  { %4210 = vmatpush3.bf16.msra.mxu1 %v4530_v32  ;;  %4213 = vmatprep.mubr.msk.bf16.mxu1 %vm4701_vm1, %v4700_v16 }
 0x74f   :  { %4211 = vmatprep.subr.bf16.mxu1 %v4700_v16 }
 0x752   :  { %4212 = vmatpush3.bf16.msra.mxu1 %v4531_v35 }
 0x753   :  { %4225 = vmatprep.subr.bf16.mxu1 %v4700_v16 }
 0x755   :  { %4214 = vmatmul.mubr.msk.bf16.vlgmr.msra.gmra.mrb[24].mxu1 %vm86_vm0, %v4880_v36 }
 0x756   :  { %4227 = vmatprep.mubr.msk.bf16.mxu1 %vm4701_vm1, %v4700_v16 }
 0x818   :  { %v742_v39 = vpop.f32.mrb[16].mxu1 }
 0x819   :  { %v4187_v40 = vpop.f32.mrb[17].mxu1 }
 0x81a   :  { %v745_v41 = vpop.f32.mrb[18].mxu1 }
 0x81b   :  { %v749_v43 = vpack.c.bf16 %v745_v41, %v742_v39  ;;  %v4188_v44 = vpop.f32.mrb[19].mxu1 }
 0x81d   :  { %4192 = vmatmul.mubr.msk.bf16.vlgmr.msra.gmra.mrb[20].mxu0 %vm324_vm2, %v749_v43 }
 0x81e   :  { %4202 = vmatpush3.bf16.msra.mxu0 %v4532_v42  ;;  %4205 = vmatprep.mubr.msk.bf16.mxu0 %vm4701_vm1, %v4700_v16 }
 0x81f   :  { %4203 = vmatprep.subr.bf16.mxu0 %v4700_v16 }
 0x820   :  { %v840_v46 = vpop.f32.mrb[20].mxu1 }
 0x821   :  { %v4199_v47 = vpop.f32.mrb[21].mxu1 }
 0x822   :  { %v843_v48 = vpop.f32.mrb[22].mxu1  ;;  %4204 = vmatpush3.bf16.msra.mxu0 %v4533_v45 }
 0x823   :  { %v4200_v50 = vpop.f32.mrb[23].mxu1  ;;  %4217 = vmatprep.subr.bf16.mxu0 %v4700_v16 }
 0x825   :  { %4206 = vmatmul.mubr.msk.bf16.vlgmr.msra.gmra.mrb[24].mxu0 %vm86_vm0, %v4880_v36 }
 0x826   :  { %4218 = vmatpush3.bf16.msra.mxu0 %v4534_v49  ;;  %4221 = vmatprep.mubr.msk.bf16.mxu0 %vm4701_vm1, %v4700_v16  ;;  %v4536_v49 = vld [vmem:[%s5678_s1 + $0x30] sm:$0xff]  }
 0x827   :  { %4219 = vmatprep.subr.bf16.mxu0 %v4700_v16 }
 0x828   :  { %v966_v53 = vpop.f32.mrb[24].mxu1 }
 0x829   :  { %v4215_v54 = vpop.f32.mrb[25].mxu1  ;;  %v967_v56 = vadd.f32 %v3766_v52, %v966_v53  ;;  %v4539_v53 = vld [vmem:[%s5682_s27 + $0x38] sm:$0xff]  }
 0x82a   :  { %v969_v55 = vpop.f32.mrb[26].mxu1  ;;  %4220 = vmatpush3.bf16.msra.mxu0 %v4535_v51  ;;  %v4537_v51 = vld [vmem:[%s5678_s1 + $0x38] sm:$0xff]   ;;  %v3780_v54 = vld [vmem:[%s5645_s11 + $0x8] sm:$0xf] }
 0x82b   :  { %v970_v57 = vadd.f32 %v3766_v52, %v969_v55  ;;  %v4216_v58 = vpop.f32.mrb[27].mxu1  ;;  %4231 = vmatprep.subr.bf16.mxu0 %v4700_v16  ;;  %v4538_v52 = vld [vmem:[%s5682_s27 + $0x30] sm:$0xff]   ;;  %v1160_v55 = vsel %vm755_vm4, %v3780_v54, 0 }
 0x82d   :  { %v1037_v59 = vpack.c.bf16 %v970_v57, %v967_v56  ;;  %4222 = vmatmul.mubr.msk.bf16.vlgmr.msra.gmra.mrb[28].mxu0 %vm86_vm0, %v4880_v36 }
 0x82e   :  { %4233 = vmatprep.mubr.msk.bf16.mxu0 %vm4701_vm1, %v4700_v16 }
 0x82f   :  { %v1042_v60 = vsel %vm324_vm2, %v1037_v59, 0  ;;  %v4540_v59 = vld [vmem:[%s5679_s4 + $0x30] sm:$0xff]  }
 0x830   :  { %4226 = vmatpush3.bf16.xpose.msra.mxu1 %v1042_v60 }
 0x831   :  { %4237 = vmatprep.subr.bf16.mxu1 %v4700_v16 }
 0x8f0   :  { %v793_v61 = vpop.f32.mrb[20].mxu0 }
 0x8f1   :  { %v5056_v62 = vadd.f32 %v840_v46, %v793_v61  ;;  %v4193_v63 = vpop.f32.mrb[21].mxu0 }
 0x8f2   :  { %v796_v0 = vpop.f32.mrb[22].mxu0  ;;  %v4541_v63 = vld [vmem:[%s5679_s4 + $0x38] sm:$0xff]  }
 0x8f3   :  { %v5058_v1 = vadd.f32 %v843_v48, %v796_v0  ;;  %v4194_v2 = vpop.f32.mrb[23].mxu0  ;;  %v3786_v0 = vld [vmem:[%s5683_s29 + $0x3] ss:$0 sm:$0xff] }
 0x8f8   :  { %v903_v6 = vpop.f32.mrb[24].mxu0 }
 0x8f9   :  { %v4207_v7 = vpop.f32.mrb[25].mxu0  ;;  %v904_v9 = vadd.f32 %v3758_v4, %v903_v6 }
 0x8fa   :  { %v906_v8 = vpop.f32.mrb[26].mxu0 }
 0x8fb   :  { %v907_v10 = vadd.f32 %v3758_v4, %v906_v8  ;;  %v4208_v11 = vpop.f32.mrb[27].mxu0 }
 0x8fc   :  { %v3802_v11 = vld [vmem:[%s5644_s10 + $0x3] ss:$0 sm:$0xff] }
 0x8fd   :  { %v1036_v12 = vpack.c.bf16 %v907_v10, %v904_v9 }
 0x8ff   :  { %4228 = vmatmul.mubr.msk.bf16.vlgmr.msra.gmra.mrb[28].mxu1 %vm324_vm2, %v1036_v12 }
 0x900   :  { %v1029_v14 = vpop.f32.mrb[28].mxu0  ;;  %4239 = vmatprep.mubr.msk.bf16.mxu1 %vm4701_vm1, %v4700_v16  ;;  %4238 = vmatpush3.bf16.msra.mxu1 %v1160_v55 }
 0x901   :  { %v4223_v15 = vpop.f32.mrb[29].mxu0  ;;  %v1030_v18 = vadd.f32 %v3774_v13, %v1029_v14  ;;  %4251 = vmatprep.subr.bf16.mxu1 %v4700_v16 }
 0x902   :  { %v1032_v17 = vpop.f32.mrb[30].mxu0 }
 0x903   :  { %v1033_v19 = vadd.f32 %v3774_v13, %v1032_v17  ;;  %v4224_v20 = vpop.f32.mrb[31].mxu0 }
 0x905   :  { %v1108_v21 = vpack.c.bf16 %v1033_v19, %v1030_v18 }
 0x907   :  { %4232 = vmatpush3.bf16.msra.mxu0 %v1108_v21 }
 0x908   :  { %4243 = vmatprep.subr.bf16.mxu0 %v4700_v16 }
 0x9d2   :  { %v1078_v22 = vpop.f32.mrb[28].mxu1 }
 0x9d3   :  { %v1079_v23 = vadd.f32 %v1078_v22, %v4941_v3  ;;  %v4229_v24 = vpop.f32.mrb[29].mxu1 }
 0x9d4   :  { %v1081_v25 = vpop.f32.mrb[30].mxu1 }
 0x9d5   :  { %v1082_v26 = vadd.f32 %v1081_v25, %v4946_v5  ;;  %v4230_v27 = vpop.f32.mrb[31].mxu1  ;;  %v1085_v28 = vsel %vm372_vm3, %v1079_v23, -inf  ;;  %v3794_v25 = vld [vmem:[%s5684_s30 + $0x3] ss:$0 sm:$0xff] }
 0x9d6   :  { %1086 = vmax.xlane.f32.xlu0 %v1085_v28 }
 0x9d7   :  { %v1088_v29 = vsel %vm372_vm3, %v1082_v26, -inf }
 0x9d8   :  { %1089 = vmax.xlane.f32.xlu1 %v1088_v29 }
 0xa63   :  { %v1087_v30 = vpop.xlane.xlu0 %1086 }
 0xa64   :  { %v1091_v31 = vsub.f32 %v1079_v23, %v1087_v30 }
 0xa65   :  { %v1090_v32 = vpop.xlane.xlu1 %1089 }
 0xa66   :  { %v1093_v35 = vmul.f32 1.442695, %v1091_v31  ;;  %v1092_v37 = vsub.f32 %v1082_v26, %v1090_v32 }
 0xa68   :  { %4602 = vpow2.f32 %v1093_v35  ;;  %v1095_v38 = vmul.f32 1.442695, %v1092_v37 }
 0xa6a   :  { %4604 = vpow2.f32 %v1095_v38 }
 0xa72   :  { %v4603_v39 = vpop.eup %4602 }
 0xa73   :  { %v1097_v40 = vsel %vm372_vm3, %v4603_v39, 0.0 }
 0xa74   :  { %v4605_v41 = vpop.eup %4604  ;;  %1098 = vadd.xlane.f32.xlu0 %v1097_v40 }
 0xa75   :  { %v1100_v42 = vsel %vm372_vm3, %v4605_v41, 0.0 }
 0xa76   :  { %1101 = vadd.xlane.f32.xlu1 %v1100_v42 }
 0xb01   :  { %v1099_v43 = vpop.xlane.xlu0 %1098 }
 0xb02   :  { %4606 = vrcp.f32 %v1099_v43 }
 0xb03   :  { %v1102_v44 = vpop.xlane.xlu1 %1101 }
 0xb04   :  { %4608 = vrcp.f32 %v1102_v44 }
 0xb0c   :  { %v4607_v45 = vpop.eup %4606 }
 0xb0d   :  { %v1105_v47 = vmul.f32 %v4607_v45, %v4603_v39 }
 0xb0e   :  { %v4609_v46 = vpop.eup %4608 }
 0xb0f   :  { %v1106_v48 = vmul.f32 %v4609_v46, %v4605_v41 }
 0xb11   :  { %v1107_v50 = vpack.c.bf16 %v1106_v48, %v1105_v47 }
 0xb13   :  { %4234 = vmatmul.mubr.msk.bf16.vlgmr.msra.gmra.mrb[32].mxu0 %vm372_vm3, %v1107_v50 }
 0xb14   :  { %4244 = vmatpush3.bf16.msra.mxu0 %v4536_v49  ;;  %4247 = vmatprep.mubr.msk.bf16.mxu0 %vm4701_vm1, %v4700_v16 }
 0xb15   :  { %4245 = vmatprep.subr.bf16.mxu0 %v4700_v16 }
 0xb18   :  { %4246 = vmatpush3.bf16.msra.mxu0 %v4537_v51 }
 0xb19   :  { %4259 = vmatprep.subr.bf16.mxu0 %v4700_v16 }
 0xb1b   :  { %4248 = vmatmul.mubr.msk.bf16.vlgmr.msra.gmra.mrb[36].mxu0 %vm86_vm0, %v4880_v36 }
 0xb1c   :  { %4260 = vmatpush3.bf16.msra.mxu0 %v4538_v52  ;;  %4263 = vmatprep.mubr.msk.bf16.mxu0 %vm4701_vm1, %v4700_v16 }
 0xb1d   :  { %4261 = vmatprep.subr.bf16.mxu0 %v4700_v16 }
 0xb20   :  { %4262 = vmatpush3.bf16.msra.mxu0 %v4539_v53 }
 0xb21   :  { %4273 = vmatprep.subr.bf16.mxu0 %v4700_v16 }
 0xb23   :  { %4264 = vmatmul.mubr.msk.bf16.vlgmr.msra.gmra.mrb[40].mxu0 %vm86_vm0, %v4880_v36 }
 0xb24   :  { %4275 = vmatprep.mubr.msk.bf16.mxu0 %vm4701_vm1, %v4700_v16 }
 0xbe6   :  { %v1146_v56 = vpop.f32.mrb[32].mxu0 }
 0xbe7   :  { %v4235_v57 = vpop.f32.mrb[33].mxu0 }
 0xbe8   :  { %v1149_v58 = vpop.f32.mrb[34].mxu0 }
 0xbe9   :  { %v1153_v60 = vpack.c.bf16 %v1149_v58, %v1146_v56  ;;  %v4236_v61 = vpop.f32.mrb[35].mxu0  ;;  %v3808_v58 = vld [vmem:[%s5645_s11 + $0xc] sm:$0xf] }
 0xbeb   :  { %4240 = vmatmul.mubr.msk.bf16.vlgmr.msra.gmra.mrb[32].mxu1 %vm324_vm2, %v1153_v60 }
 0xbec   :  { %4252 = vmatpush3.bf16.msra.mxu1 %v4540_v59  ;;  %4255 = vmatprep.mubr.msk.bf16.mxu1 %vm4701_vm1, %v4700_v16  ;;  %v1518_v59 = vsel %vm755_vm4, %v3808_v58, 0 }
 0xbed   :  { %4253 = vmatprep.subr.bf16.mxu1 %v4700_v16 }
 0xbee   :  { %v1261_v2 = vpop.f32.mrb[36].mxu0 }
 0xbef   :  { %v4249_v4 = vpop.f32.mrb[37].mxu0  ;;  %v1262_v7 = vadd.f32 %v3786_v0, %v1261_v2 }
 0xbf0   :  { %v1264_v6 = vpop.f32.mrb[38].mxu0  ;;  %4254 = vmatpush3.bf16.msra.mxu1 %v4541_v63 }
 0xbf1   :  { %v1265_v8 = vadd.f32 %v3786_v0, %v1264_v6  ;;  %v4250_v9 = vpop.f32.mrb[39].mxu0  ;;  %4267 = vmatprep.subr.bf16.mxu1 %v4700_v16  ;;  %v3810_v6 = vld [vmem:[%s5646_s12] ss:$0 sm:$0xff] }
 0xbf3   :  { %v1394_v10 = vpack.c.bf16 %v1265_v8, %v1262_v7  ;;  %4256 = vmatmul.mubr.msk.bf16.vlgmr.msra.gmra.mrb[36].mxu1 %vm86_vm0, %v4880_v36 }
 0xbf4   :  { %4269 = vmatprep.mubr.msk.bf16.mxu1 %vm4701_vm1, %v4700_v16 }
 0xbf6   :  { %v1387_v12 = vpop.f32.mrb[40].mxu0 }
 0xbf7   :  { %v4265_v13 = vpop.f32.mrb[41].mxu0  ;;  %v1388_v15 = vadd.f32 %v3802_v11, %v1387_v12 }
 0xbf8   :  { %v1390_v14 = vpop.f32.mrb[42].mxu0 }
 0xbf9   :  { %v1391_v17 = vadd.f32 %v3802_v11, %v1390_v14  ;;  %v4266_v18 = vpop.f32.mrb[43].mxu0 }
 0xbfb   :  { %v1466_v19 = vpack.c.bf16 %v1391_v17, %v1388_v15 }
 0xbfd   :  { %4274 = vmatpush3.bf16.msra.mxu0 %v1466_v19 }
 0xbfe   :  { %4285 = vmatprep.subr.bf16.mxu0 %v4700_v16 }
 0xcbe   :  { %v1196_v20 = vpop.f32.mrb[32].mxu1 }
 0xcbf   :  { %v5131_v36 = vadd.f32 %v1196_v20, %v5056_v62  ;;  %v4241_v21 = vpop.f32.mrb[33].mxu1 }
 0xcc0   :  { %v1199_v22 = vpop.f32.mrb[34].mxu1 }
 0xcc1   :  { %v5134_v23 = vadd.f32 %v1199_v22, %v5058_v1  ;;  %v4242_v24 = vpop.f32.mrb[35].mxu1 }
 0xcc6   :  { %v1324_v26 = vpop.f32.mrb[36].mxu1 }
 0xcc7   :  { %v4257_v27 = vpop.f32.mrb[37].mxu1  ;;  %v1325_v29 = vadd.f32 %v3794_v25, %v1324_v26 }
 0xcc8   :  { %v1327_v28 = vpop.f32.mrb[38].mxu1  ;;  %v4543_v27 = vld [vmem:[%s5649_s15 + $0x8] sm:$0xff]  }
 0xcc9   :  { %v1328_v30 = vadd.f32 %v3794_v25, %v1327_v28  ;;  %v4258_v31 = vpop.f32.mrb[39].mxu1 }
 0xccb   :  { %v1395_v32 = vpack.c.bf16 %v1328_v30, %v1325_v29 }
 0xccd   :  { %v1400_v62 = vsel %vm324_vm2, %v1395_v32, 0 }
 0xcce   :  { %4268 = vmatpush3.bf16.xpose.msra.mxu1 %v1400_v62 }
 0xccf   :  { %4279 = vmatprep.subr.bf16.mxu1 %v4700_v16 }
 0xcd5   :  { %4270 = vmatmul.mubr.msk.bf16.vlgmr.msra.gmra.mrb[40].mxu1 %vm324_vm2, %v1394_v10 }
 0xcd6   :  { %4281 = vmatprep.mubr.msk.bf16.mxu1 %vm4701_vm1, %v4700_v16  ;;  %4280 = vmatpush3.bf16.msra.mxu1 %v1518_v59 }
 0xcd7   :  { %4293 = vmatprep.subr.bf16.mxu1 %v4700_v16 }
 0xda8   :  { %v1436_v1 = vpop.f32.mrb[40].mxu1 }
 0xda9   :  { %v1437_v35 = vadd.f32 %v1436_v1, %v4941_v3  ;;  %v4271_v37 = vpop.f32.mrb[41].mxu1 }
 0xdaa   :  { %v1439_v38 = vpop.f32.mrb[42].mxu1 }
 0xdab   :  { %v1440_v39 = vadd.f32 %v1439_v38, %v4946_v5  ;;  %v4272_v40 = vpop.f32.mrb[43].mxu1  ;;  %v1443_v41 = vsel %vm372_vm3, %v1437_v35, -inf }
 0xdac   :  { %1444 = vmax.xlane.f32.xlu0 %v1443_v41  ;;  %v3812_v41 = vld [vmem:[%s5648_s14] ss:$0 sm:$0xff] }
 0xdad   :  { %v1446_v42 = vsel %vm372_vm3, %v1440_v39, -inf }
 0xdae   :  { %1447 = vmax.xlane.f32.xlu1 %v1446_v42 }
 0xe39   :  { %v1445_v43 = vpop.xlane.xlu0 %1444 }
 0xe3a   :  { %v1449_v44 = vsub.f32 %v1437_v35, %v1445_v43  ;;  %v3811_v35 = vld [vmem:[%s5647_s13] ss:$0 sm:$0xff] }
 0xe3b   :  { %v1448_v45 = vpop.xlane.xlu1 %1447 }
 0xe3c   :  { %v1451_v46 = vmul.f32 1.442695, %v1449_v44  ;;  %v1450_v47 = vsub.f32 %v1440_v39, %v1448_v45 }
 0xe3e   :  { %4610 = vpow2.f32 %v1451_v46  ;;  %v1453_v48 = vmul.f32 1.442695, %v1450_v47  ;;  %v4544_v46 = vld [vmem:[%s5651_s17] sm:$0xff]   ;;  %v4545_v47 = vld [vmem:[%s5651_s17 + $0x8] sm:$0xff]  }
 0xe40   :  { %4612 = vpow2.f32 %v1453_v48  ;;  %v4546_v48 = vld [vmem:[%s5651_s17 + $0x10] sm:$0xff]  }
 0xe48   :  { %v4611_v3 = vpop.eup %4610 }
 0xe49   :  { %v1455_v49 = vsel %vm372_vm3, %v4611_v3, 0.0 }
 0xe4a   :  { %v4613_v50 = vpop.eup %4612  ;;  %1456 = vadd.xlane.f32.xlu0 %v1455_v49  ;;  %v3813_v49 = vld [vmem:[%s5650_s16] ss:$0 sm:$0xff] }
 0xe4b   :  { %v1458_v5 = vsel %vm372_vm3, %v4613_v50, 0.0 }
 0xe4c   :  { %1459 = vadd.xlane.f32.xlu1 %v1458_v5 }
 0xed7   :  { %v1457_v51 = vpop.xlane.xlu0 %1456 }
 0xed8   :  { %4614 = vrcp.f32 %v1457_v51 }
 0xed9   :  { %v1460_v52 = vpop.xlane.xlu1 %1459 }
 0xeda   :  { %4616 = vrcp.f32 %v1460_v52 }
 0xee2   :  { %v4615_v53 = vpop.eup %4614 }
 0xee3   :  { %v1463_v55 = vmul.f32 %v4615_v53, %v4611_v3  ;;  %v4547_v3 = vld [vmem:[%s5651_s17 + $0x18] sm:$0xff]  }
 0xee4   :  { %v4617_v54 = vpop.eup %4616 }
 0xee5   :  { %v1464_v56 = vmul.f32 %v4617_v54, %v4613_v50 }
 0xee7   :  { %v1465_v57 = vpack.c.bf16 %v1464_v56, %v1463_v55 }
 0xee9   :  { %4276 = vmatmul.mubr.msk.bf16.vlgmr.msra.gmra.mrb[44].mxu0 %vm372_vm3, %v1465_v57 }
 0xeea   :  { %4289 = vmatprep.mubr.msk.bf16.mxu0 %vm4701_vm1, %v4700_v16 }
 0xfbc   :  { %v1504_v60 = vpop.f32.mrb[44].mxu0 }
 0xfbd   :  { %v4277_v61 = vpop.f32.mrb[45].mxu0 }
 0xfbe   :  { %v1507_v63 = vpop.f32.mrb[46].mxu0 }
 0xfbf   :  { %v1511_v0 = vpack.c.bf16 %v1507_v63, %v1504_v60  ;;  %v4278_v2 = vpop.f32.mrb[47].mxu0 }
 0xfc1   :  { %4282 = vmatmul.mubr.msk.bf16.vlgmr.msra.gmra.mrb[44].mxu1 %vm324_vm2, %v1511_v0 }
 0xfc2   :  { %4301 = vmatprep.mubr.msk.bf16.mxu1 %vm4701_vm1, %v4700_v16  ;;  %4294 = vmatpush3.bf16.msra.mxu1 %v4544_v46 }
 0xfc3   :  { %4295 = vmatprep.subr.bf16.mxu1 %v4700_v16 }
 0xfc6   :  { %4296 = vmatpush3.bf16.msra.mxu1 %v4545_v47 }
 0xfc7   :  { %4297 = vmatprep.subr.bf16.mxu1 %v4700_v16 }
 0xfca   :  { %4298 = vmatpush3.bf16.msra.mxu1 %v4546_v48 }
 0xfcb   :  { %4299 = vmatprep.subr.bf16.mxu1 %v4700_v16 }
 0xfce   :  { %4300 = vmatpush3.bf16.msra.mxu1 %v4547_v3 }
 0xfcf   :  { %4321 = vmatprep.subr.bf16.mxu1 %v4700_v16 }
0x1094   :  { %v1554_v4 = vpop.f32.mrb[44].mxu1 }
0x1095   :  { %v1561_v7 = vadd.f32 %v1554_v4, %v5131_v36  ;;  %v4283_v8 = vpop.f32.mrb[45].mxu1 }
0x1096   :  { %v1557_v9 = vpop.f32.mrb[46].mxu1 }
0x1097   :  { %v1568_v10 = vadd.f32 %v3810_v6, %v1561_v7  ;;  %v1562_v11 = vadd.f32 %v1557_v9, %v5134_v23  ;;  %v4284_v12 = vpop.f32.mrb[47].mxu1 }
0x1099   :  { %v1569_v13 = vadd.f32 %v3810_v6, %v1562_v11  ;;  %v1570_v14 = vadd.f32 %v1568_v10, %v4871_v33 }
0x109b   :  { %v1574_v15 = vsel %vm86_vm0, %v1570_v14, 0.0  ;;  %v1571_v17 = vadd.f32 %v1569_v13, %v4873_v34  ;;  %v4542_v34 = vld [vmem:[%s5649_s15] sm:$0xff]  }
0x109c   :  { %1575 = vadd.xlane.f32.xlu0 %v1574_v15  ;;  %4286 = vmatpush3.bf16.msra.mxu0 %v4542_v34 }
0x109d   :  { %v1577_v18 = vsel %vm86_vm0, %v1571_v17, 0.0  ;;  %4287 = vmatprep.subr.bf16.mxu0 %v4700_v16 }
0x109e   :  { %1578 = vadd.xlane.f32.xlu1 %v1577_v18 }
0x10a0   :  { %4288 = vmatpush3.bf16.msra.mxu0 %v4543_v27 }
0x10a1   :  { %4305 = vmatprep.subr.bf16.mxu0 %v4700_v16 }
0x1129   :  { %v1576_v19 = vpop.xlane.xlu0 %1575 }
0x112a   :  { %v1580_v20 = vmul.f32 0.03125, %v1576_v19 }
0x112b   :  { %v1579_v36 = vpop.xlane.xlu1 %1578 }
0x112c   :  { %v1582_v21 = vsub.f32 %v1570_v14, %v1580_v20  ;;  %v1581_v22 = vmul.f32 0.03125, %v1579_v36  ;;  %v3817_v14 = vld [vmem:[%s5652_s18] ss:$0 sm:$0xff] }
0x112e   :  { %v1583_v24 = vsub.f32 %v1571_v17, %v1581_v22  ;;  %v1584_v25 = vmul.f32 %v1582_v21, %v1582_v21 }
0x1130   :  { %v1586_v23 = vsel %vm86_vm0, %v1584_v25, 0.0  ;;  %v1585_v26 = vmul.f32 %v1583_v24, %v1583_v24 }
0x1131   :  { %1587 = vadd.xlane.f32.xlu0 %v1586_v23 }
0x1132   :  { %v1589_v33 = vsel %vm86_vm0, %v1585_v26, 0.0 }
0x1133   :  { %1590 = vadd.xlane.f32.xlu1 %v1589_v33 }
0x11be   :  { %v1588_v28 = vpop.xlane.xlu0 %1587 }
0x11bf   :  { %v1592_v29 = vmul.f32 0.03125, %v1588_v28 }
0x11c0   :  { %v1591_v30 = vpop.xlane.xlu1 %1590 }
0x11c1   :  { %v1594_v31 = vadd.f32 1e-05, %v1592_v29  ;;  %v1593_v32 = vmul.f32 0.03125, %v1591_v30 }
0x11c3   :  { %4618 = vrsqrt.f32 %v1594_v31  ;;  %v1595_v62 = vadd.f32 1e-05, %v1593_v32 }
0x11c5   :  { %4620 = vrsqrt.f32 %v1595_v62  ;;  %v4548_v62 = vld [vmem:[%s5678_s1 + $0x40] sm:$0xff]  }
0x11cd   :  { %v4619_v1 = vpop.eup %4618 }
0x11ce   :  { %v1598_v37 = vmul.f32 %v4619_v1, %v1582_v21  ;;  %v4549_v1 = vld [vmem:[%s5682_s27 + $0x40] sm:$0xff]  }
0x11cf   :  { %v4621_v38 = vpop.eup %4620 }
0x11d0   :  { %v1604_v39 = vmul.f32 %v3811_v35, %v1598_v37  ;;  %v1599_v40 = vmul.f32 %v4621_v38, %v1583_v24  ;;  %v4551_v37 = vld [vmem:[%s5682_s27 + $0x48] sm:$0xff]  }
0x11d2   :  { %v1605_v42 = vmul.f32 %v3811_v35, %v1599_v40  ;;  %v1610_v43 = vadd.f32 %v3812_v41, %v1604_v39  ;;  %v4550_v35 = vld [vmem:[%s5678_s1 + $0x48] sm:$0xff]  }
0x11d4   :  { %v1611_v44 = vadd.f32 %v3812_v41, %v1605_v42 }
0x11d6   :  { %v1612_v45 = vpack.c.bf16 %v1611_v44, %v1610_v43 }
0x11d8   :  { %4290 = vmatmul.mubr.msk.bf16.vlgmr.msra.gmra.mrb[48].mxu0 %vm86_vm0, %v1612_v45  ;;  %v3823_v45 = vld [vmem:[%s5653_s19] ss:$0 sm:$0xff] }
0x11d9   :  { %4309 = vmatprep.mubr.msk.bf16.mxu0 %vm4701_vm1, %v4700_v16  ;;  %4306 = vmatpush3.bf16.msra.mxu0 %v4548_v62 }
0x11da   :  { %4307 = vmatprep.subr.bf16.mxu0 %v4700_v16 }
0x11dd   :  { %4308 = vmatpush3.bf16.msra.mxu0 %v4550_v35 }
0x11de   :  { %4313 = vmatprep.subr.bf16.mxu0 %v4700_v16 }
0x12ab   :  { %v1671_v50 = vpop.f32.mrb[48].mxu0 }
0x12ac   :  { %v1672_v5 = vadd.f32 %v3813_v49, %v1671_v50  ;;  %v4291_v51 = vpop.f32.mrb[49].mxu0 }
0x12ad   :  { %v1674_v52 = vpop.f32.mrb[50].mxu0 }
0x12ae   :  { %v1678_v53 = vmul.f32 %v1672_v5, %v1672_v5  ;;  %v1675_v54 = vadd.f32 %v3813_v49, %v1674_v52  ;;  %v4292_v55 = vpop.f32.mrb[51].mxu0  ;;  %v3824_v49 = vld [vmem:[%s5654_s20] ss:$0 sm:$0xff] }
0x12af   :  { %v4552_v52 = vld [vmem:[%s5679_s4 + $0x40] sm:$0xff]  }
0x12b0   :  { %v1680_v56 = vmul.f32 %v1678_v53, %v1672_v5  ;;  %v1679_v57 = vmul.f32 %v1675_v54, %v1675_v54  ;;  %v3829_v55 = vld [vmem:[%s5683_s29 + $0x4] ss:$0 sm:$0xff] }
0x12b2   :  { %v1682_v58 = vmul.f32 0.044715, %v1680_v56  ;;  %v1681_v59 = vmul.f32 %v1679_v57, %v1675_v54  ;;  %v3845_v57 = vld [vmem:[%s5644_s10 + $0x4] ss:$0 sm:$0xff] }
0x12b4   :  { %v1684_v60 = vadd.f32 %v1682_v58, %v1672_v5  ;;  %v1683_v61 = vmul.f32 0.044715, %v1681_v59 }
0x12b6   :  { %v1686_v63 = vmul.f32 0.7978846, %v1684_v60  ;;  %v1685_v0 = vadd.f32 %v1683_v61, %v1675_v54 }
0x12b8   :  { %4622 = vtanh.f32 %v1686_v63  ;;  %v1687_v2 = vmul.f32 0.7978846, %v1685_v0 }
0x12ba   :  { %4624 = vtanh.f32 %v1687_v2 }
0x12c2   :  { %v4623_v4 = vpop.eup %4622 }
0x12c3   :  { %v1690_v6 = vadd.f32 1.0, %v4623_v4 }
0x12c4   :  { %v4625_v7 = vpop.eup %4624 }
0x12c5   :  { %v1692_v8 = vmul.f32 0.5, %v1690_v6  ;;  %v1691_v9 = vadd.f32 1.0, %v4625_v7 }
0x12c7   :  { %v1693_v10 = vmul.f32 0.5, %v1691_v9  ;;  %v1694_v11 = vmul.f32 %v1692_v8, %v1672_v5 }
0x12c9   :  { %v1695_v12 = vmul.f32 %v1693_v10, %v1675_v54  ;;  %v4553_v54 = vld [vmem:[%s5679_s4 + $0x48] sm:$0xff]  }
0x12cb   :  { %v1696_v13 = vpack.c.bf16 %v1695_v12, %v1694_v11  ;;  %v3837_v11 = vld [vmem:[%s5684_s30 + $0x4] ss:$0 sm:$0xff] }
0x12cd   :  { %4302 = vmatmul.mubr.msk.bf16.vlgmr.msra.gmra.mrb[48].mxu1 %vm1734_vm5, %v1696_v13 }
0x12ce   :  { %4325 = vmatprep.mubr.msk.bf16.mxu1 %vm4701_vm1, %v4700_v16  ;;  %4322 = vmatpush3.bf16.msra.mxu1 %v4549_v1 }
0x12cf   :  { %4323 = vmatprep.subr.bf16.mxu1 %v4700_v16 }
0x12d2   :  { %4324 = vmatpush3.bf16.msra.mxu1 %v4551_v37 }
0x12d3   :  { %4335 = vmatprep.subr.bf16.mxu1 %v4700_v16 }
0x13a0   :  { %v1772_v15 = vpop.f32.mrb[48].mxu1 }
0x13a1   :  { %v1773_v17 = vadd.f32 %v3817_v14, %v1772_v15  ;;  %v4303_v18 = vpop.f32.mrb[49].mxu1 }
0x13a2   :  { %v1775_v19 = vpop.f32.mrb[50].mxu1 }
0x13a3   :  { %v1776_v20 = vadd.f32 %v3817_v14, %v1775_v19  ;;  %v4304_v36 = vpop.f32.mrb[51].mxu1  ;;  %v1779_v21 = vadd.f32 %v1773_v17, %v1610_v43 }
0x13a4   :  { %v4554_v36 = vld [vmem:[%s5678_s1 + $0x50] sm:$0xff]  }
0x13a5   :  { %v1783_v22 = vsel %vm86_vm0, %v1779_v21, 0.0  ;;  %v1780_v24 = vadd.f32 %v1776_v20, %v1611_v44 }
0x13a6   :  { %1784 = vadd.xlane.f32.xlu0 %v1783_v22  ;;  %v4556_v22 = vld [vmem:[%s5682_s27 + $0x50] sm:$0xff]  }
0x13a7   :  { %v1786_v25 = vsel %vm86_vm0, %v1780_v24, 0.0 }
0x13a8   :  { %1787 = vadd.xlane.f32.xlu1 %v1786_v25 }
0x1433   :  { %v1785_v23 = vpop.xlane.xlu0 %1784 }
0x1434   :  { %v1789_v26 = vmul.f32 0.03125, %v1785_v23  ;;  %v5310_v23 = vld [vmem:[%s5685_s26] sm:$0xff] }
0x1435   :  { %v1788_v33 = vpop.xlane.xlu1 %1787 }
0x1436   :  { %v1791_v34 = vsub.f32 %v1779_v21, %v1789_v26  ;;  %v1790_v27 = vmul.f32 0.03125, %v1788_v33  ;;  %v4555_v21 = vld [vmem:[%s5678_s1 + $0x58] sm:$0xff]  }
0x1438   :  { %v1792_v28 = vsub.f32 %v1780_v24, %v1790_v27  ;;  %v1793_v29 = vmul.f32 %v1791_v34, %v1791_v34  ;;  %v4557_v24 = vld [vmem:[%s5682_s27 + $0x58] sm:$0xff]   ;;  %v5316_v27 = vld [vmem:[%s5685_s26 + $0x8] sm:$0xff] }
0x143a   :  { %v1795_v30 = vsel %vm86_vm0, %v1793_v29, 0.0  ;;  %v1794_v31 = vmul.f32 %v1792_v28, %v1792_v28 }
0x143b   :  { %1796 = vadd.xlane.f32.xlu0 %v1795_v30 }
0x143c   :  { %v1798_v32 = vsel %vm86_vm0, %v1794_v31, 0.0 }
0x143d   :  { %1799 = vadd.xlane.f32.xlu1 %v1798_v32  ;;  %v3856_v32 = vld [vmem:[%s5683_s29 + $0x5] ss:$0 sm:$0xff] }
0x14c8   :  { %v1797_v38 = vpop.xlane.xlu0 %1796 }
0x14c9   :  { %v1801_v39 = vmul.f32 0.03125, %v1797_v38 }
0x14ca   :  { %v1800_v40 = vpop.xlane.xlu1 %1799 }
0x14cb   :  { %v1803_v41 = vadd.f32 1e-05, %v1801_v39  ;;  %v1802_v42 = vmul.f32 0.03125, %v1800_v40 }
0x14cd   :  { %4626 = vrsqrt.f32 %v1803_v41  ;;  %v1804_v43 = vadd.f32 1e-05, %v1802_v42  ;;  %v3872_v41 = vld [vmem:[%s5644_s10 + $0x5] ss:$0 sm:$0xff] }
0x14cf   :  { %4628 = vrsqrt.f32 %v1804_v43 }
0x14d7   :  { %v4627_v44 = vpop.eup %4626 }
0x14d8   :  { %v1807_v46 = vmul.f32 %v4627_v44, %v1791_v34 }
0x14d9   :  { %v4629_v47 = vpop.eup %4628 }
0x14da   :  { %v1813_v48 = vmul.f32 %v3823_v45, %v1807_v46  ;;  %v1808_v3 = vmul.f32 %v4629_v47, %v1792_v28 }
0x14dc   :  { %v1814_v50 = vmul.f32 %v3823_v45, %v1808_v3  ;;  %v5240_v5 = vadd.f32 %v3824_v49, %v1813_v48 }
0x14de   :  { %v5242_v51 = vadd.f32 %v3824_v49, %v1814_v50 }
0x14e0   :  { %v5249_v53 = vpack.c.bf16 %v5242_v51, %v5240_v5 }
0x14e2   :  { %4310 = vmatmul.mubr.msk.bf16.vlgmr.msra.gmra.mrb[52].mxu0 %vm86_vm0, %v5249_v53  ;;  %4326 = vmatmul.mubr.msk.bf16.vlgmr.msra.gmra.mrb[52].mxu1 %vm86_vm0, %v5249_v53 }
0x14e3   :  { %4314 = vmatpush3.bf16.msra.mxu0 %v4552_v52  ;;  %4317 = vmatprep.mubr.msk.bf16.mxu0 %vm4701_vm1, %v4700_v16 }
0x14e4   :  { %4315 = vmatprep.subr.bf16.mxu0 %v4700_v16  ;;  %4337 = vmatprep.mubr.msk.bf16.mxu1 %vm4701_vm1, %v4700_v16 }
0x14e7   :  { %4316 = vmatpush3.bf16.msra.mxu0 %v4553_v54 }
0x14e8   :  { %4329 = vmatprep.subr.bf16.mxu0 %v4700_v16 }
0x14ea   :  { %4318 = vmatmul.mubr.msk.bf16.vlgmr.msra.gmra.mrb[56].mxu0 %vm86_vm0, %v5249_v53 }
0x14eb   :  { %4331 = vmatprep.mubr.msk.bf16.mxu0 %vm4701_vm1, %v4700_v16 }
0x15b5   :  { %v1881_v56 = vpop.f32.mrb[52].mxu0  ;;  %v2007_v58 = vpop.f32.mrb[52].mxu1 }
0x15b6   :  { %v4311_v59 = vpop.f32.mrb[53].mxu0  ;;  %v4327_v60 = vpop.f32.mrb[53].mxu1  ;;  %v1882_v0 = vadd.f32 %v3829_v55, %v1881_v56  ;;  %v2008_v2 = vadd.f32 %v3845_v57, %v2007_v58 }
0x15b7   :  { %v1884_v61 = vpop.f32.mrb[54].mxu0  ;;  %v2010_v63 = vpop.f32.mrb[54].mxu1 }
0x15b8   :  { %v1885_v4 = vadd.f32 %v3829_v55, %v1884_v61  ;;  %v2011_v6 = vadd.f32 %v3845_v57, %v2010_v63  ;;  %v4312_v7 = vpop.f32.mrb[55].mxu0  ;;  %v4328_v8 = vpop.f32.mrb[55].mxu1 }
0x15b9   :  { %v4559_v8 = vld [vmem:[%s5679_s4 + $0x58] sm:$0xff]  }
0x15ba   :  { %v2014_v9 = vpack.c.bf16 %v1885_v4, %v1882_v0  ;;  %v2086_v10 = vpack.c.bf16 %v2011_v6, %v2008_v2  ;;  %v4558_v6 = vld [vmem:[%s5679_s4 + $0x50] sm:$0xff]  }
0x15bc   :  { %4336 = vmatpush3.bf16.msra.mxu1 %v2086_v10 }
0x15bd   :  { %v1944_v12 = vpop.f32.mrb[56].mxu0  ;;  %4349 = vmatprep.subr.bf16.mxu1 %v4700_v16 }
0x15be   :  { %v4319_v13 = vpop.f32.mrb[57].mxu0  ;;  %v1945_v15 = vadd.f32 %v3837_v11, %v1944_v12 }
0x15bf   :  { %v1947_v14 = vpop.f32.mrb[58].mxu0 }
0x15c0   :  { %v1948_v17 = vadd.f32 %v3837_v11, %v1947_v14  ;;  %v4320_v18 = vpop.f32.mrb[59].mxu0  ;;  %v3864_v14 = vld [vmem:[%s5684_s30 + $0x5] ss:$0 sm:$0xff] }
0x15c2   :  { %v2015_v19 = vpack.c.bf16 %v1948_v17, %v1945_v15 }
0x15c4   :  { %v2020_v20 = vsel %vm324_vm2, %v2015_v19, 0 }
0x15c5   :  { %4330 = vmatpush3.bf16.xpose.msra.mxu0 %v2020_v20 }
0x15c6   :  { %4341 = vmatprep.subr.bf16.mxu0 %v4700_v16 }
0x15cc   :  { %4332 = vmatmul.mubr.msk.bf16.vlgmr.msra.gmra.mrb[60].mxu0 %vm324_vm2, %v2014_v9 }
0x15cd   :  { %4342 = vmatpush3.bf16.msra.mxu0 %v4554_v36  ;;  %4345 = vmatprep.mubr.msk.bf16.mxu0 %vm4701_vm1, %v4700_v16 }
0x15ce   :  { %4343 = vmatprep.subr.bf16.mxu0 %v4700_v16 }
0x15d1   :  { %4344 = vmatpush3.bf16.msra.mxu0 %v4555_v21 }
0x15d2   :  { %4357 = vmatprep.subr.bf16.mxu0 %v4700_v16 }
0x15d4   :  { %4346 = vmatmul.mubr.msk.bf16.vlgmr.msra.gmra.mrb[64].mxu0 %vm86_vm0, %v5249_v53 }
0x15d5   :  { %4358 = vmatpush3.bf16.msra.mxu0 %v4556_v22  ;;  %4361 = vmatprep.mubr.msk.bf16.mxu0 %vm4701_vm1, %v4700_v16 }
0x15d6   :  { %4359 = vmatprep.subr.bf16.mxu0 %v4700_v16 }
0x15d9   :  { %4360 = vmatpush3.bf16.msra.mxu0 %v4557_v24 }
0x15da   :  { %4371 = vmatprep.subr.bf16.mxu0 %v4700_v16 }
0x15dc   :  { %4362 = vmatmul.mubr.msk.bf16.vlgmr.msra.gmra.mrb[68].mxu0 %vm86_vm0, %v5249_v53 }
0x15dd   :  { %4373 = vmatprep.mubr.msk.bf16.mxu0 %vm4701_vm1, %v4700_v16 }
0x169f   :  { %v2056_v25 = vpop.f32.mrb[60].mxu0 }
0x16a0   :  { %v2057_v26 = vadd.f32 %v5310_v23, %v2056_v25  ;;  %v4333_v33 = vpop.f32.mrb[61].mxu0 }
0x16a1   :  { %v2059_v34 = vpop.f32.mrb[62].mxu0 }
0x16a2   :  { %v2060_v28 = vadd.f32 %v5316_v27, %v2059_v34  ;;  %v4334_v29 = vpop.f32.mrb[63].mxu0  ;;  %v2063_v30 = vsel %vm372_vm3, %v2057_v26, -inf }
0x16a3   :  { %2064 = vmax.xlane.f32.xlu0 %v2063_v30 }
0x16a4   :  { %v2066_v31 = vsel %vm372_vm3, %v2060_v28, -inf }
0x16a5   :  { %2067 = vmax.xlane.f32.xlu1 %v2066_v31 }
0x16a7   :  { %v2190_v62 = vpop.f32.mrb[64].mxu0 }
0x16a8   :  { %v4347_v1 = vpop.f32.mrb[65].mxu0  ;;  %v5324_v37 = vadd.f32 %v3856_v32, %v2190_v62 }
0x16a9   :  { %v2193_v35 = vpop.f32.mrb[66].mxu0 }
0x16aa   :  { %v5326_v38 = vadd.f32 %v3856_v32, %v2193_v35  ;;  %v4348_v39 = vpop.f32.mrb[67].mxu0 }
0x16ac   :  { %v2323_v40 = vpack.c.bf16 %v5326_v38, %v5324_v37 }
0x16af   :  { %v2316_v42 = vpop.f32.mrb[68].mxu0 }
0x16b0   :  { %v4363_v43 = vpop.f32.mrb[69].mxu0  ;;  %v2317_v45 = vadd.f32 %v3872_v41, %v2316_v42 }
0x16b1   :  { %v2319_v44 = vpop.f32.mrb[70].mxu0 }
0x16b2   :  { %v2320_v46 = vadd.f32 %v3872_v41, %v2319_v44  ;;  %v4364_v47 = vpop.f32.mrb[71].mxu0 }
0x16b4   :  { %v2395_v48 = vpack.c.bf16 %v2320_v46, %v2317_v45  ;;  %v3851_v46 = vld [vmem:[%s5645_s11 + $0x10] sm:$0xf] }
0x16b6   :  { %4372 = vmatpush3.bf16.msra.mxu0 %v2395_v48 }
0x16b7   :  { %4383 = vmatprep.subr.bf16.mxu0 %v4700_v16 }
0x1730   :  { %v2065_v3 = vpop.xlane.xlu0 %2064 }
0x1731   :  { %v2069_v49 = vsub.f32 %v2057_v26, %v2065_v3 }
0x1732   :  { %v2068_v50 = vpop.xlane.xlu1 %2067 }
0x1733   :  { %v2071_v52 = vmul.f32 1.442695, %v2069_v49  ;;  %v2070_v54 = vsub.f32 %v2060_v28, %v2068_v50  ;;  %v2494_v49 = vsel %vm755_vm4, %v3851_v46, 0  ;;  %v4560_v50 = vld [vmem:[%s5679_s4 + $0x60] sm:$0xff]  }
0x1735   :  { %4630 = vpow2.f32 %v2071_v52  ;;  %v2073_v55 = vmul.f32 1.442695, %v2070_v54  ;;  %v4561_v52 = vld [vmem:[%s5679_s4 + $0x68] sm:$0xff]   ;;  %v3878_v54 = vld [vmem:[%s5645_s11 + $0x14] sm:$0xf] }
0x1737   :  { %4632 = vpow2.f32 %v2073_v55  ;;  %v2447_v55 = vsel %vm755_vm4, %v3878_v54, 0 }
0x173f   :  { %v4631_v56 = vpop.eup %4630 }
0x1740   :  { %v2075_v57 = vsel %vm372_vm3, %v4631_v56, 0.0 }
0x1741   :  { %v4633_v58 = vpop.eup %4632  ;;  %2076 = vadd.xlane.f32.xlu0 %v2075_v57 }
0x1742   :  { %v2078_v59 = vsel %vm372_vm3, %v4633_v58, 0.0 }
0x1743   :  { %2079 = vadd.xlane.f32.xlu1 %v2078_v59  ;;  %v4562_v59 = vld [vmem:[%s5678_s1 + $0x60] sm:$0xff]  }
0x17ce   :  { %v2077_v60 = vpop.xlane.xlu0 %2076 }
0x17cf   :  { %4634 = vrcp.f32 %v2077_v60 }
0x17d0   :  { %v2080_v61 = vpop.xlane.xlu1 %2079 }
0x17d1   :  { %4636 = vrcp.f32 %v2080_v61 }
0x17d9   :  { %v4635_v63 = vpop.eup %4634 }
0x17da   :  { %v2083_v2 = vmul.f32 %v4635_v63, %v4631_v56  ;;  %v4563_v63 = vld [vmem:[%s5678_s1 + $0x68] sm:$0xff]  }
0x17db   :  { %v4637_v0 = vpop.eup %4636 }
0x17dc   :  { %v2084_v4 = vmul.f32 %v4637_v0, %v4633_v58 }
0x17de   :  { %v2085_v7 = vpack.c.bf16 %v2084_v4, %v2083_v2 }
0x17e0   :  { %4338 = vmatmul.mubr.msk.bf16.vlgmr.msra.gmra.mrb[56].mxu1 %vm372_vm3, %v2085_v7 }
0x17e1   :  { %4350 = vmatpush3.bf16.msra.mxu1 %v4558_v6  ;;  %4353 = vmatprep.mubr.msk.bf16.mxu1 %vm4701_vm1, %v4700_v16  ;;  %v4564_v6 = vld [vmem:[%s5682_s27 + $0x60] sm:$0xff]  }
0x17e2   :  { %4351 = vmatprep.subr.bf16.mxu1 %v4700_v16 }
0x17e5   :  { %4352 = vmatpush3.bf16.msra.mxu1 %v4559_v8  ;;  %v4565_v8 = vld [vmem:[%s5682_s27 + $0x68] sm:$0xff]  }
0x17e6   :  { %4365 = vmatprep.subr.bf16.mxu1 %v4700_v16 }
0x17e8   :  { %4354 = vmatmul.mubr.msk.bf16.vlgmr.msra.gmra.mrb[60].mxu1 %vm86_vm0, %v5249_v53 }
0x17e9   :  { %4367 = vmatprep.mubr.msk.bf16.mxu1 %vm4701_vm1, %v4700_v16 }
0x18b3   :  { %v2124_v9 = vpop.f32.mrb[56].mxu1 }
0x18b4   :  { %v4339_v10 = vpop.f32.mrb[57].mxu1 }
0x18b5   :  { %v2127_v11 = vpop.f32.mrb[58].mxu1 }
0x18b6   :  { %v2131_v12 = vpack.c.bf16 %v2127_v11, %v2124_v9  ;;  %v4340_v13 = vpop.f32.mrb[59].mxu1  ;;  %v3893_v9 = vld [vmem:[%s5684_s30 + $0x6] ss:$0 sm:$0xff] }
0x18bb   :  { %v2253_v15 = vpop.f32.mrb[60].mxu1 }
0x18bc   :  { %v4355_v17 = vpop.f32.mrb[61].mxu1  ;;  %v2254_v19 = vadd.f32 %v3864_v14, %v2253_v15 }
0x18bd   :  { %v2256_v18 = vpop.f32.mrb[62].mxu1 }
0x18be   :  { %v2257_v20 = vadd.f32 %v3864_v14, %v2256_v18  ;;  %v4356_v36 = vpop.f32.mrb[63].mxu1 }
0x18c0   :  { %v2324_v21 = vpack.c.bf16 %v2257_v20, %v2254_v19 }
0x18c2   :  { %v2329_v22 = vsel %vm324_vm2, %v2324_v21, 0 }
0x18c3   :  { %4366 = vmatpush3.bf16.xpose.msra.mxu1 %v2329_v22 }
0x18c4   :  { %4377 = vmatprep.subr.bf16.mxu1 %v4700_v16 }
0x18ca   :  { %4368 = vmatmul.mubr.msk.bf16.vlgmr.msra.gmra.mrb[64].mxu1 %vm324_vm2, %v2323_v40 }
0x18cb   :  { %4379 = vmatprep.mubr.msk.bf16.mxu1 %vm4701_vm1, %v4700_v16  ;;  %4378 = vmatpush3.bf16.msra.mxu1 %v2447_v55 }
0x18cc   :  { %4389 = vmatprep.subr.bf16.mxu1 %v4700_v16 }
0x199d   :  { %v2365_v24 = vpop.f32.mrb[64].mxu1 }
0x199e   :  { %v2366_v25 = vadd.f32 %v5310_v23, %v2365_v24  ;;  %v4369_v26 = vpop.f32.mrb[65].mxu1 }
0x199f   :  { %v2368_v33 = vpop.f32.mrb[66].mxu1 }
0x19a0   :  { %v2369_v34 = vadd.f32 %v5316_v27, %v2368_v33  ;;  %v4370_v28 = vpop.f32.mrb[67].mxu1  ;;  %v2372_v29 = vsel %vm372_vm3, %v2366_v25, -inf }
0x19a1   :  { %2373 = vmax.xlane.f32.xlu0 %v2372_v29 }
0x19a2   :  { %v2375_v30 = vsel %vm372_vm3, %v2369_v34, -inf }
0x19a3   :  { %2376 = vmax.xlane.f32.xlu1 %v2375_v30 }
0x1a2e   :  { %v2374_v31 = vpop.xlane.xlu0 %2373 }
0x1a2f   :  { %v2378_v32 = vsub.f32 %v2366_v25, %v2374_v31  ;;  %v3885_v25 = vld [vmem:[%s5683_s29 + $0x6] ss:$0 sm:$0xff] }
0x1a30   :  { %v2377_v62 = vpop.xlane.xlu1 %2376 }
0x1a31   :  { %v2380_v1 = vmul.f32 1.442695, %v2378_v32  ;;  %v2379_v35 = vsub.f32 %v2369_v34, %v2377_v62  ;;  %v3901_v32 = vld [vmem:[%s5644_s10 + $0x6] ss:$0 sm:$0xff] }
0x1a33   :  { %4638 = vpow2.f32 %v2380_v1  ;;  %v2382_v37 = vmul.f32 1.442695, %v2379_v35 }
0x1a35   :  { %4640 = vpow2.f32 %v2382_v37 }
0x1a3d   :  { %v4639_v38 = vpop.eup %4638 }
0x1a3e   :  { %v2384_v39 = vsel %vm372_vm3, %v4639_v38, 0.0 }
0x1a3f   :  { %v4641_v40 = vpop.eup %4640  ;;  %2385 = vadd.xlane.f32.xlu0 %v2384_v39 }
0x1a40   :  { %v2387_v41 = vsel %vm372_vm3, %v4641_v40, 0.0 }
0x1a41   :  { %2388 = vadd.xlane.f32.xlu1 %v2387_v41 }
0x1acc   :  { %v2386_v42 = vpop.xlane.xlu0 %2385 }
0x1acd   :  { %4642 = vrcp.f32 %v2386_v42 }
0x1ace   :  { %v2389_v43 = vpop.xlane.xlu1 %2388 }
0x1acf   :  { %4644 = vrcp.f32 %v2389_v43 }
0x1ad7   :  { %v4643_v44 = vpop.eup %4642 }
0x1ad8   :  { %v2392_v47 = vmul.f32 %v4643_v44, %v4639_v38 }
0x1ad9   :  { %v4645_v45 = vpop.eup %4644 }
0x1ada   :  { %v2393_v48 = vmul.f32 %v4645_v45, %v4641_v40 }
0x1adc   :  { %v2394_v3 = vpack.c.bf16 %v2393_v48, %v2392_v47 }
0x1ade   :  { %4374 = vmatmul.mubr.msk.bf16.vlgmr.msra.gmra.mrb[72].mxu0 %vm372_vm3, %v2394_v3 }
0x1adf   :  { %4384 = vmatpush3.bf16.msra.mxu0 %v2494_v49  ;;  %4385 = vmatprep.mubr.msk.bf16.mxu0 %vm4701_vm1, %v4700_v16 }
0x1ae0   :  { %4397 = vmatprep.subr.bf16.mxu0 %v4700_v16 }
0x1ae6   :  { %4386 = vmatmul.mubr.msk.bf16.vlgmr.msra.gmra.mrb[76].mxu0 %vm324_vm2, %v2131_v12 }
0x1ae7   :  { %4398 = vmatpush3.bf16.msra.mxu0 %v4560_v50  ;;  %4401 = vmatprep.mubr.msk.bf16.mxu0 %vm4701_vm1, %v4700_v16 }
0x1ae8   :  { %4399 = vmatprep.subr.bf16.mxu0 %v4700_v16 }
0x1aeb   :  { %4400 = vmatpush3.bf16.msra.mxu0 %v4561_v52 }
0x1aec   :  { %4413 = vmatprep.subr.bf16.mxu0 %v4700_v16 }
0x1aee   :  { %4402 = vmatmul.mubr.msk.bf16.vlgmr.msra.gmra.mrb[80].mxu0 %vm86_vm0, %v5249_v53 }
0x1aef   :  { %4415 = vmatprep.mubr.msk.bf16.mxu0 %vm4701_vm1, %v4700_v16 }
0x1bb1   :  { %v2433_v56 = vpop.f32.mrb[72].mxu0 }
0x1bb2   :  { %v4375_v57 = vpop.f32.mrb[73].mxu0 }
0x1bb3   :  { %v2436_v58 = vpop.f32.mrb[74].mxu0 }
0x1bb4   :  { %v2440_v60 = vpack.c.bf16 %v2436_v58, %v2433_v56  ;;  %v4376_v61 = vpop.f32.mrb[75].mxu0 }
0x1bb6   :  { %4380 = vmatmul.mubr.msk.bf16.vlgmr.msra.gmra.mrb[68].mxu1 %vm324_vm2, %v2440_v60 }
0x1bb7   :  { %4390 = vmatpush3.bf16.msra.mxu1 %v4562_v59  ;;  %4393 = vmatprep.mubr.msk.bf16.mxu1 %vm4701_vm1, %v4700_v16 }
0x1bb8   :  { %4391 = vmatprep.subr.bf16.mxu1 %v4700_v16 }
0x1bb9   :  { %v2530_v0 = vpop.f32.mrb[76].mxu0 }
0x1bba   :  { %v4387_v2 = vpop.f32.mrb[77].mxu0 }
0x1bbb   :  { %v2533_v4 = vpop.f32.mrb[78].mxu0  ;;  %4392 = vmatpush3.bf16.msra.mxu1 %v4563_v63 }
0x1bbc   :  { %v4388_v7 = vpop.f32.mrb[79].mxu0  ;;  %4405 = vmatprep.subr.bf16.mxu1 %v4700_v16 }
0x1bbe   :  { %4394 = vmatmul.mubr.msk.bf16.vlgmr.msra.gmra.mrb[72].mxu1 %vm86_vm0, %v5249_v53 }
0x1bbf   :  { %4406 = vmatpush3.bf16.msra.mxu1 %v4564_v6  ;;  %4409 = vmatprep.mubr.msk.bf16.mxu1 %vm4701_vm1, %v4700_v16  ;;  %v4566_v6 = vld [vmem:[%s5678_s1 + $0x70] sm:$0xff]  }
0x1bc0   :  { %4407 = vmatprep.subr.bf16.mxu1 %v4700_v16 }
0x1bc1   :  { %v2656_v10 = vpop.f32.mrb[80].mxu0 }
0x1bc2   :  { %v4403_v11 = vpop.f32.mrb[81].mxu0  ;;  %v2657_v13 = vadd.f32 %v3893_v9, %v2656_v10  ;;  %v4569_v10 = vld [vmem:[%s5682_s27 + $0x78] sm:$0xff]  }
0x1bc3   :  { %v2659_v12 = vpop.f32.mrb[82].mxu0  ;;  %4408 = vmatpush3.bf16.msra.mxu1 %v4565_v8  ;;  %v4567_v8 = vld [vmem:[%s5678_s1 + $0x78] sm:$0xff]   ;;  %s5686_s1 = sld [smem:[#allocation7_spill]] }
0x1bc4   :  { %v2660_v14 = vadd.f32 %v3893_v9, %v2659_v12  ;;  %v4404_v15 = vpop.f32.mrb[83].mxu0  ;;  %4419 = vmatprep.subr.bf16.mxu1 %v4700_v16  ;;  %v4568_v9 = vld [vmem:[%s5682_s27 + $0x70] sm:$0xff]   ;;  %v3907_v11 = vld [vmem:[%s5645_s11 + $0x18] sm:$0xf] }
0x1bc5   :  { %v2850_v12 = vsel %vm755_vm4, %v3907_v11, 0 }
0x1bc6   :  { %v2727_v17 = vpack.c.bf16 %v2660_v14, %v2657_v13  ;;  %4410 = vmatmul.mubr.msk.bf16.vlgmr.msra.gmra.mrb[76].mxu1 %vm86_vm0, %v5249_v53 }
0x1bc7   :  { %4421 = vmatprep.mubr.msk.bf16.mxu1 %vm4701_vm1, %v4700_v16 }
0x1bc8   :  { %v2732_v18 = vsel %vm324_vm2, %v2727_v17, 0  ;;  %v4570_v17 = vld [vmem:[%s5679_s4 + $0x70] sm:$0xff]  }
0x1bc9   :  { %4414 = vmatpush3.bf16.xpose.msra.mxu0 %v2732_v18 }
0x1bca   :  { %4425 = vmatprep.subr.bf16.mxu0 %v4700_v16 }
0x1c89   :  { %v2483_v19 = vpop.f32.mrb[68].mxu1 }
0x1c8a   :  { %v5425_v20 = vadd.f32 %v2530_v0, %v2483_v19  ;;  %v4381_v36 = vpop.f32.mrb[69].mxu1 }
0x1c8b   :  { %v2486_v21 = vpop.f32.mrb[70].mxu1  ;;  %v4571_v36 = vld [vmem:[%s5679_s4 + $0x78] sm:$0xff]  }
0x1c8c   :  { %v5427_v22 = vadd.f32 %v2533_v4, %v2486_v21  ;;  %v4382_v24 = vpop.f32.mrb[71].mxu1  ;;  %v3913_v21 = vld [vmem:[%s5683_s29 + $0x7] ss:$0 sm:$0xff] }
0x1c91   :  { %v2593_v26 = vpop.f32.mrb[72].mxu1 }
0x1c92   :  { %v4395_v33 = vpop.f32.mrb[73].mxu1  ;;  %v2594_v28 = vadd.f32 %v3885_v25, %v2593_v26 }
0x1c93   :  { %v2596_v34 = vpop.f32.mrb[74].mxu1 }
0x1c94   :  { %v2597_v29 = vadd.f32 %v3885_v25, %v2596_v34  ;;  %v4396_v30 = vpop.f32.mrb[75].mxu1 }
0x1c95   :  { %v3929_v30 = vld [vmem:[%s5644_s10 + $0x7] ss:$0 sm:$0xff] }
0x1c96   :  { %v2726_v31 = vpack.c.bf16 %v2597_v29, %v2594_v28 }
0x1c98   :  { %4416 = vmatmul.mubr.msk.bf16.vlgmr.msra.gmra.mrb[84].mxu0 %vm324_vm2, %v2726_v31 }
0x1c99   :  { %v2719_v62 = vpop.f32.mrb[76].mxu1  ;;  %4427 = vmatprep.mubr.msk.bf16.mxu0 %vm4701_vm1, %v4700_v16  ;;  %4426 = vmatpush3.bf16.msra.mxu0 %v2850_v12 }
0x1c9a   :  { %v4411_v1 = vpop.f32.mrb[77].mxu1  ;;  %v2720_v37 = vadd.f32 %v3901_v32, %v2719_v62  ;;  %4439 = vmatprep.subr.bf16.mxu0 %v4700_v16 }
0x1c9b   :  { %v2722_v35 = vpop.f32.mrb[78].mxu1 }
0x1c9c   :  { %v2723_v38 = vadd.f32 %v3901_v32, %v2722_v35  ;;  %v4412_v39 = vpop.f32.mrb[79].mxu1 }
0x1c9e   :  { %v2798_v40 = vpack.c.bf16 %v2723_v38, %v2720_v37 }
0x1ca0   :  { %4420 = vmatpush3.bf16.msra.mxu1 %v2798_v40 }
0x1ca1   :  { %4431 = vmatprep.subr.bf16.mxu1 %v4700_v16 }
0x1d6b   :  { %v2768_v41 = vpop.f32.mrb[84].mxu0 }
0x1d6c   :  { %v2769_v42 = vadd.f32 %v5310_v23, %v2768_v41  ;;  %v4417_v43 = vpop.f32.mrb[85].mxu0 }
0x1d6d   :  { %v2771_v44 = vpop.f32.mrb[86].mxu0 }
0x1d6e   :  { %v2772_v45 = vadd.f32 %v5316_v27, %v2771_v44  ;;  %v4418_v46 = vpop.f32.mrb[87].mxu0  ;;  %v2775_v47 = vsel %vm372_vm3, %v2769_v42, -inf  ;;  %v3921_v44 = vld [vmem:[%s5684_s30 + $0x7] ss:$0 sm:$0xff] }
0x1d6f   :  { %2776 = vmax.xlane.f32.xlu0 %v2775_v47 }
0x1d70   :  { %v2778_v48 = vsel %vm372_vm3, %v2772_v45, -inf }
0x1d71   :  { %2779 = vmax.xlane.f32.xlu1 %v2778_v48 }
0x1dfc   :  { %v2777_v3 = vpop.xlane.xlu0 %2776 }
0x1dfd   :  { %v2781_v49 = vsub.f32 %v2769_v42, %v2777_v3 }
0x1dfe   :  { %v2780_v50 = vpop.xlane.xlu1 %2779 }
0x1dff   :  { %v2783_v52 = vmul.f32 1.442695, %v2781_v49  ;;  %v2782_v54 = vsub.f32 %v2772_v45, %v2780_v50 }
0x1e01   :  { %4646 = vpow2.f32 %v2783_v52  ;;  %v2785_v55 = vmul.f32 1.442695, %v2782_v54 }
0x1e03   :  { %4648 = vpow2.f32 %v2785_v55 }
0x1e0b   :  { %v4647_v56 = vpop.eup %4646 }
0x1e0c   :  { %v2787_v57 = vsel %vm372_vm3, %v4647_v56, 0.0 }
0x1e0d   :  { %v4649_v58 = vpop.eup %4648  ;;  %2788 = vadd.xlane.f32.xlu0 %v2787_v57 }
0x1e0e   :  { %v2790_v59 = vsel %vm372_vm3, %v4649_v58, 0.0 }
0x1e0f   :  { %2791 = vadd.xlane.f32.xlu1 %v2790_v59 }
0x1e9a   :  { %v2789_v60 = vpop.xlane.xlu0 %2788 }
0x1e9b   :  { %4650 = vrcp.f32 %v2789_v60 }
0x1e9c   :  { %v2792_v61 = vpop.xlane.xlu1 %2791 }
0x1e9d   :  { %4652 = vrcp.f32 %v2792_v61 }
0x1ea5   :  { %v4651_v63 = vpop.eup %4650 }
0x1ea6   :  { %v2795_v2 = vmul.f32 %v4651_v63, %v4647_v56 }
0x1ea7   :  { %v4653_v0 = vpop.eup %4652 }
0x1ea8   :  { %v2796_v4 = vmul.f32 %v4653_v0, %v4649_v58 }
0x1eaa   :  { %v2797_v7 = vpack.c.bf16 %v2796_v4, %v2795_v2 }
0x1eac   :  { %4422 = vmatmul.mubr.msk.bf16.vlgmr.msra.gmra.mrb[80].mxu1 %vm372_vm3, %v2797_v7 }
0x1ead   :  { %4432 = vmatpush3.bf16.msra.mxu1 %v4566_v6  ;;  %4435 = vmatprep.mubr.msk.bf16.mxu1 %vm4701_vm1, %v4700_v16 }
0x1eae   :  { %4433 = vmatprep.subr.bf16.mxu1 %v4700_v16 }
0x1eb1   :  { %4434 = vmatpush3.bf16.msra.mxu1 %v4567_v8 }
0x1eb2   :  { %4447 = vmatprep.subr.bf16.mxu1 %v4700_v16 }
0x1eb4   :  { %4436 = vmatmul.mubr.msk.bf16.vlgmr.msra.gmra.mrb[84].mxu1 %vm86_vm0, %v5249_v53 }
0x1eb5   :  { %4448 = vmatpush3.bf16.msra.mxu1 %v4568_v9  ;;  %4451 = vmatprep.mubr.msk.bf16.mxu1 %vm4701_vm1, %v4700_v16 }
0x1eb6   :  { %4449 = vmatprep.subr.bf16.mxu1 %v4700_v16 }
0x1eb9   :  { %4450 = vmatpush3.bf16.msra.mxu1 %v4569_v10 }
0x1eba   :  { %4461 = vmatprep.subr.bf16.mxu1 %v4700_v16 }
0x1ebc   :  { %4452 = vmatmul.mubr.msk.bf16.vlgmr.msra.gmra.mrb[88].mxu1 %vm86_vm0, %v5249_v53 }
0x1ebd   :  { %4463 = vmatprep.mubr.msk.bf16.mxu1 %vm4701_vm1, %v4700_v16 }
0x1f7f   :  { %v2836_v13 = vpop.f32.mrb[80].mxu1 }
0x1f80   :  { %v4423_v14 = vpop.f32.mrb[81].mxu1 }
0x1f81   :  { %v2839_v15 = vpop.f32.mrb[82].mxu1 }
0x1f82   :  { %v2843_v18 = vpack.c.bf16 %v2839_v15, %v2836_v13  ;;  %v4424_v19 = vpop.f32.mrb[83].mxu1  ;;  %v3935_v15 = vld [vmem:[%s5645_s11 + $0x1c] sm:$0xf] }
0x1f84   :  { %4428 = vmatmul.mubr.msk.bf16.vlgmr.msra.gmra.mrb[88].mxu0 %vm324_vm2, %v2843_v18 }
0x1f85   :  { %4440 = vmatpush3.bf16.msra.mxu0 %v4570_v17  ;;  %4443 = vmatprep.mubr.msk.bf16.mxu0 %vm4701_vm1, %v4700_v16  ;;  %v3208_v17 = vsel %vm755_vm4, %v3935_v15, 0 }
0x1f86   :  { %4441 = vmatprep.subr.bf16.mxu0 %v4700_v16 }
0x1f87   :  { %v2951_v24 = vpop.f32.mrb[84].mxu1 }
0x1f88   :  { %v4437_v25 = vpop.f32.mrb[85].mxu1  ;;  %v2952_v33 = vadd.f32 %v3913_v21, %v2951_v24 }
0x1f89   :  { %v2954_v26 = vpop.f32.mrb[86].mxu1  ;;  %4442 = vmatpush3.bf16.msra.mxu0 %v4571_v36 }
0x1f8a   :  { %v2955_v34 = vadd.f32 %v3913_v21, %v2954_v26  ;;  %v4438_v28 = vpop.f32.mrb[87].mxu1  ;;  %4455 = vmatprep.subr.bf16.mxu0 %v4700_v16  ;;  %v3937_v26 = vld [vmem:[%s5646_s12 + $0x1] ss:$0 sm:$0xff] }
0x1f8c   :  { %v3084_v29 = vpack.c.bf16 %v2955_v34, %v2952_v33  ;;  %4444 = vmatmul.mubr.msk.bf16.vlgmr.msra.gmra.mrb[92].mxu0 %vm86_vm0, %v5249_v53 }
0x1f8d   :  { %4457 = vmatprep.mubr.msk.bf16.mxu0 %vm4701_vm1, %v4700_v16 }
0x1f8f   :  { %v3077_v31 = vpop.f32.mrb[88].mxu1 }
0x1f90   :  { %v4453_v32 = vpop.f32.mrb[89].mxu1  ;;  %v3078_v1 = vadd.f32 %v3929_v30, %v3077_v31 }
0x1f91   :  { %v3080_v62 = vpop.f32.mrb[90].mxu1 }
0x1f92   :  { %v3081_v35 = vadd.f32 %v3929_v30, %v3080_v62  ;;  %v4454_v37 = vpop.f32.mrb[91].mxu1 }
0x1f94   :  { %v3156_v38 = vpack.c.bf16 %v3081_v35, %v3078_v1 }
0x1f96   :  { %4462 = vmatpush3.bf16.msra.mxu1 %v3156_v38 }
0x1f97   :  { %4473 = vmatprep.subr.bf16.mxu1 %v4700_v16 }
0x2057   :  { %v2886_v39 = vpop.f32.mrb[88].mxu0 }
0x2058   :  { %v5500_v53 = vadd.f32 %v2886_v39, %v5425_v20  ;;  %v4429_v40 = vpop.f32.mrb[89].mxu0 }
0x2059   :  { %v2889_v41 = vpop.f32.mrb[90].mxu0 }
0x205a   :  { %v5503_v42 = vadd.f32 %v2889_v41, %v5427_v22  ;;  %v4430_v43 = vpop.f32.mrb[91].mxu0 }
0x205f   :  { %v3014_v45 = vpop.f32.mrb[92].mxu0 }
0x2060   :  { %v4445_v46 = vpop.f32.mrb[93].mxu0  ;;  %v3015_v48 = vadd.f32 %v3921_v44, %v3014_v45 }
0x2061   :  { %v3017_v47 = vpop.f32.mrb[94].mxu0  ;;  %v4573_v46 = vld [vmem:[%s5649_s15 + $0x18] sm:$0xff]  }
0x2062   :  { %v3018_v3 = vadd.f32 %v3921_v44, %v3017_v47  ;;  %v4446_v49 = vpop.f32.mrb[95].mxu0 }
0x2064   :  { %v3085_v50 = vpack.c.bf16 %v3018_v3, %v3015_v48 }
0x2066   :  { %v3090_v20 = vsel %vm324_vm2, %v3085_v50, 0 }
0x2067   :  { %4456 = vmatpush3.bf16.xpose.msra.mxu0 %v3090_v20 }
0x2068   :  { %4467 = vmatprep.subr.bf16.mxu0 %v4700_v16 }
0x206e   :  { %4458 = vmatmul.mubr.msk.bf16.vlgmr.msra.gmra.mrb[96].mxu0 %vm324_vm2, %v3084_v29 }
0x206f   :  { %4469 = vmatprep.mubr.msk.bf16.mxu0 %vm4701_vm1, %v4700_v16  ;;  %4468 = vmatpush3.bf16.msra.mxu0 %v3208_v17 }
0x2070   :  { %4481 = vmatprep.subr.bf16.mxu0 %v4700_v16 }
0x2141   :  { %v3126_v22 = vpop.f32.mrb[96].mxu0 }
0x2142   :  { %v3127_v52 = vadd.f32 %v5310_v23, %v3126_v22  ;;  %v4459_v54 = vpop.f32.mrb[97].mxu0 }
0x2143   :  { %v3129_v55 = vpop.f32.mrb[98].mxu0 }
0x2144   :  { %v3130_v56 = vadd.f32 %v5316_v27, %v3129_v55  ;;  %v4460_v57 = vpop.f32.mrb[99].mxu0  ;;  %v3133_v58 = vsel %vm372_vm3, %v3127_v52, -inf }
0x2145   :  { %3134 = vmax.xlane.f32.xlu0 %v3133_v58  ;;  %v3939_v58 = vld [vmem:[%s5648_s14 + $0x1] ss:$0 sm:$0xff] }
0x2146   :  { %v3136_v59 = vsel %vm372_vm3, %v3130_v56, -inf }
0x2147   :  { %3137 = vmax.xlane.f32.xlu1 %v3136_v59 }
0x21d2   :  { %v3135_v60 = vpop.xlane.xlu0 %3134 }
0x21d3   :  { %v3139_v61 = vsub.f32 %v3127_v52, %v3135_v60  ;;  %v3938_v52 = vld [vmem:[%s5647_s13 + $0x1] ss:$0 sm:$0xff] }
0x21d4   :  { %v3138_v63 = vpop.xlane.xlu1 %3137 }
0x21d5   :  { %v3141_v0 = vmul.f32 1.442695, %v3139_v61  ;;  %v3140_v2 = vsub.f32 %v3130_v56, %v3138_v63 }
0x21d7   :  { %4654 = vpow2.f32 %v3141_v0  ;;  %v3143_v4 = vmul.f32 1.442695, %v3140_v2  ;;  %v4574_v0 = vld [vmem:[%s5651_s17 + $0x20] sm:$0xff]   ;;  %v4575_v2 = vld [vmem:[%s5651_s17 + $0x28] sm:$0xff]  }
0x21d9   :  { %4656 = vpow2.f32 %v3143_v4  ;;  %v4576_v4 = vld [vmem:[%s5651_s17 + $0x30] sm:$0xff]  }
0x21e1   :  { %v4655_v23 = vpop.eup %4654 }
0x21e2   :  { %v3145_v6 = vsel %vm372_vm3, %v4655_v23, 0.0 }
0x21e3   :  { %v4657_v7 = vpop.eup %4656  ;;  %3146 = vadd.xlane.f32.xlu0 %v3145_v6  ;;  %v3944_v6 = vld [vmem:[%s5650_s16 + $0x1] ss:$0 sm:$0xff] }
0x21e4   :  { %v3148_v27 = vsel %vm372_vm3, %v4657_v7, 0.0 }
0x21e5   :  { %3149 = vadd.xlane.f32.xlu1 %v3148_v27 }
0x2270   :  { %v3147_v8 = vpop.xlane.xlu0 %3146 }
0x2271   :  { %4658 = vrcp.f32 %v3147_v8 }
0x2272   :  { %v3150_v9 = vpop.xlane.xlu1 %3149 }
0x2273   :  { %4660 = vrcp.f32 %v3150_v9 }
0x227b   :  { %v4659_v10 = vpop.eup %4658 }
0x227c   :  { %v3153_v12 = vmul.f32 %v4659_v10, %v4655_v23  ;;  %v4577_v23 = vld [vmem:[%s5651_s17 + $0x38] sm:$0xff]  }
0x227d   :  { %v4661_v11 = vpop.eup %4660 }
0x227e   :  { %v3154_v13 = vmul.f32 %v4661_v11, %v4657_v7 }
0x2280   :  { %v3155_v14 = vpack.c.bf16 %v3154_v13, %v3153_v12 }
0x2282   :  { %4464 = vmatmul.mubr.msk.bf16.vlgmr.msra.gmra.mrb[92].mxu1 %vm372_vm3, %v3155_v14 }
0x2283   :  { %4477 = vmatprep.mubr.msk.bf16.mxu1 %vm4701_vm1, %v4700_v16 }
0x2355   :  { %v3194_v18 = vpop.f32.mrb[92].mxu1 }
0x2356   :  { %v4465_v19 = vpop.f32.mrb[93].mxu1 }
0x2357   :  { %v3197_v36 = vpop.f32.mrb[94].mxu1 }
0x2358   :  { %v3201_v21 = vpack.c.bf16 %v3197_v36, %v3194_v18  ;;  %v4466_v24 = vpop.f32.mrb[95].mxu1 }
0x235a   :  { %4470 = vmatmul.mubr.msk.bf16.vlgmr.msra.gmra.mrb[100].mxu0 %vm324_vm2, %v3201_v21 }
0x235b   :  { %4489 = vmatprep.mubr.msk.bf16.mxu0 %vm4701_vm1, %v4700_v16  ;;  %4482 = vmatpush3.bf16.msra.mxu0 %v4574_v0  ;;  %v3963_v0 = vld [vmem:[%s5654_s20 + $0x1] ss:$0 sm:$0xff] }
0x235c   :  { %4483 = vmatprep.subr.bf16.mxu0 %v4700_v16 }
0x235f   :  { %4484 = vmatpush3.bf16.msra.mxu0 %v4575_v2 }
0x2360   :  { %4485 = vmatprep.subr.bf16.mxu0 %v4700_v16 }
0x2363   :  { %4486 = vmatpush3.bf16.msra.mxu0 %v4576_v4 }
0x2364   :  { %4487 = vmatprep.subr.bf16.mxu0 %v4700_v16 }
0x2367   :  { %4488 = vmatpush3.bf16.msra.mxu0 %v4577_v23 }
0x2368   :  { %4507 = vmatprep.subr.bf16.mxu0 %v4700_v16 }
0x242d   :  { %v3244_v25 = vpop.f32.mrb[100].mxu0 }
0x242e   :  { %v3251_v33 = vadd.f32 %v3244_v25, %v5500_v53  ;;  %v4471_v34 = vpop.f32.mrb[101].mxu0 }
0x242f   :  { %v3247_v28 = vpop.f32.mrb[102].mxu0 }
0x2430   :  { %v3258_v29 = vadd.f32 %v3937_v26, %v3251_v33  ;;  %v3252_v30 = vadd.f32 %v3247_v28, %v5503_v42  ;;  %v4472_v31 = vpop.f32.mrb[103].mxu0 }
0x2432   :  { %v3259_v32 = vadd.f32 %v3937_v26, %v3252_v30  ;;  %v3260_v62 = vadd.f32 %v3258_v29, %v5240_v5 }
0x2434   :  { %v3264_v1 = vsel %vm86_vm0, %v3260_v62, 0.0  ;;  %v3261_v35 = vadd.f32 %v3259_v32, %v5242_v51  ;;  %v4572_v51 = vld [vmem:[%s5649_s15 + $0x10] sm:$0xff]  }
0x2435   :  { %3265 = vadd.xlane.f32.xlu0 %v3264_v1  ;;  %4474 = vmatpush3.bf16.msra.mxu1 %v4572_v51 }
0x2436   :  { %v3267_v37 = vsel %vm86_vm0, %v3261_v35, 0.0  ;;  %4475 = vmatprep.subr.bf16.mxu1 %v4700_v16 }
0x2437   :  { %3268 = vadd.xlane.f32.xlu1 %v3267_v37 }
0x2439   :  { %4476 = vmatpush3.bf16.msra.mxu1 %v4573_v46 }
0x243a   :  { %4493 = vmatprep.subr.bf16.mxu1 %v4700_v16 }
0x24c2   :  { %v3266_v38 = vpop.xlane.xlu0 %3265 }
0x24c3   :  { %v3270_v39 = vmul.f32 0.03125, %v3266_v38 }
0x24c4   :  { %v3269_v53 = vpop.xlane.xlu1 %3268 }
0x24c5   :  { %v3272_v40 = vsub.f32 %v3260_v62, %v3270_v39  ;;  %v3271_v41 = vmul.f32 0.03125, %v3269_v53  ;;  %v3956_v62 = vld [vmem:[%s5652_s18 + $0x1] ss:$0 sm:$0xff] }
0x24c7   :  { %v3273_v43 = vsub.f32 %v3261_v35, %v3271_v41  ;;  %v3274_v44 = vmul.f32 %v3272_v40, %v3272_v40 }
0x24c9   :  { %v3276_v42 = vsel %vm86_vm0, %v3274_v44, 0.0  ;;  %v3275_v45 = vmul.f32 %v3273_v43, %v3273_v43 }
0x24ca   :  { %3277 = vadd.xlane.f32.xlu0 %v3276_v42 }
0x24cb   :  { %v3279_v5 = vsel %vm86_vm0, %v3275_v45, 0.0 }
0x24cc   :  { %3280 = vadd.xlane.f32.xlu1 %v3279_v5 }
0x2557   :  { %v3278_v47 = vpop.xlane.xlu0 %3277 }
0x2558   :  { %v3282_v48 = vmul.f32 0.03125, %v3278_v47 }
0x2559   :  { %v3281_v3 = vpop.xlane.xlu1 %3280 }
0x255a   :  { %v3284_v49 = vadd.f32 1e-05, %v3282_v48  ;;  %v3283_v50 = vmul.f32 0.03125, %v3281_v3 }
0x255c   :  { %4662 = vrsqrt.f32 %v3284_v49  ;;  %v3285_v20 = vadd.f32 1e-05, %v3283_v50 }
0x255e   :  { %4664 = vrsqrt.f32 %v3285_v20 }
0x2566   :  { %v4663_v22 = vpop.eup %4662 }
0x2567   :  { %v3288_v54 = vmul.f32 %v4663_v22, %v3272_v40 }
0x2568   :  { %v4665_v55 = vpop.eup %4664 }
0x2569   :  { %v3294_v56 = vmul.f32 %v3938_v52, %v3288_v54  ;;  %v3289_v57 = vmul.f32 %v4665_v55, %v3273_v43 }
0x256b   :  { %v3295_v59 = vmul.f32 %v3938_v52, %v3289_v57  ;;  %v3300_v60 = vadd.f32 %v3939_v58, %v3294_v56 }
0x256d   :  { %v3301_v61 = vadd.f32 %v3939_v58, %v3295_v59  ;;  %v3962_v58 = vld [vmem:[%s5653_s19 + $0x1] ss:$0 sm:$0xff] }
0x256f   :  { %v3302_v63 = vpack.c.bf16 %v3301_v61, %v3300_v60 }
0x2571   :  { %4478 = vmatmul.mubr.msk.bf16.vlgmr.msra.gmra.mrb[96].mxu1 %vm86_vm0, %v3302_v63 }
0x2572   :  { %4495 = vmatprep.mubr.msk.bf16.mxu1 %vm4701_vm1, %v4700_v16 }
0x2644   :  { %v3362_v7 = vpop.f32.mrb[96].mxu1 }
0x2645   :  { %v3363_v27 = vadd.f32 %v3944_v6, %v3362_v7  ;;  %v4479_v8 = vpop.f32.mrb[97].mxu1  ;;  %v3512_v7 = vld [vmem:[%s5686_s1] sm:$0x1] }
0x2646   :  { %v3365_v9 = vpop.f32.mrb[98].mxu1  ;;  %v4579_v8 = vld [vmem:[%s5655_s21 + $0x8] sm:$0xff]  }
0x2647   :  { %v3369_v10 = vmul.f32 %v3363_v27, %v3363_v27  ;;  %v3366_v11 = vadd.f32 %v3944_v6, %v3365_v9  ;;  %v4480_v12 = vpop.f32.mrb[99].mxu1 }
0x2649   :  { %v3371_v13 = vmul.f32 %v3369_v10, %v3363_v27  ;;  %v3370_v14 = vmul.f32 %v3366_v11, %v3366_v11 }
0x264b   :  { %v3373_v15 = vmul.f32 0.044715, %v3371_v13  ;;  %v3372_v17 = vmul.f32 %v3370_v14, %v3366_v11  ;;  %v4580_v14 = vld [vmem:[%s5657_s23] sm:$0xff]  }
0x264d   :  { %v3375_v18 = vadd.f32 %v3373_v15, %v3363_v27  ;;  %v3374_v19 = vmul.f32 0.044715, %v3372_v17  ;;  %v4581_v15 = vld [vmem:[%s5657_s23 + $0x8] sm:$0xff]   ;;  %v3965_v17 = vld [vmem:[%s5656_s22] ss:$0 sm:$0xff]  ;;  %s4702_s23 = smov [#allocation2]  }
0x264e   :  { %s3701_s14 = sshll.u32 %s4702_s23, 4  ;;  %s3702_s14 = int_to_ptr.vmem [resolvable:$true] %s3701_s14 }
0x264f   :  { %v3377_v36 = vmul.f32 0.7978846, %v3375_v18  ;;  %v3376_v21 = vadd.f32 %v3374_v19, %v3366_v11  ;;  %s4676_s22 = scalar_lea.vmem %s3702_s14, 32  ;;  %p4681_p1 = scmp.lt.s32.totalorder %s3702_s14, %s3702_s14 }
0x2650   :  { %p4677_p0 = scmp.ne.s32.totalorder %s3702_s14, %s4676_s22  ;;  %p4682_p2 = scmp.lt.s32.totalorder %s4676_s22, %s4676_s22 }
0x2651   :  { %4666 = vtanh.f32 %v3377_v36  ;;  %v3378_v24 = vmul.f32 0.7978846, %v3376_v21 }
0x2652   :  { %p4683_p3 = por %p4682_p2, %p4681_p1 }
0x2653   :  { %4668 = vtanh.f32 %v3378_v24 }
0x2654   :  { %p4684_p4 = pnand %p4683_p3, %p4677_p0 }
0x265b   :  { %v4667_v25 = vpop.eup %4666 }
0x265c   :  { %v3381_v26 = vadd.f32 1.0, %v4667_v25 }
0x265d   :  { %v4669_v33 = vpop.eup %4668 }
0x265e   :  { %v3383_v34 = vmul.f32 0.5, %v3381_v26  ;;  %v3382_v28 = vadd.f32 1.0, %v4669_v33 }
0x2660   :  { %v3384_v29 = vmul.f32 0.5, %v3382_v28  ;;  %v3385_v30 = vmul.f32 %v3383_v34, %v3363_v27  ;;  %v4578_v27 = vld [vmem:[%s5655_s21] sm:$0xff]  }
0x2662   :  { %v3386_v31 = vmul.f32 %v3384_v29, %v3366_v11 }
0x2664   :  { %v3387_v32 = vpack.c.bf16 %v3386_v31, %v3385_v30 }
0x2666   :  { %4490 = vmatmul.mubr.msk.bf16.vlgmr.msra.gmra.mrb[104].mxu0 %vm1734_vm5, %v3387_v32 }
0x2667   :  { %4511 = vmatprep.mubr.msk.bf16.mxu0 %vm4701_vm1, %v4700_v16  ;;  %4508 = vmatpush3.bf16.msra.mxu0 %v4580_v14 }
0x2668   :  { %4509 = vmatprep.subr.bf16.mxu0 %v4700_v16 }
0x266b   :  { %4510 = vmatpush3.bf16.msra.mxu0 %v4581_v15 }
0x2739   :  { %v3463_v1 = vpop.f32.mrb[104].mxu0 }
0x273a   :  { %v3464_v35 = vadd.f32 %v3956_v62, %v3463_v1  ;;  %v4491_v37 = vpop.f32.mrb[105].mxu0 }
0x273b   :  { %v3466_v38 = vpop.f32.mrb[106].mxu0 }
0x273c   :  { %v3467_v39 = vadd.f32 %v3956_v62, %v3466_v38  ;;  %v4492_v53 = vpop.f32.mrb[107].mxu0  ;;  %v3470_v40 = vadd.f32 %v3464_v35, %v3300_v60 }
0x273e   :  { %v3474_v41 = vsel %vm86_vm0, %v3470_v40, 0.0  ;;  %v3471_v43 = vadd.f32 %v3467_v39, %v3301_v61 }
0x273f   :  { %3475 = vadd.xlane.f32.xlu0 %v3474_v41 }
0x2740   :  { %v3477_v44 = vsel %vm86_vm0, %v3471_v43, 0.0 }
0x2741   :  { %3478 = vadd.xlane.f32.xlu1 %v3477_v44 }
0x27cc   :  { %v3476_v42 = vpop.xlane.xlu0 %3475 }
0x27cd   :  { %v3480_v45 = vmul.f32 0.03125, %v3476_v42 }
0x27ce   :  { %v3479_v5 = vpop.xlane.xlu1 %3478 }
0x27cf   :  { %v3482_v51 = vsub.f32 %v3470_v40, %v3480_v45  ;;  %v3481_v46 = vmul.f32 0.03125, %v3479_v5 }
0x27d1   :  { %v3483_v47 = vsub.f32 %v3471_v43, %v3481_v46  ;;  %v3484_v48 = vmul.f32 %v3482_v51, %v3482_v51 }
0x27d3   :  { %v3486_v3 = vsel %vm86_vm0, %v3484_v48, 0.0  ;;  %v3485_v49 = vmul.f32 %v3483_v47, %v3483_v47 }
0x27d4   :  { %3487 = vadd.xlane.f32.xlu0 %v3486_v3 }
0x27d5   :  { %v3489_v50 = vsel %vm86_vm0, %v3485_v49, 0.0 }
0x27d6   :  { %3490 = vadd.xlane.f32.xlu1 %v3489_v50 }
0x2861   :  { %v3488_v20 = vpop.xlane.xlu0 %3487 }
0x2862   :  { %v3492_v22 = vmul.f32 0.03125, %v3488_v20 }
0x2863   :  { %v3491_v52 = vpop.xlane.xlu1 %3490 }
0x2864   :  { %v3494_v54 = vadd.f32 1e-05, %v3492_v22  ;;  %v3493_v55 = vmul.f32 0.03125, %v3491_v52 }
0x2866   :  { %4670 = vrsqrt.f32 %v3494_v54  ;;  %v3495_v56 = vadd.f32 1e-05, %v3493_v55 }
0x2868   :  { %4672 = vrsqrt.f32 %v3495_v56 }
0x2870   :  { %v4671_v57 = vpop.eup %4670 }
0x2871   :  { %v3498_v59 = vmul.f32 %v4671_v57, %v3482_v51 }
0x2872   :  { %v4673_v60 = vpop.eup %4672 }
0x2873   :  { %v3499_v61 = vmul.f32 %v4673_v60, %v3483_v47  ;;  %v3504_v63 = vmul.f32 %v3962_v58, %v3498_v59 }
0x2875   :  { %v3505_v2 = vmul.f32 %v3962_v58, %v3499_v61  ;;  %v3510_v4 = vadd.f32 %v3963_v0, %v3504_v63 }
0x2877   :  { %v3511_v23 = vadd.f32 %v3963_v0, %v3505_v2 }
0x2879   :  { %v3513_v6 = vpack.c.bf16 %v3511_v23, %v3510_v4 }
0x287b   :  { %4494 = vmatpush3.bf16.msra.mxu1 %v3513_v6 }
0x287c   :  { %4499 = vmatprep.subr.bf16.mxu1 %v4700_v16 }
0x287e   :  { %4496 = vmatmul.mubr.msk.bf16.vlgmr.msra.gmra.mrb[100].mxu1 %vm372_vm3, %v3512_v7 }
0x287f   :  { %4500 = vmatpush3.bf16.msra.mxu1 %v4578_v27  ;;  %4503 = vmatprep.mubr.msk.bf16.mxu1 %vm4701_vm1, %v4700_v16 }
0x2880   :  { %4501 = vmatprep.subr.bf16.mxu1 %v4700_v16  ;;  %v3969_v16 = vld [vmem:[%s5658_s24] ss:$0 sm:$0xff] }
0x2883   :  { %4502 = vmatpush3.bf16.msra.mxu1 %v4579_v8 }
0x2951   :  { %v3551_v9 = vpop.f32.mrb[100].mxu1 }
0x2952   :  { %v3557_v10 = vpack.c.bf16 %v3551_v9, %v3551_v9  ;;  %v4497_v11 = vpop.f32.mrb[101].mxu1 }
0x2953   :  { %v3554_v12 = vpop.f32.mrb[102].mxu1 }
0x2954   :  { %4504 = vmatmul.mubr.msk.bf16.vlgmr.msra.gmra.mrb[104].mxu1 %vm86_vm0, %v3557_v10  ;;  %v4498_v13 = vpop.f32.mrb[103].mxu1 }
0x2a27   :  { %v3618_v18 = vpop.f32.mrb[104].mxu1 }
0x2a28   :  { %v3619_v19 = vadd.f32 %v3965_v17, %v3618_v18  ;;  %v4505_v36 = vpop.f32.mrb[105].mxu1 }
0x2a29   :  { %v3621_v21 = vpop.f32.mrb[106].mxu1 }
0x2a2a   :  { %vm3624_vm6 = vcmp.gt.f32.partialorder %v3619_v19, 0.0  ;;  %v3625_v24 = vmul.f32 0.01, %v3619_v19  ;;  %v4506_v25 = vpop.f32.mrb[107].mxu1 }
0x2a2c   :  { %v3626_v26 = vsel %vm3624_vm6, %v3619_v19, %v3625_v24 }
0x2a2d   :  { %v3627_v33 = vpack.c.bf16 %v3626_v26, %v3626_v26 }
0x2a2f   :  { %4512 = vmatmul.mubr.msk.bf16.vlgmr.msra.gmra.mrb[108].mxu0 %vm86_vm0, %v3627_v33 }
0x2b02   :  { %v3688_v34 = vpop.f32.mrb[108].mxu0 }
0x2b03   :  { %v3689_v28 = vadd.f32 %v3969_v16, %v3688_v34  ;;  %v4513_v29 = vpop.f32.mrb[109].mxu0 }
0x2b04   :  { %v3691_v30 = vpop.f32.mrb[110].mxu0 }
0x2b05   :  { %3694 = vst [vmem:[#allocation2] sm:$0x3] %v3689_v28  ;;  %v4514_v31 = vpop.f32.mrb[111].mxu0 }
0x2b06   :  { %4687 = shalt.err (!%p4684_p4)
}
0x2b07   :  { %s4688_s24 = scalar_lea.hbm %s5659_s25, 32 }
0x2b08   :  { %p4689_p5 = scmp.ne.s32.totalorder %s5659_s25, %s4688_s24  ;;  %p4692_p6 = scmp.lt.u32.totalorder %s4688_s24, %s5659_s25 }
0x2b0a   :  { %p4694_p7 = pnand %p4692_p6, %p4689_p5 }
0x2b0c   :  { %4697 = shalt.err (!%p4694_p7)
}
0x2b0d   :  { %3704 = dma.vmem_to_hbm [thread:$0]  %s3702_s14, 32, %s5659_s25, [#allocation3]  }
0x2b0e   :  { %4698 = dma.done.wait [#allocation3], 32  }
0x2b0f   :  { %4699 = vsyncadd [#allocation3], 4294967264 }
0x2b10   :  { %3708 = vsyncpa [#allocation3], 1 }

</bundles_post_ra>
